<compile_context>
chip_gen: v7x
topology: tpu7x:2x2x1
jax: 0.10.0
libtpu: 0.0.40
codegen_flags: <defaults>
</compile_context>

<pallas_src>
import math
from functools import partial

import jax
import jax.numpy as jnp
from jax.experimental import pallas as pl
from jax.experimental.pallas import tpu as pltpu


# ---------------- small helpers (used inside kernels) ----------------
def _layernorm(x, g, b, eps=1e-6):
    mu = jnp.mean(x, axis=-1, keepdims=True)
    var = jnp.mean((x - mu) ** 2, axis=-1, keepdims=True)
    return (x - mu) * jax.lax.rsqrt(var + eps) * g + b


def _gelu(h):
    return 0.5 * h * (1.0 + jnp.tanh(math.sqrt(2.0 / math.pi) * (h + 0.044715 * h ** 3)))


# ---------------- Kernel A: LN1 -> MultiHeadedPooling -> LN2 (NB sentences / step) --------
def _pooling_kernel(x_ref, bias_ref, ln1g_ref, ln1b_ref, wvk_ref, bvk_ref,
                    ln2g_ref, ln2b_ref, out_ref, *, heads, dph, nb, t, mm_dtype):
    d = heads * dph
    x = x_ref[...]                                                  # (NB, T, D) f32
    xn = _layernorm(x, ln1g_ref[...], ln1b_ref[...])                # LN1
    xn2 = xn.reshape(nb * t, d).astype(mm_dtype)
    # fused, lane-aligned [value | key | 0-pad] projection (weights pre-cast in wrapper)
    vk = jnp.dot(xn2, wvk_ref[...], preferred_element_type=jnp.float32) + bvk_ref[...]
    vals = vk[:, :d].reshape(nb, t, heads, dph)                     # (NB, T, H, dph)
    scores = vk[:, d:d + heads].reshape(nb, t, heads)               # (NB, T, H)
    scores = scores + bias_ref[...][:, :, None]                     # additive mask bias
    smax = jnp.max(scores, axis=1, keepdims=True)                   # softmax over tokens
    p = jnp.exp(scores - smax)
    attn = p * pl.reciprocal(jnp.sum(p, axis=1, keepdims=True), approx=True)
    ctx = jnp.sum(attn[..., None] * vals, axis=1)                   # (NB, H, dph)
    ctx = _layernorm(ctx, ln2g_ref[...], ln2b_ref[...])             # LN2 over dph
    out_ref[...] = ctx.reshape(nb, d)                               # lane-dense (NB, D)


# ---------------- Kernel B: inter-sentence attention (nbB batch elems / step) -------------
def _inter_attn_kernel(hv_ref, bias_ref, wqkv_ref, bqkv_ref, wl_ref, bl_ref,
                       out_ref, *, heads, dph, s, nbb, mm_dtype):
    d = heads * dph
    hv = hv_ref[...].reshape(nbb, s, heads, dph)
    # one head-major transpose for q/k/v (instead of 3), then fused QKV projection
    hv = jnp.transpose(hv, (0, 2, 1, 3)).reshape(nbb * heads * s, dph).astype(mm_dtype)
    qkv = jnp.dot(hv, wqkv_ref[...], preferred_element_type=jnp.float32) + bqkv_ref[...]
    qkv = qkv.reshape(nbb * heads, s, 3 * dph)
    q = (qkv[..., :dph] * (1.0 / math.sqrt(dph))).astype(mm_dtype)
    k = qkv[..., dph:2 * dph].astype(mm_dtype)
    v = qkv[..., 2 * dph:].astype(mm_dtype)
    scores = jnp.einsum('bqd,bkd->bqk', q, k,
                        preferred_element_type=jnp.float32)         # (nbB*H, S, S)
    scores = scores.reshape(nbb, heads, s, s) + bias_ref[...][:, :, None, :]
    smax = jnp.max(scores, axis=-1, keepdims=True)
    p = jnp.exp(scores - smax)
    attn = p * pl.reciprocal(jnp.sum(p, axis=-1, keepdims=True), approx=True)
    attn = attn.reshape(nbb * heads, s, s).astype(mm_dtype)
    ctxh = jnp.einsum('bqk,bkd->bqd', attn, v,
                      preferred_element_type=jnp.float32)           # (nbB*H, S, dph)
    ctx = jnp.transpose(ctxh.reshape(nbb, heads, s, dph), (0, 2, 1, 3))
    ctx = ctx.reshape(nbb * s, d).astype(mm_dtype)                  # PyTorch head layout
    # fused output-linear epilogue (dropout = identity)
    cv = jnp.dot(ctx, wl_ref[...], preferred_element_type=jnp.float32) + bl_ref[...]
    out_ref[...] = cv.reshape(nbb, s, d)


# ---------------- Kernel C: residual + PositionwiseFeedForward (d_ff-tiled) ---------------
def _ffn_kernel(x_ref, cv_ref, lng_ref, lnb_ref, w1_ref, b1_ref, w2_ref, b2_ref,
                out_ref, yn_ref, acc_ref, *, nb, t, mm_dtype):
    j = pl.program_id(1)
    d = x_ref.shape[-1]

    @pl.when(j == 0)
    def _():
        y = x_ref[...] + cv_ref[...][:, None, :]                    # residual
        yn = _layernorm(y, lng_ref[...], lnb_ref[...])
        yn_ref[...] = yn.reshape(nb * t, d).astype(yn_ref.dtype)    # cache LN'd acts once
        acc_ref[...] = jnp.zeros_like(acc_ref)

    h = jnp.dot(yn_ref[...], w1_ref[...], preferred_element_type=jnp.float32) + b1_ref[...]
    h = _gelu(h)
    acc_ref[...] += jnp.dot(h.astype(mm_dtype), w2_ref[...],
                            preferred_element_type=jnp.float32)

    @pl.when(j == pl.num_programs(1) - 1)
    def _():
        y = x_ref[...] + cv_ref[...][:, None, :]
        out_ref[...] = (acc_ref[...] + b2_ref[...]).reshape(nb, t, d) + y


# ---------------- tile-size / VMEM-budget helpers ----------------
def _pick_nb(bt, t, target_rows=768):
    """Sentences per grid step: NB*T near target rows, NB sublane-aligned, >=2 grid steps."""
    best, best_score = bt, None
    for nb in range(1, bt + 1):
        if bt % nb:
            continue
        if nb % 8 != 0 and nb != bt:        # (NB, D)/(NB, T) blocks need sublane-aligned NB
            continue
        score = (0 if bt // nb >= 2 else 1, abs(nb * t - target_rows))
        if best_score is None or score < best_score:
            best, best_score = nb, score
    return best


def _pick_nbb(batch, rows_per_elem, target_rows=512):
    """Batch elements per Stage-B step; keep >=2 steps so both v7x TensorCores get work."""
    best, best_score = 1, None
    for nbb in range(1, batch + 1):
        if batch % nbb:
            continue
        steps = batch // nbb
        score = (0 if steps >= 2 or batch == 1 else 1, abs(nbb * rows_per_elem - target_rows))
        if best_score is None or score < best_score:
            best, best_score = nbb, score
    return best


def _pick_ff_tile(d_ff, target=512):
    """d_ff chunk: largest multiple of 128 dividing d_ff and <= target (or d_ff itself)."""
    if d_ff <= target:
        return d_ff
    best = None
    for tf in range(128, target + 1, 128):
        if d_ff % tf == 0:
            best = tf
    return best if best is not None else d_ff


def _vmem_ceiling():
    try:
        cap = int(pltpu.get_tpu_info().vmem_capacity_bytes)
    except Exception:
        cap = 64 << 20                      # conservative (v7x physical)
    return max(min(100 << 20, int(cap * 0.9)), 32 << 20)


def _budget(*entries):
    """entries: (shape, dtype, num_buffers). Returns an explicit vmem_limit_bytes."""
    need = 0
    for shape, dtype, nbuf in entries:
        n = 1
        for s in shape:
            n *= int(s)
        need += n * jnp.dtype(dtype).itemsize * int(nbuf)
    return int(min(max(int(need * 1.5), 32 << 20), _vmem_ceiling()))


# ---------------- Wrapper ----------------
def transformer_inter_layer(inputs, mask_local, mask_cls, params, *,
                            batch_size, n_sents, heads,
                            matmul_dtype=jnp.float32, nb=None, nbb=None, ff_tile=None):
    Bt, T, D = inputs.shape
    dph = D // heads
    d_ff = params["ffn_w1"].shape[1]
    wdt = matmul_dtype
    f32 = jnp.float32

    if nb is None:
        nb = _pick_nb(Bt, T)
    grid_a = Bt // nb
    if nbb is None:
        nbb = _pick_nbb(batch_size, n_sents * heads)
    grid_b = batch_size // nbb
    if ff_tile is None:
        ff_tile = _pick_ff_tile(d_ff)
    n_ff = d_ff // ff_tile

    # precomputed additive mask biases (0 / -1e18), lane-friendly 2D/3D layouts
    neg = jnp.float32(-1e18)
    bias_tok = jnp.where(mask_local.astype(bool), neg, 0.0).astype(f32)            # (Bt, T)
    bias_sent = jnp.where(mask_cls.astype(bool), neg, 0.0).astype(f32)
    bias_sent = bias_sent.reshape(batch_size, 1, n_sents)                          # (B, 1, S)

    # ---- weight staging: cast ONCE to matmul dtype, fuse projections, lane-align ----
    w_pad = (-(D + heads)) % 128
    pool_wvk = jnp.concatenate(
        [params["pool_wv"], params["pool_wk"], jnp.zeros((D, w_pad), f32)], axis=1
    ).astype(wdt)                                                   # (D, wtot)
    pool_bvk = jnp.concatenate(
        [params["pool_bv"], params["pool_bk"], jnp.zeros((1, w_pad), f32)], axis=1)  # f32
    wtot = D + heads + w_pad
    att_wqkv = jnp.concatenate(
        [params["att_wq"], params["att_wk"], params["att_wv"]], axis=1).astype(wdt)  # (dph,3dph)
    att_bqkv = jnp.concatenate(
        [params["att_bq"], params["att_bk"], params["att_bv"]], axis=1)               # f32
    lin_w = params["lin_w"].astype(wdt)
    ffn_w1 = params["ffn_w1"].astype(wdt)
    ffn_w2 = params["ffn_w2"].astype(wdt)

    def const(shape):                       # constant block -> single-buffered
        zero = (0,) * len(shape)
        return pl.BlockSpec(shape, lambda *_, z=zero: z, pipeline_mode=pl.Buffered(1))

    # --- Stage A: LN1 -> multi-headed pooling -> LN2, NB sentences per step ---------------
    vmem_a = _budget(
        ((nb, T, D), f32, 2), ((nb, T), f32, 2), ((nb, D), f32, 2),
        ((D, wtot), wdt, 1), ((1, wtot), f32, 1), ((1, D), f32, 2), ((1, dph), f32, 2))
    head_vec = pl.pallas_call(
        partial(_pooling_kernel, heads=heads, dph=dph, nb=nb, t=T, mm_dtype=wdt),
        out_shape=jax.ShapeDtypeStruct((Bt, D), f32),
        grid_spec=pltpu.PrefetchScalarGridSpec(
            num_scalar_prefetch=0, grid=(grid_a,),
            in_specs=[
                pl.BlockSpec((nb, T, D), lambda i: (i, 0, 0)),
                pl.BlockSpec((nb, T), lambda i: (i, 0)),
                const((1, D)), const((1, D)),
                const((D, wtot)), const((1, wtot)),
                const((1, dph)), const((1, dph)),
            ],
            out_specs=pl.BlockSpec((nb, D), lambda i: (i, 0)),
        ),
        compiler_params=pltpu.CompilerParams(
            dimension_semantics=("parallel",), vmem_limit_bytes=vmem_a),
    )(inputs, bias_tok, params["ln1_g"], params["ln1_b"],
      pool_wvk, pool_bvk, params["ln2_g"], params["ln2_b"])

    # --- Stage B: inter-sentence attention (fused QKV, nbB batch elems) + output linear ---
    hv = head_vec.reshape(batch_size, n_sents, D)     # free reshape; no HBM transpose glue
    vmem_b = _budget(
        ((nbb, n_sents, D), f32, 2), ((nbb, 1, n_sents), f32, 2), ((nbb, n_sents, D), f32, 2),
        ((dph, 3 * dph), wdt, 1), ((1, 3 * dph), f32, 1), ((D, D), wdt, 1), ((1, D), f32, 1))
    cv = pl.pallas_call(
        partial(_inter_attn_kernel, heads=heads, dph=dph, s=n_sents, nbb=nbb, mm_dtype=wdt),
        out_shape=jax.ShapeDtypeStruct((batch_size, n_sents, D), f32),
        grid_spec=pltpu.PrefetchScalarGridSpec(
            num_scalar_prefetch=0, grid=(grid_b,),
            in_specs=[
                pl.BlockSpec((nbb, n_sents, D), lambda i: (i, 0, 0)),
                pl.BlockSpec((nbb, 1, n_sents), lambda i: (i, 0, 0)),
                const((dph, 3 * dph)), const((1, 3 * dph)),
                const((D, D)), const((1, D)),
            ],
            out_specs=pl.BlockSpec((nbb, n_sents, D), lambda i: (i, 0, 0)),
        ),
        compiler_params=pltpu.CompilerParams(
            dimension_semantics=("parallel",), vmem_limit_bytes=vmem_b),
    )(hv, bias_sent, att_wqkv, att_bqkv, lin_w, params["lin_b"])
    cv = cv.reshape(Bt, D)

    # --- Stage C: residual + FFN, NB sentences per step, d_ff tiled ("arbitrary" K axis) --
    vmem_c = _budget(
        ((nb, T, D), f32, 2), ((nb, D), f32, 2), ((nb, T, D), f32, 2),
        ((D, ff_tile), wdt, 2), ((1, ff_tile), f32, 2), ((ff_tile, D), wdt, 2),
        ((1, D), f32, 3), ((nb * T, D), wdt, 1), ((nb * T, D), f32, 1))
    out = pl.pallas_call(
        partial(_ffn_kernel, nb=nb, t=T, mm_dtype=wdt),
        out_shape=jax.ShapeDtypeStruct((Bt, T, D), f32),
        grid_spec=pltpu.PrefetchScalarGridSpec(
            num_scalar_prefetch=0, grid=(grid_a, n_ff),
            in_specs=[
                pl.BlockSpec((nb, T, D), lambda i, j: (i, 0, 0)),
                pl.BlockSpec((nb, D), lambda i, j: (i, 0)),
                const((1, D)), const((1, D)),
                pl.BlockSpec((D, ff_tile), lambda i, j: (0, j)),
                pl.BlockSpec((1, ff_tile), lambda i, j: (0, j)),
                pl.BlockSpec((ff_tile, D), lambda i, j: (j, 0)),
                const((1, D)),
            ],
            out_specs=pl.BlockSpec((nb, T, D), lambda i, j: (i, 0, 0)),
            scratch_shapes=[pltpu.VMEM((nb * T, D), wdt),      # cached LN'd activations
                            pltpu.VMEM((nb * T, D), jnp.float32)],  # f32 accumulator
        ),
        compiler_params=pltpu.CompilerParams(
            dimension_semantics=("parallel", "arbitrary"), vmem_limit_bytes=vmem_c),
    )(inputs, cv, params["ffn_ln_g"], params["ffn_ln_b"],
      ffn_w1, params["ffn_b1"], ffn_w2, params["ffn_b2"])
    return out


# ---------------- pure-JAX reference (mirrors the PyTorch math, eval mode) ----------------
def reference(inputs, mask_local, mask_cls, params, *, batch_size, n_sents, heads):
    Bt, T, D = inputs.shape
    dph = D // heads

    def ln(x, g, b, eps=1e-6):
        mu = x.mean(-1, keepdims=True)
        var = ((x - mu) ** 2).mean(-1, keepdims=True)
        return (x - mu) / jnp.sqrt(var + eps) * g + b

    xn = ln(inputs, params["ln1_g"][0], params["ln1_b"][0])
    scores = xn @ params["pool_wk"] + params["pool_bk"][0]           # (Bt, T, H)
    vals = xn @ params["pool_wv"] + params["pool_bv"][0]             # (Bt, T, D)
    scores = jnp.where(mask_local[:, :, None], -1e18, scores)
    attn = jax.nn.softmax(scores, axis=1)
    vals = vals.reshape(Bt, T, heads, dph)
    head_vec = jnp.sum(attn[:, :, :, None] * vals, axis=1)           # (Bt, H, dph)
    head_vec = ln(head_vec, params["ln2_g"][0], params["ln2_b"][0])
    hv = head_vec.reshape(batch_size, n_sents, heads, dph)
    hv = jnp.transpose(hv, (0, 2, 1, 3)).reshape(batch_size * heads, n_sents, dph)
    q = (hv @ params["att_wq"] + params["att_bq"][0]) / math.sqrt(dph)
    k = hv @ params["att_wk"] + params["att_bk"][0]
    v = hv @ params["att_wv"] + params["att_bv"][0]
    sc = jnp.einsum("bqd,bkd->bqk", q, k)
    mk = jnp.broadcast_to(mask_cls[:, None, :], (batch_size, heads, n_sents)
                          ).reshape(batch_size * heads, 1, n_sents)
    sc = jnp.where(mk, -1e18, sc)
    a = jax.nn.softmax(sc, axis=-1)
    ctx = jnp.einsum("bqk,bkd->bqd", a, v)
    ctx = ctx.reshape(batch_size, heads, n_sents, dph)
    ctx = jnp.transpose(ctx, (0, 2, 1, 3)).reshape(Bt, D)
    cv = ctx @ params["lin_w"] + params["lin_b"][0]
    y = inputs + cv[:, None, :]
    yn = ln(y, params["ffn_ln_g"][0], params["ffn_ln_b"][0])
    h = yn @ params["ffn_w1"] + params["ffn_b1"][0]
    h = 0.5 * h * (1.0 + jnp.tanh(math.sqrt(2.0 / math.pi) * (h + 0.044715 * h ** 3)))
    o = h @ params["ffn_w2"] + params["ffn_b2"][0]
    return o + y


if __name__ == "__main__":
    B, S, T = 2, 8, 8          # batch_size, n_sents, n_tokens per sentence
    D, H, d_ff = 32, 4, 64     # d_model, heads, d_ff
    dph = D // H
    Bt = B * S

    key = jax.random.PRNGKey(0)
    ks = jax.random.split(key, 24)
    f32 = jnp.float32
    nrm = lambda k, shape, s=0.05: (s * jax.random.normal(k, shape)).astype(f32)

    params = {
        "ln1_g": (1.0 + nrm(ks[0], (1, D), 0.1)), "ln1_b": nrm(ks[1], (1, D), 0.1),
        "pool_wk": nrm(ks[2], (D, H)), "pool_bk": nrm(ks[3], (1, H)),
        "pool_wv": nrm(ks[4], (D, D)), "pool_bv": nrm(ks[5], (1, D)),
        "ln2_g": (1.0 + nrm(ks[6], (1, dph), 0.1)), "ln2_b": nrm(ks[7], (1, dph), 0.1),
        "att_wq": nrm(ks[8], (dph, dph)), "att_bq": nrm(ks[9], (1, dph)),
        "att_wk": nrm(ks[10], (dph, dph)), "att_bk": nrm(ks[11], (1, dph)),
        "att_wv": nrm(ks[12], (dph, dph)), "att_bv": nrm(ks[13], (1, dph)),
        "lin_w": nrm(ks[14], (D, D)), "lin_b": nrm(ks[15], (1, D)),
        "ffn_ln_g": (1.0 + nrm(ks[16], (1, D), 0.1)), "ffn_ln_b": nrm(ks[17], (1, D), 0.1),
        "ffn_w1": nrm(ks[18], (D, d_ff)), "ffn_b1": nrm(ks[19], (1, d_ff)),
        "ffn_w2": nrm(ks[20], (d_ff, D)), "ffn_b2": nrm(ks[21], (1, D)),
    }

    inputs = (0.5 * jax.random.normal(ks[22], (Bt, T, D))).astype(f32)
    # mask_local: True == padded token (varied lengths, >=1 valid token per sentence)
    lengths = (3 + (jnp.arange(Bt) % (T - 2))).astype(jnp.int32)           # in [3, T]
    mask_local = jnp.arange(T)[None, :] >= lengths[:, None]                # (Bt, T) bool
    # mask_cls: True == padded sentence (last 2 sentences of second batch element padded)
    mask_cls = jnp.zeros((B, S), dtype=bool).at[1, S - 2:].set(True)

    ref = reference(inputs, mask_local, mask_cls, params,
                    batch_size=B, n_sents=S, heads=H)

    # f32 matmul path (strict correctness check)
    fn = jax.jit(partial(transformer_inter_layer, batch_size=B, n_sents=S, heads=H))
    out = jax.block_until_ready(fn(inputs, mask_local, mask_cls, params))
    assert out.shape == (Bt, T, D)
    assert jnp.allclose(out, ref, rtol=3e-3, atol=3e-3), \
        f"f32 max abs err {float(jnp.max(jnp.abs(out - ref)))}"

    # bf16 matmul path (recommended on v6e/v7x) -- loose numerical check
    # TODO(synk): training-mode dropout / out_context_vectors=True path not implemented.
    fn_bf16 = jax.jit(partial(transformer_inter_layer, batch_size=B, n_sents=S, heads=H,
                              matmul_dtype=jnp.bfloat16))
    out_bf16 = jax.block_until_ready(fn_bf16(inputs, mask_local, mask_cls, params))
    assert bool(jnp.all(jnp.isfinite(out_bf16)))
    assert float(jnp.max(jnp.abs(out_bf16 - ref))) < 0.1, \
        f"bf16 max abs err {float(jnp.max(jnp.abs(out_bf16 - ref)))}"

    print("KERNEL_OK")
</pallas_src>

<mosaic_0001>
module attributes {stable_mosaic.version = 11 : i64} {
  func.func @_ffn_kernel(%arg0: i32, %arg1: i32, %arg2: memref<8x8x32xf32, #tpu.memory_space<vmem>>, %arg3: memref<8x32xf32, #tpu.memory_space<vmem>>, %arg4: memref<1x32xf32, #tpu.memory_space<vmem>>, %arg5: memref<1x32xf32, #tpu.memory_space<vmem>>, %arg6: memref<32x64xf32, #tpu.memory_space<vmem>>, %arg7: memref<1x64xf32, #tpu.memory_space<vmem>>, %arg8: memref<64x32xf32, #tpu.memory_space<vmem>>, %arg9: memref<1x32xf32, #tpu.memory_space<vmem>>, %arg10: memref<8x8x32xf32, #tpu.memory_space<vmem>>, %arg11: memref<64x32xf32, #tpu.memory_space<vmem>>, %arg12: memref<64x32xf32, #tpu.memory_space<vmem>>) attributes {dimension_semantics = [#tpu.dimension_semantics<parallel>, #tpu.dimension_semantics<arbitrary>], iteration_bounds = array<i64: 2, 1>, scalar_prefetch = 0 : i64, scratch_operands = 2 : i64, tpu.core_type = #tpu.core_type<tc>, window_params = [{transform_indices = @transform_0, window_bounds = array<i64: 8, 8, 32>}, {transform_indices = @transform_1, window_bounds = array<i64: 8, 32>}, {pipeline_mode = #tpu.pipeline_mode<synchronous>, transform_indices = @transform_2, window_bounds = array<i64: 1, 32>}, {pipeline_mode = #tpu.pipeline_mode<synchronous>, transform_indices = @transform_3, window_bounds = array<i64: 1, 32>}, {transform_indices = @transform_4, window_bounds = array<i64: 32, 64>}, {transform_indices = @transform_5, window_bounds = array<i64: 1, 64>}, {transform_indices = @transform_6, window_bounds = array<i64: 64, 32>}, {pipeline_mode = #tpu.pipeline_mode<synchronous>, transform_indices = @transform_7, window_bounds = array<i64: 1, 32>}, {transform_indices = @transform_8, window_bounds = array<i64: 8, 8, 32>}]} {
    %c0_i32 = arith.constant 0 : i32
    %0 = arith.cmpi eq, %arg1, %c0_i32 : i32
    %1 = arith.extui %0 : i1 to i32
    %c0_i32_0 = arith.constant 0 : i32
    %2 = arith.cmpi ne, %1, %c0_i32_0 : i32
    scf.if %2 {
      %c0_19 = arith.constant 0 : index
      %c0_20 = arith.constant 0 : index
      %c0_21 = arith.constant 0 : index
      %30 = vector.load %arg2[%c0_19, %c0_20, %c0_21] : memref<8x8x32xf32, #tpu.memory_space<vmem>>, vector<8x8x32xf32>
      %c0_22 = arith.constant 0 : index
      %c0_23 = arith.constant 0 : index
      %31 = vector.load %arg3[%c0_22, %c0_23] : memref<8x32xf32, #tpu.memory_space<vmem>>, vector<8x32xf32>
      %32 = vector.shape_cast %31 : vector<8x32xf32> to vector<8x1x32xf32>
      %33 = vector.broadcast %32 : vector<8x1x32xf32> to vector<8x8x32xf32>
      %34 = arith.addf %30, %33 : vector<8x8x32xf32>
      %c0_24 = arith.constant 0 : index
      %c0_25 = arith.constant 0 : index
      %35 = vector.load %arg4[%c0_24, %c0_25] : memref<1x32xf32, #tpu.memory_space<vmem>>, vector<1x32xf32>
      %c0_26 = arith.constant 0 : index
      %c0_27 = arith.constant 0 : index
      %36 = vector.load %arg5[%c0_26, %c0_27] : memref<1x32xf32, #tpu.memory_space<vmem>>, vector<1x32xf32>
      %cst_28 = arith.constant dense<0.000000e+00> : vector<8x8xf32>
      %37 = vector.multi_reduction <add>, %34, %cst_28 [2] : vector<8x8x32xf32> to vector<8x8xf32>
      %38 = vector.shape_cast %37 : vector<8x8xf32> to vector<8x8x1xf32>
      %cst_29 = arith.constant 3.200000e+01 : f32
      %39 = vector.broadcast %cst_29 : f32 to vector<8x8x1xf32>
      %40 = arith.divf %38, %39 : vector<8x8x1xf32>
      %41 = vector.broadcast %40 : vector<8x8x1xf32> to vector<8x8x32xf32>
      %42 = arith.subf %34, %41 : vector<8x8x32xf32>
      %43 = arith.mulf %42, %42 : vector<8x8x32xf32>
      %cst_30 = arith.constant dense<0.000000e+00> : vector<8x8xf32>
      %44 = vector.multi_reduction <add>, %43, %cst_30 [2] : vector<8x8x32xf32> to vector<8x8xf32>
      %45 = vector.shape_cast %44 : vector<8x8xf32> to vector<8x8x1xf32>
      %cst_31 = arith.constant 3.200000e+01 : f32
      %46 = vector.broadcast %cst_31 : f32 to vector<8x8x1xf32>
      %47 = arith.divf %45, %46 : vector<8x8x1xf32>
      %48 = vector.broadcast %40 : vector<8x8x1xf32> to vector<8x8x32xf32>
      %49 = arith.subf %34, %48 : vector<8x8x32xf32>
      %cst_32 = arith.constant 9.99999997E-7 : f32
      %50 = vector.broadcast %cst_32 : f32 to vector<8x8x1xf32>
      %51 = arith.addf %47, %50 : vector<8x8x1xf32>
      %52 = math.rsqrt %51 : vector<8x8x1xf32>
      %53 = vector.broadcast %52 : vector<8x8x1xf32> to vector<8x8x32xf32>
      %54 = arith.mulf %49, %53 : vector<8x8x32xf32>
      %55 = vector.shape_cast %35 : vector<1x32xf32> to vector<1x1x32xf32>
      %56 = vector.broadcast %55 : vector<1x1x32xf32> to vector<8x8x32xf32>
      %57 = arith.mulf %54, %56 : vector<8x8x32xf32>
      %58 = vector.shape_cast %36 : vector<1x32xf32> to vector<1x1x32xf32>
      %59 = vector.broadcast %58 : vector<1x1x32xf32> to vector<8x8x32xf32>
      %60 = arith.addf %57, %59 : vector<8x8x32xf32>
      %61 = vector.shape_cast %60 : vector<8x8x32xf32> to vector<64x32xf32>
      %c0_33 = arith.constant 0 : index
      %c0_34 = arith.constant 0 : index
      %62 = vector.load %arg11[%c0_33, %c0_34] : memref<64x32xf32, #tpu.memory_space<vmem>>, vector<64x32xf32>
      tpu.vector_store %arg11[%c0_33, %c0_34], %61 {strides = array<i32>} : memref<64x32xf32, #tpu.memory_space<vmem>>, vector<64x32xf32>,
      %cst_35 = arith.constant 0.000000e+00 : f32
      %63 = vector.broadcast %cst_35 : f32 to vector<64x32xf32>
      %c0_36 = arith.constant 0 : index
      %c0_37 = arith.constant 0 : index
      %64 = vector.load %arg12[%c0_36, %c0_37] : memref<64x32xf32, #tpu.memory_space<vmem>>, vector<64x32xf32>
      tpu.vector_store %arg12[%c0_36, %c0_37], %63 {strides = array<i32>} : memref<64x32xf32, #tpu.memory_space<vmem>>, vector<64x32xf32>,
    } else {
    }
    %c0 = arith.constant 0 : index
    %c0_1 = arith.constant 0 : index
    %3 = vector.load %arg11[%c0, %c0_1] : memref<64x32xf32, #tpu.memory_space<vmem>>, vector<64x32xf32>
    %c0_2 = arith.constant 0 : index
    %c0_3 = arith.constant 0 : index
    %4 = vector.load %arg6[%c0_2, %c0_3] : memref<32x64xf32, #tpu.memory_space<vmem>>, vector<32x64xf32>
    %cst = arith.constant dense<0.000000e+00> : vector<64x64xf32>
    %5 = tpu.matmul %3, %4, %cst {dimension_numbers = #tpu.dot_dimension_numbers<[1], [0], [0], [1], [0, 0, 1, 1], [], []>} : vector<64x32xf32>, vector<32x64xf32>, vector<64x64xf32> -> vector<64x64xf32>
    %c0_4 = arith.constant 0 : index
    %c0_5 = arith.constant 0 : index
    %6 = vector.load %arg7[%c0_4, %c0_5] : memref<1x64xf32, #tpu.memory_space<vmem>>, vector<1x64xf32>
    %7 = vector.broadcast %6 : vector<1x64xf32> to vector<64x64xf32>
    %8 = arith.addf %5, %7 : vector<64x64xf32>
    %cst_6 = arith.constant 5.000000e-01 : f32
    %9 = vector.broadcast %cst_6 : f32 to vector<64x64xf32>
    %10 = arith.mulf %9, %8 : vector<64x64xf32>
    %11 = arith.mulf %8, %8 : vector<64x64xf32>
    %12 = arith.mulf %8, %11 : vector<64x64xf32>
    %cst_7 = arith.constant 4.471500e-02 : f32
    %13 = vector.broadcast %cst_7 : f32 to vector<64x64xf32>
    %14 = arith.mulf %13, %12 : vector<64x64xf32>
    %15 = arith.addf %8, %14 : vector<64x64xf32>
    %cst_8 = arith.constant 0.797884583 : f32
    %16 = vector.broadcast %cst_8 : f32 to vector<64x64xf32>
    %17 = arith.mulf %16, %15 : vector<64x64xf32>
    %18 = math.tanh %17 : vector<64x64xf32>
    %cst_9 = arith.constant 1.000000e+00 : f32
    %19 = vector.broadcast %cst_9 : f32 to vector<64x64xf32>
    %20 = arith.addf %19, %18 : vector<64x64xf32>
    %21 = arith.mulf %10, %20 : vector<64x64xf32>
    %c0_10 = arith.constant 0 : index
    %c0_11 = arith.constant 0 : index
    %22 = vector.load %arg12[%c0_10, %c0_11] : memref<64x32xf32, #tpu.memory_space<vmem>>, vector<64x32xf32>
    %c0_12 = arith.constant 0 : index
    %c0_13 = arith.constant 0 : index
    %23 = vector.load %arg8[%c0_12, %c0_13] : memref<64x32xf32, #tpu.memory_space<vmem>>, vector<64x32xf32>
    %cst_14 = arith.constant dense<0.000000e+00> : vector<64x32xf32>
    %24 = tpu.matmul %21, %23, %cst_14 {dimension_numbers = #tpu.dot_dimension_numbers<[1], [0], [0], [1], [0, 0, 1, 1], [], []>} : vector<64x64xf32>, vector<64x32xf32>, vector<64x32xf32> -> vector<64x32xf32>
    %25 = arith.addf %22, %24 : vector<64x32xf32>
    %c0_15 = arith.constant 0 : index
    %c0_16 = arith.constant 0 : index
    %26 = vector.load %arg12[%c0_15, %c0_16] : memref<64x32xf32, #tpu.memory_space<vmem>>, vector<64x32xf32>
    tpu.vector_store %arg12[%c0_15, %c0_16], %25 {strides = array<i32>} : memref<64x32xf32, #tpu.memory_space<vmem>>, vector<64x32xf32>,
    %c0_i32_17 = arith.constant 0 : i32
    %27 = arith.cmpi eq, %arg1, %c0_i32_17 : i32
    %28 = arith.extui %27 : i1 to i32
    %c0_i32_18 = arith.constant 0 : i32
    %29 = arith.cmpi ne, %28, %c0_i32_18 : i32
    scf.if %29 {
      %c0_19 = arith.constant 0 : index
      %c0_20 = arith.constant 0 : index
      %c0_21 = arith.constant 0 : index
      %30 = vector.load %arg2[%c0_19, %c0_20, %c0_21] : memref<8x8x32xf32, #tpu.memory_space<vmem>>, vector<8x8x32xf32>
      %c0_22 = arith.constant 0 : index
      %c0_23 = arith.constant 0 : index
      %31 = vector.load %arg3[%c0_22, %c0_23] : memref<8x32xf32, #tpu.memory_space<vmem>>, vector<8x32xf32>
      %32 = vector.shape_cast %31 : vector<8x32xf32> to vector<8x1x32xf32>
      %33 = vector.broadcast %32 : vector<8x1x32xf32> to vector<8x8x32xf32>
      %34 = arith.addf %30, %33 : vector<8x8x32xf32>
      %c0_24 = arith.constant 0 : index
      %c0_25 = arith.constant 0 : index
      %35 = vector.load %arg12[%c0_24, %c0_25] : memref<64x32xf32, #tpu.memory_space<vmem>>, vector<64x32xf32>
      %c0_26 = arith.constant 0 : index
      %c0_27 = arith.constant 0 : index
      %36 = vector.load %arg9[%c0_26, %c0_27] : memref<1x32xf32, #tpu.memory_space<vmem>>, vector<1x32xf32>
      %37 = vector.broadcast %36 : vector<1x32xf32> to vector<64x32xf32>
      %38 = arith.addf %35, %37 : vector<64x32xf32>
      %39 = vector.shape_cast %38 : vector<64x32xf32> to vector<8x8x32xf32>
      %40 = arith.addf %39, %34 : vector<8x8x32xf32>
      %c0_28 = arith.constant 0 : index
      %c0_29 = arith.constant 0 : index
      %c0_30 = arith.constant 0 : index
      %41 = vector.load %arg10[%c0_28, %c0_29, %c0_30] : memref<8x8x32xf32, #tpu.memory_space<vmem>>, vector<8x8x32xf32>
      tpu.vector_store %arg10[%c0_28, %c0_29, %c0_30], %40 {strides = array<i32>} : memref<8x8x32xf32, #tpu.memory_space<vmem>>, vector<8x8x32xf32>,
    } else {
    }
    return
  }
  func.func @transform_0(%arg0: i32, %arg1: i32) -> (i32, i32, i32) {
    %c0_i32 = arith.constant 0 : i32
    %c0_i32_0 = arith.constant 0 : i32
    %c0_i32_1 = arith.constant 0 : i32
    return %arg0, %c0_i32, %c0_i32_0 : i32, i32, i32
  }
  func.func @transform_1(%arg0: i32, %arg1: i32) -> (i32, i32) {
    %c0_i32 = arith.constant 0 : i32
    %c0_i32_0 = arith.constant 0 : i32
    return %arg0, %c0_i32 : i32, i32
  }
  func.func @transform_2(%arg0: i32, %arg1: i32) -> (i32, i32) {
    %c0_i32 = arith.constant 0 : i32
    %c0_i32_0 = arith.constant 0 : i32
    %c0_i32_1 = arith.constant 0 : i32
    return %c0_i32, %c0_i32_0 : i32, i32
  }
  func.func @transform_3(%arg0: i32, %arg1: i32) -> (i32, i32) {
    %c0_i32 = arith.constant 0 : i32
    %c0_i32_0 = arith.constant 0 : i32
    %c0_i32_1 = arith.constant 0 : i32
    return %c0_i32, %c0_i32_0 : i32, i32
  }
  func.func @transform_4(%arg0: i32, %arg1: i32) -> (i32, i32) {
    %c0_i32 = arith.constant 0 : i32
    %c0_i32_0 = arith.constant 0 : i32
    return %c0_i32, %arg1 : i32, i32
  }
  func.func @transform_5(%arg0: i32, %arg1: i32) -> (i32, i32) {
    %c0_i32 = arith.constant 0 : i32
    %c0_i32_0 = arith.constant 0 : i32
    return %c0_i32, %arg1 : i32, i32
  }
  func.func @transform_6(%arg0: i32, %arg1: i32) -> (i32, i32) {
    %c0_i32 = arith.constant 0 : i32
    %c0_i32_0 = arith.constant 0 : i32
    return %arg1, %c0_i32 : i32, i32
  }
  func.func @transform_7(%arg0: i32, %arg1: i32) -> (i32, i32) {
    %c0_i32 = arith.constant 0 : i32
    %c0_i32_0 = arith.constant 0 : i32
    %c0_i32_1 = arith.constant 0 : i32
    return %c0_i32, %c0_i32_0 : i32, i32
  }
  func.func @transform_8(%arg0: i32, %arg1: i32) -> (i32, i32, i32) {
    %c0_i32 = arith.constant 0 : i32
    %c0_i32_0 = arith.constant 0 : i32
    %c0_i32_1 = arith.constant 0 : i32
    return %arg0, %c0_i32, %c0_i32_0 : i32, i32, i32
  }
}

module attributes {stable_mosaic.version = 11 : i64} {
  func.func @_pooling_kernel(%arg0: i32, %arg1: memref<8x8x32xf32, #tpu.memory_space<vmem>>, %arg2: memref<8x8xf32, #tpu.memory_space<vmem>>, %arg3: memref<1x32xf32, #tpu.memory_space<vmem>>, %arg4: memref<1x32xf32, #tpu.memory_space<vmem>>, %arg5: memref<32x128xf32, #tpu.memory_space<vmem>>, %arg6: memref<1x128xf32, #tpu.memory_space<vmem>>, %arg7: memref<1x8xf32, #tpu.memory_space<vmem>>, %arg8: memref<1x8xf32, #tpu.memory_space<vmem>>, %arg9: memref<8x32xf32, #tpu.memory_space<vmem>>) attributes {dimension_semantics = [#tpu.dimension_semantics<parallel>], iteration_bounds = array<i64: 2>, scalar_prefetch = 0 : i64, scratch_operands = 0 : i64, tpu.core_type = #tpu.core_type<tc>, window_params = [{transform_indices = @transform_0, window_bounds = array<i64: 8, 8, 32>}, {transform_indices = @transform_1, window_bounds = array<i64: 8, 8>}, {pipeline_mode = #tpu.pipeline_mode<synchronous>, transform_indices = @transform_2, window_bounds = array<i64: 1, 32>}, {pipeline_mode = #tpu.pipeline_mode<synchronous>, transform_indices = @transform_3, window_bounds = array<i64: 1, 32>}, {pipeline_mode = #tpu.pipeline_mode<synchronous>, transform_indices = @transform_4, window_bounds = array<i64: 32, 128>}, {pipeline_mode = #tpu.pipeline_mode<synchronous>, transform_indices = @transform_5, window_bounds = array<i64: 1, 128>}, {pipeline_mode = #tpu.pipeline_mode<synchronous>, transform_indices = @transform_6, window_bounds = array<i64: 1, 8>}, {pipeline_mode = #tpu.pipeline_mode<synchronous>, transform_indices = @transform_7, window_bounds = array<i64: 1, 8>}, {transform_indices = @transform_8, window_bounds = array<i64: 8, 32>}]} {
    %c0 = arith.constant 0 : index
    %c0_0 = arith.constant 0 : index
    %c0_1 = arith.constant 0 : index
    %0 = vector.load %arg1[%c0, %c0_0, %c0_1] : memref<8x8x32xf32, #tpu.memory_space<vmem>>, vector<8x8x32xf32>
    %c0_2 = arith.constant 0 : index
    %c0_3 = arith.constant 0 : index
    %1 = vector.load %arg3[%c0_2, %c0_3] : memref<1x32xf32, #tpu.memory_space<vmem>>, vector<1x32xf32>
    %c0_4 = arith.constant 0 : index
    %c0_5 = arith.constant 0 : index
    %2 = vector.load %arg4[%c0_4, %c0_5] : memref<1x32xf32, #tpu.memory_space<vmem>>, vector<1x32xf32>
    %cst = arith.constant dense<0.000000e+00> : vector<8x8xf32>
    %3 = vector.multi_reduction <add>, %0, %cst [2] : vector<8x8x32xf32> to vector<8x8xf32>
    %4 = vector.shape_cast %3 : vector<8x8xf32> to vector<8x8x1xf32>
    %cst_6 = arith.constant 3.200000e+01 : f32
    %5 = vector.broadcast %cst_6 : f32 to vector<8x8x1xf32>
    %6 = arith.divf %4, %5 : vector<8x8x1xf32>
    %7 = vector.broadcast %6 : vector<8x8x1xf32> to vector<8x8x32xf32>
    %8 = arith.subf %0, %7 : vector<8x8x32xf32>
    %9 = arith.mulf %8, %8 : vector<8x8x32xf32>
    %cst_7 = arith.constant dense<0.000000e+00> : vector<8x8xf32>
    %10 = vector.multi_reduction <add>, %9, %cst_7 [2] : vector<8x8x32xf32> to vector<8x8xf32>
    %11 = vector.shape_cast %10 : vector<8x8xf32> to vector<8x8x1xf32>
    %cst_8 = arith.constant 3.200000e+01 : f32
    %12 = vector.broadcast %cst_8 : f32 to vector<8x8x1xf32>
    %13 = arith.divf %11, %12 : vector<8x8x1xf32>
    %14 = vector.broadcast %6 : vector<8x8x1xf32> to vector<8x8x32xf32>
    %15 = arith.subf %0, %14 : vector<8x8x32xf32>
    %cst_9 = arith.constant 9.99999997E-7 : f32
    %16 = vector.broadcast %cst_9 : f32 to vector<8x8x1xf32>
    %17 = arith.addf %13, %16 : vector<8x8x1xf32>
    %18 = math.rsqrt %17 : vector<8x8x1xf32>
    %19 = vector.broadcast %18 : vector<8x8x1xf32> to vector<8x8x32xf32>
    %20 = arith.mulf %15, %19 : vector<8x8x32xf32>
    %21 = vector.shape_cast %1 : vector<1x32xf32> to vector<1x1x32xf32>
    %22 = vector.broadcast %21 : vector<1x1x32xf32> to vector<8x8x32xf32>
    %23 = arith.mulf %20, %22 : vector<8x8x32xf32>
    %24 = vector.shape_cast %2 : vector<1x32xf32> to vector<1x1x32xf32>
    %25 = vector.broadcast %24 : vector<1x1x32xf32> to vector<8x8x32xf32>
    %26 = arith.addf %23, %25 : vector<8x8x32xf32>
    %27 = vector.shape_cast %26 : vector<8x8x32xf32> to vector<64x32xf32>
    %c0_10 = arith.constant 0 : index
    %c0_11 = arith.constant 0 : index
    %28 = vector.load %arg5[%c0_10, %c0_11] : memref<32x128xf32, #tpu.memory_space<vmem>>, vector<32x128xf32>
    %cst_12 = arith.constant dense<0.000000e+00> : vector<64x128xf32>
    %29 = tpu.matmul %27, %28, %cst_12 {dimension_numbers = #tpu.dot_dimension_numbers<[1], [0], [0], [1], [0, 0, 1, 1], [], []>} : vector<64x32xf32>, vector<32x128xf32>, vector<64x128xf32> -> vector<64x128xf32>
    %c0_13 = arith.constant 0 : index
    %c0_14 = arith.constant 0 : index
    %30 = vector.load %arg6[%c0_13, %c0_14] : memref<1x128xf32, #tpu.memory_space<vmem>>, vector<1x128xf32>
    %31 = vector.broadcast %30 : vector<1x128xf32> to vector<64x128xf32>
    %32 = arith.addf %29, %31 : vector<64x128xf32>
    %33 = vector.extract_strided_slice %32 {offsets = [0, 0], sizes = [64, 32], strides = [1, 1]} : vector<64x128xf32> to vector<64x32xf32>
    %34 = vector.shape_cast %33 : vector<64x32xf32> to vector<8x8x4x8xf32>
    %35 = vector.extract_strided_slice %32 {offsets = [0, 32], sizes = [64, 4], strides = [1, 1]} : vector<64x128xf32> to vector<64x4xf32>
    %36 = vector.shape_cast %35 : vector<64x4xf32> to vector<8x8x4xf32>
    %c0_15 = arith.constant 0 : index
    %c0_16 = arith.constant 0 : index
    %37 = vector.load %arg2[%c0_15, %c0_16] : memref<8x8xf32, #tpu.memory_space<vmem>>, vector<8x8xf32>
    %38 = vector.shape_cast %37 : vector<8x8xf32> to vector<8x8x1xf32>
    %39 = vector.broadcast %38 : vector<8x8x1xf32> to vector<8x8x4xf32>
    %40 = arith.addf %36, %39 : vector<8x8x4xf32>
    %cst_17 = arith.constant dense<0xFF800000> : vector<8x4xf32>
    %41 = vector.multi_reduction <maximumf>, %40, %cst_17 [1] : vector<8x8x4xf32> to vector<8x4xf32>
    %42 = vector.shape_cast %41 : vector<8x4xf32> to vector<8x1x4xf32>
    %43 = vector.broadcast %42 : vector<8x1x4xf32> to vector<8x8x4xf32>
    %44 = arith.subf %40, %43 : vector<8x8x4xf32>
    %45 = math.exp %44 : vector<8x8x4xf32>
    %cst_18 = arith.constant dense<0.000000e+00> : vector<8x4xf32>
    %46 = vector.multi_reduction <add>, %45, %cst_18 [1] : vector<8x8x4xf32> to vector<8x4xf32>
    %47 = vector.shape_cast %46 : vector<8x4xf32> to vector<8x1x4xf32>
    %48 = tpu.reciprocal %47 {approx = true} : vector<8x1x4xf32> -> vector<8x1x4xf32>
    %49 = vector.broadcast %48 : vector<8x1x4xf32> to vector<8x8x4xf32>
    %50 = arith.mulf %45, %49 : vector<8x8x4xf32>
    %51 = vector.shape_cast %50 : vector<8x8x4xf32> to vector<8x8x4x1xf32>
    %52 = vector.broadcast %51 : vector<8x8x4x1xf32> to vector<8x8x4x8xf32>
    %53 = arith.mulf %52, %34 : vector<8x8x4x8xf32>
    %cst_19 = arith.constant dense<0.000000e+00> : vector<8x4x8xf32>
    %54 = vector.multi_reduction <add>, %53, %cst_19 [1] : vector<8x8x4x8xf32> to vector<8x4x8xf32>
    %c0_20 = arith.constant 0 : index
    %c0_21 = arith.constant 0 : index
    %55 = vector.load %arg7[%c0_20, %c0_21] : memref<1x8xf32, #tpu.memory_space<vmem>>, vector<1x8xf32>
    %c0_22 = arith.constant 0 : index
    %c0_23 = arith.constant 0 : index
    %56 = vector.load %arg8[%c0_22, %c0_23] : memref<1x8xf32, #tpu.memory_space<vmem>>, vector<1x8xf32>
    %cst_24 = arith.constant dense<0.000000e+00> : vector<8x4xf32>
    %57 = vector.multi_reduction <add>, %54, %cst_24 [2] : vector<8x4x8xf32> to vector<8x4xf32>
    %58 = vector.shape_cast %57 : vector<8x4xf32> to vector<8x4x1xf32>
    %cst_25 = arith.constant 8.000000e+00 : f32
    %59 = vector.broadcast %cst_25 : f32 to vector<8x4x1xf32>
    %60 = arith.divf %58, %59 : vector<8x4x1xf32>
    %61 = vector.broadcast %60 : vector<8x4x1xf32> to vector<8x4x8xf32>
    %62 = arith.subf %54, %61 : vector<8x4x8xf32>
    %63 = arith.mulf %62, %62 : vector<8x4x8xf32>
    %cst_26 = arith.constant dense<0.000000e+00> : vector<8x4xf32>
    %64 = vector.multi_reduction <add>, %63, %cst_26 [2] : vector<8x4x8xf32> to vector<8x4xf32>
    %65 = vector.shape_cast %64 : vector<8x4xf32> to vector<8x4x1xf32>
    %cst_27 = arith.constant 8.000000e+00 : f32
    %66 = vector.broadcast %cst_27 : f32 to vector<8x4x1xf32>
    %67 = arith.divf %65, %66 : vector<8x4x1xf32>
    %68 = vector.broadcast %60 : vector<8x4x1xf32> to vector<8x4x8xf32>
    %69 = arith.subf %54, %68 : vector<8x4x8xf32>
    %cst_28 = arith.constant 9.99999997E-7 : f32
    %70 = vector.broadcast %cst_28 : f32 to vector<8x4x1xf32>
    %71 = arith.addf %67, %70 : vector<8x4x1xf32>
    %72 = math.rsqrt %71 : vector<8x4x1xf32>
    %73 = vector.broadcast %72 : vector<8x4x1xf32> to vector<8x4x8xf32>
    %74 = arith.mulf %69, %73 : vector<8x4x8xf32>
    %75 = vector.shape_cast %55 : vector<1x8xf32> to vector<1x1x8xf32>
    %76 = vector.broadcast %75 : vector<1x1x8xf32> to vector<8x4x8xf32>
    %77 = arith.mulf %74, %76 : vector<8x4x8xf32>
    %78 = vector.shape_cast %56 : vector<1x8xf32> to vector<1x1x8xf32>
    %79 = vector.broadcast %78 : vector<1x1x8xf32> to vector<8x4x8xf32>
    %80 = arith.addf %77, %79 : vector<8x4x8xf32>
    %81 = vector.shape_cast %80 : vector<8x4x8xf32> to vector<8x32xf32>
    %c0_29 = arith.constant 0 : index
    %c0_30 = arith.constant 0 : index
    %82 = vector.load %arg9[%c0_29, %c0_30] : memref<8x32xf32, #tpu.memory_space<vmem>>, vector<8x32xf32>
    tpu.vector_store %arg9[%c0_29, %c0_30], %81 {strides = array<i32>} : memref<8x32xf32, #tpu.memory_space<vmem>>, vector<8x32xf32>,
    return
  }
  func.func @transform_0(%arg0: i32) -> (i32, i32, i32) {
    %c0_i32 = arith.constant 0 : i32
    %c0_i32_0 = arith.constant 0 : i32
    %c0_i32_1 = arith.constant 0 : i32
    return %arg0, %c0_i32, %c0_i32_0 : i32, i32, i32
  }
  func.func @transform_1(%arg0: i32) -> (i32, i32) {
    %c0_i32 = arith.constant 0 : i32
    %c0_i32_0 = arith.constant 0 : i32
    return %arg0, %c0_i32 : i32, i32
  }
  func.func @transform_2(%arg0: i32) -> (i32, i32) {
    %c0_i32 = arith.constant 0 : i32
    %c0_i32_0 = arith.constant 0 : i32
    %c0_i32_1 = arith.constant 0 : i32
    return %c0_i32, %c0_i32_0 : i32, i32
  }
  func.func @transform_3(%arg0: i32) -> (i32, i32) {
    %c0_i32 = arith.constant 0 : i32
    %c0_i32_0 = arith.constant 0 : i32
    %c0_i32_1 = arith.constant 0 : i32
    return %c0_i32, %c0_i32_0 : i32, i32
  }
  func.func @transform_4(%arg0: i32) -> (i32, i32) {
    %c0_i32 = arith.constant 0 : i32
    %c0_i32_0 = arith.constant 0 : i32
    %c0_i32_1 = arith.constant 0 : i32
    return %c0_i32, %c0_i32_0 : i32, i32
  }
  func.func @transform_5(%arg0: i32) -> (i32, i32) {
    %c0_i32 = arith.constant 0 : i32
    %c0_i32_0 = arith.constant 0 : i32
    %c0_i32_1 = arith.constant 0 : i32
    return %c0_i32, %c0_i32_0 : i32, i32
  }
  func.func @transform_6(%arg0: i32) -> (i32, i32) {
    %c0_i32 = arith.constant 0 : i32
    %c0_i32_0 = arith.constant 0 : i32
    %c0_i32_1 = arith.constant 0 : i32
    return %c0_i32, %c0_i32_0 : i32, i32
  }
  func.func @transform_7(%arg0: i32) -> (i32, i32) {
    %c0_i32 = arith.constant 0 : i32
    %c0_i32_0 = arith.constant 0 : i32
    %c0_i32_1 = arith.constant 0 : i32
    return %c0_i32, %c0_i32_0 : i32, i32
  }
  func.func @transform_8(%arg0: i32) -> (i32, i32) {
    %c0_i32 = arith.constant 0 : i32
    %c0_i32_0 = arith.constant 0 : i32
    return %arg0, %c0_i32 : i32, i32
  }
}

module attributes {stable_mosaic.version = 11 : i64} {
  func.func @_inter_attn_kernel(%arg0: i32, %arg1: memref<1x8x32xf32, #tpu.memory_space<vmem>>, %arg2: memref<1x1x8xf32, #tpu.memory_space<vmem>>, %arg3: memref<8x24xf32, #tpu.memory_space<vmem>>, %arg4: memref<1x24xf32, #tpu.memory_space<vmem>>, %arg5: memref<32x32xf32, #tpu.memory_space<vmem>>, %arg6: memref<1x32xf32, #tpu.memory_space<vmem>>, %arg7: memref<1x8x32xf32, #tpu.memory_space<vmem>>) attributes {dimension_semantics = [#tpu.dimension_semantics<parallel>], iteration_bounds = array<i64: 2>, scalar_prefetch = 0 : i64, scratch_operands = 0 : i64, tpu.core_type = #tpu.core_type<tc>, window_params = [{transform_indices = @transform_0, window_bounds = array<i64: 1, 8, 32>}, {transform_indices = @transform_1, window_bounds = array<i64: 1, 1, 8>}, {pipeline_mode = #tpu.pipeline_mode<synchronous>, transform_indices = @transform_2, window_bounds = array<i64: 8, 24>}, {pipeline_mode = #tpu.pipeline_mode<synchronous>, transform_indices = @transform_3, window_bounds = array<i64: 1, 24>}, {pipeline_mode = #tpu.pipeline_mode<synchronous>, transform_indices = @transform_4, window_bounds = array<i64: 32, 32>}, {pipeline_mode = #tpu.pipeline_mode<synchronous>, transform_indices = @transform_5, window_bounds = array<i64: 1, 32>}, {transform_indices = @transform_6, window_bounds = array<i64: 1, 8, 32>}]} {
    %c0 = arith.constant 0 : index
    %c0_0 = arith.constant 0 : index
    %c0_1 = arith.constant 0 : index
    %0 = vector.load %arg1[%c0, %c0_0, %c0_1] : memref<1x8x32xf32, #tpu.memory_space<vmem>>, vector<1x8x32xf32>
    %1 = vector.shape_cast %0 : vector<1x8x32xf32> to vector<1x8x4x8xf32>
    %2 = tpu.transpose %1, [0, 2, 1, 3] : vector<1x8x4x8xf32> -> vector<1x4x8x8xf32>
    %3 = vector.shape_cast %2 : vector<1x4x8x8xf32> to vector<32x8xf32>
    %c0_2 = arith.constant 0 : index
    %c0_3 = arith.constant 0 : index
    %4 = vector.load %arg3[%c0_2, %c0_3] : memref<8x24xf32, #tpu.memory_space<vmem>>, vector<8x24xf32>
    %cst = arith.constant dense<0.000000e+00> : vector<32x24xf32>
    %5 = tpu.matmul %3, %4, %cst {dimension_numbers = #tpu.dot_dimension_numbers<[1], [0], [0], [1], [0, 0, 1, 1], [], []>} : vector<32x8xf32>, vector<8x24xf32>, vector<32x24xf32> -> vector<32x24xf32>
    %c0_4 = arith.constant 0 : index
    %c0_5 = arith.constant 0 : index
    %6 = vector.load %arg4[%c0_4, %c0_5] : memref<1x24xf32, #tpu.memory_space<vmem>>, vector<1x24xf32>
    %7 = vector.broadcast %6 : vector<1x24xf32> to vector<32x24xf32>
    %8 = arith.addf %5, %7 : vector<32x24xf32>
    %9 = vector.shape_cast %8 : vector<32x24xf32> to vector<4x8x24xf32>
    %10 = vector.extract_strided_slice %9 {offsets = [0, 0, 0], sizes = [4, 8, 8], strides = [1, 1, 1]} : vector<4x8x24xf32> to vector<4x8x8xf32>
    %cst_6 = arith.constant 0.353553385 : f32
    %11 = vector.broadcast %cst_6 : f32 to vector<4x8x8xf32>
    %12 = arith.mulf %10, %11 : vector<4x8x8xf32>
    %13 = vector.extract_strided_slice %9 {offsets = [0, 0, 8], sizes = [4, 8, 8], strides = [1, 1, 1]} : vector<4x8x24xf32> to vector<4x8x8xf32>
    %14 = vector.extract_strided_slice %9 {offsets = [0, 0, 16], sizes = [4, 8, 8], strides = [1, 1, 1]} : vector<4x8x24xf32> to vector<4x8x8xf32>
    "tpu.trace_start"() <{level = 10 : i32, message = "bqd,bkd->bqk"}> : () -> ()
    %cst_7 = arith.constant dense<0.000000e+00> : vector<4x8x8xf32>
    %15 = tpu.matmul %12, %13, %cst_7 {dimension_numbers = #tpu.dot_dimension_numbers<[2], [2], [1], [1], [0, 0, 0, 1, 1, 1], [0], [0]>} : vector<4x8x8xf32>, vector<4x8x8xf32>, vector<4x8x8xf32> -> vector<4x8x8xf32>
    "tpu.trace_stop"() : () -> ()
    %16 = vector.shape_cast %15 : vector<4x8x8xf32> to vector<1x4x8x8xf32>
    %c0_8 = arith.constant 0 : index
    %c0_9 = arith.constant 0 : index
    %c0_10 = arith.constant 0 : index
    %17 = vector.load %arg2[%c0_8, %c0_9, %c0_10] : memref<1x1x8xf32, #tpu.memory_space<vmem>>, vector<1x1x8xf32>
    %18 = vector.shape_cast %17 : vector<1x1x8xf32> to vector<1x1x1x8xf32>
    %19 = vector.broadcast %18 : vector<1x1x1x8xf32> to vector<1x4x8x8xf32>
    %20 = arith.addf %16, %19 : vector<1x4x8x8xf32>
    %cst_11 = arith.constant dense<0xFF800000> : vector<1x4x8xf32>
    %21 = vector.multi_reduction <maximumf>, %20, %cst_11 [3] : vector<1x4x8x8xf32> to vector<1x4x8xf32>
    %22 = vector.shape_cast %21 : vector<1x4x8xf32> to vector<1x4x8x1xf32>
    %23 = vector.broadcast %22 : vector<1x4x8x1xf32> to vector<1x4x8x8xf32>
    %24 = arith.subf %20, %23 : vector<1x4x8x8xf32>
    %25 = math.exp %24 : vector<1x4x8x8xf32>
    %cst_12 = arith.constant dense<0.000000e+00> : vector<1x4x8xf32>
    %26 = vector.multi_reduction <add>, %25, %cst_12 [3] : vector<1x4x8x8xf32> to vector<1x4x8xf32>
    %27 = vector.shape_cast %26 : vector<1x4x8xf32> to vector<1x4x8x1xf32>
    %28 = tpu.reciprocal %27 {approx = true} : vector<1x4x8x1xf32> -> vector<1x4x8x1xf32>
    %29 = vector.broadcast %28 : vector<1x4x8x1xf32> to vector<1x4x8x8xf32>
    %30 = arith.mulf %25, %29 : vector<1x4x8x8xf32>
    %31 = vector.shape_cast %30 : vector<1x4x8x8xf32> to vector<4x8x8xf32>
    "tpu.trace_start"() <{level = 10 : i32, message = "bqk,bkd->bqd"}> : () -> ()
    %cst_13 = arith.constant dense<0.000000e+00> : vector<4x8x8xf32>
    %32 = tpu.matmul %31, %14, %cst_13 {dimension_numbers = #tpu.dot_dimension_numbers<[2], [1], [1], [2], [0, 0, 0, 1, 1, 2], [0], [0]>} : vector<4x8x8xf32>, vector<4x8x8xf32>, vector<4x8x8xf32> -> vector<4x8x8xf32>
    "tpu.trace_stop"() : () -> ()
    %33 = vector.shape_cast %32 : vector<4x8x8xf32> to vector<1x4x8x8xf32>
    %34 = tpu.transpose %33, [0, 2, 1, 3] : vector<1x4x8x8xf32> -> vector<1x8x4x8xf32>
    %35 = vector.shape_cast %34 : vector<1x8x4x8xf32> to vector<8x32xf32>
    %c0_14 = arith.constant 0 : index
    %c0_15 = arith.constant 0 : index
    %36 = vector.load %arg5[%c0_14, %c0_15] : memref<32x32xf32, #tpu.memory_space<vmem>>, vector<32x32xf32>
    %cst_16 = arith.constant dense<0.000000e+00> : vector<8x32xf32>
    %37 = tpu.matmul %35, %36, %cst_16 {dimension_numbers = #tpu.dot_dimension_numbers<[1], [0], [0], [1], [0, 0, 1, 1], [], []>} : vector<8x32xf32>, vector<32x32xf32>, vector<8x32xf32> -> vector<8x32xf32>
    %c0_17 = arith.constant 0 : index
    %c0_18 = arith.constant 0 : index
    %38 = vector.load %arg6[%c0_17, %c0_18] : memref<1x32xf32, #tpu.memory_space<vmem>>, vector<1x32xf32>
    %39 = vector.broadcast %38 : vector<1x32xf32> to vector<8x32xf32>
    %40 = arith.addf %37, %39 : vector<8x32xf32>
    %41 = vector.shape_cast %40 : vector<8x32xf32> to vector<1x8x32xf32>
    %c0_19 = arith.constant 0 : index
    %c0_20 = arith.constant 0 : index
    %c0_21 = arith.constant 0 : index
    %42 = vector.load %arg7[%c0_19, %c0_20, %c0_21] : memref<1x8x32xf32, #tpu.memory_space<vmem>>, vector<1x8x32xf32>
    tpu.vector_store %arg7[%c0_19, %c0_20, %c0_21], %41 {strides = array<i32>} : memref<1x8x32xf32, #tpu.memory_space<vmem>>, vector<1x8x32xf32>,
    return
  }
  func.func @transform_0(%arg0: i32) -> (i32, i32, i32) {
    %c0_i32 = arith.constant 0 : i32
    %c0_i32_0 = arith.constant 0 : i32
    %c0_i32_1 = arith.constant 0 : i32
    return %arg0, %c0_i32, %c0_i32_0 : i32, i32, i32
  }
  func.func @transform_1(%arg0: i32) -> (i32, i32, i32) {
    %c0_i32 = arith.constant 0 : i32
    %c0_i32_0 = arith.constant 0 : i32
    %c0_i32_1 = arith.constant 0 : i32
    return %arg0, %c0_i32, %c0_i32_0 : i32, i32, i32
  }
  func.func @transform_2(%arg0: i32) -> (i32, i32) {
    %c0_i32 = arith.constant 0 : i32
    %c0_i32_0 = arith.constant 0 : i32
    %c0_i32_1 = arith.constant 0 : i32
    return %c0_i32, %c0_i32_0 : i32, i32
  }
  func.func @transform_3(%arg0: i32) -> (i32, i32) {
    %c0_i32 = arith.constant 0 : i32
    %c0_i32_0 = arith.constant 0 : i32
    %c0_i32_1 = arith.constant 0 : i32
    return %c0_i32, %c0_i32_0 : i32, i32
  }
  func.func @transform_4(%arg0: i32) -> (i32, i32) {
    %c0_i32 = arith.constant 0 : i32
    %c0_i32_0 = arith.constant 0 : i32
    %c0_i32_1 = arith.constant 0 : i32
    return %c0_i32, %c0_i32_0 : i32, i32
  }
  func.func @transform_5(%arg0: i32) -> (i32, i32) {
    %c0_i32 = arith.constant 0 : i32
    %c0_i32_0 = arith.constant 0 : i32
    %c0_i32_1 = arith.constant 0 : i32
    return %c0_i32, %c0_i32_0 : i32, i32
  }
  func.func @transform_6(%arg0: i32) -> (i32, i32, i32) {
    %c0_i32 = arith.constant 0 : i32
    %c0_i32_0 = arith.constant 0 : i32
    %c0_i32_1 = arith.constant 0 : i32
    return %arg0, %c0_i32, %c0_i32_0 : i32, i32, i32
  }
}

</mosaic_0001>

<bundles_post_ra>
// kernel: transformer_inter_layer.5
= control target key start
LH: loop header
LB: loop body
LE: loop exit
PB: predicated region body
PF: predicated region fallthrough
CT: control target
= control target key end

     0   :  { %13 = vsyncpa [#allocation5], 0  ;;  %s2050_s0 = inlined_call_operand.vmem [shape: f32[16,8,32], index: 0, kind: input, shape index: {}]   ;;  %s2051_s1 = inlined_call_operand.vmem [shape: f32[16,32], index: 1, kind: input, shape index: {}]   ;;  %s2052_s2 = inlined_call_operand.vmem [shape: f32[1,32], index: 2, kind: input, shape index: {}]   ;;  %s2053_s3 = inlined_call_operand.vmem [shape: f32[1,32], index: 3, kind: input, shape index: {}]   ;;  %s2054_s4 = inlined_call_operand.vmem [shape: f32[32,64], index: 4, kind: input, shape index: {}]   ;;  %s2055_s5 = inlined_call_operand.vmem [shape: f32[1,64], index: 5, kind: input, shape index: {}]   ;;  %s2056_s6 = inlined_call_operand.vmem [shape: f32[64,32], index: 6, kind: input, shape index: {}]   ;;  %s2057_s7 = inlined_call_operand.vmem [shape: f32[1,32], index: 7, kind: input, shape index: {}]   ;;  %s2058_s8 = inlined_call_operand.hbm [shape: f32[16,8,32], index: 8, kind: output, shape index: {}]  }
   0x1   :  { %15 = vsyncpa [#allocation5 + $0x1], 0  ;;  %s1690_s27 = smov 0   ;;  %s1692_s28 = smov 0  }
   0x2   :  { %s1694_s29 = smov 0   ;;  %s1696_s30 = smov 0  }
   0x3   :  { %s1698_s9 = smov 0   ;;  %s1700_s10 = smov 0  }
   0x4 LB: > { %s1322_s11 = sadd.s32 4294967295, %s1638_s10   ;;  %s1323_s12 = sadd.s32 4294967294, %s1638_s10   ;;  %s1638_s10 = sphi %s1700_s10, %s21_s10   ;;  %s1634_s9 = sphi %s1698_s9, %s2065_s9   ;;  %s1630_s30 = sphi %s1696_s30, %s2064_s30   ;;  %s1626_s29 = sphi %s1694_s29, %s2063_s29   ;;  %s1622_s28 = sphi %s1692_s28, %s2062_s28   ;;  %s1618_s27 = sphi %s1690_s27, %s2061_s27  }
   0x5   : > { %s33_s13 = sadd.s32 1, %s1634_s9  ;;  %s233_s14 = sadd.s32 1, %s1626_s29 }
   0x6   : > { %p35_p0 = scmp.ge.s32.totalorder %s33_s13, 2  ;;  %p243_p1 = scmp.ne.s32.totalorder %s1626_s29, %s1622_s28 }
   0x7   : > { %p244_p2 = scmp.eq.s32.totalorder %s1322_s11, 1  ;;  %p249_p3 = scmp.ne.s32.totalorder %s1622_s28, %s1618_s27 }
   0x8   : > { %s2067_s13 = smov (%p35_p0, %s33_s13), 0  ;;  %p250_p5 = scmp.eq.s32.totalorder %s1323_s12, 1 }
   0x9   : > { %p1730_p4 = por %p244_p2, %p243_p1  ;;  %s230_s16 = ssub.s32 %s1634_s9, %s2067_s13 }
   0xa   : > { %p1329_p6 = scmp.ge.s32.totalorder %s1638_s10, 1  ;;  %p231_p7 = scmp.eq.s32.totalorder %s230_s16, 0 }
   0xb   : > { %p1737_p8 = por %p250_p5, %p249_p3  ;;  %p315_p9 = scmp.lt.s32.totalorder %s1638_s10, 3 }
   0xc   : > { %s1743_s18 = scalar_select %p231_p7, %s1626_s29, %s233_s14  }
   0xd   : > { %p316_p10 = pnand %p1329_p6, %p315_p9 }
   0xe   : > { %s1331_s19 = sshll.u32 (!%p316_p10), %s1630_s30, 3  ;;  %p371_p11 = scmp.lt.s32.totalorder (!%p316_p10), %s1630_s30, 1  ;;  %v407_v0 = vlaneseq (!%p316_p10)  ;;  %v1640_v1 = vmov (!%p316_p10), 1966171168   ;;  %vm502_vm0 = vcmask (!%p316_p10), 261120   ;;  %vm889_vm1 = vcmask (!%p316_p10), 523264  }
   0xf   : > { %319 = sbr.rel (%p316_p10) target bundleno = 856 (0x358), region = 52  ;;  %p366_p12 = scmp.lt.s32.totalorder (!%p316_p10), %s1331_s19, 15  ;;  %v405_v2 = vunpack.c.l.s4 (!%p316_p10), %v1640_v1 }
  0x10   : > { %v408_v3 = vshrl.u32 (!%p316_p10), %v407_v0, 7  ;;  %s362_s23 = sand.u32 (!%p316_p10), 1, %s1622_s28  }
  0x11   : > { %v406_v4 = vunpack.c.0.s8 (!%p316_p10), %v405_v2  ;;  %s1330_s26 = sshll.u32 (!%p316_p10), %s362_s23, 6 }
  0x12   : > { %v454_v9 = vsub.s32 (!%p316_p10), 0, %v408_v3  ;;  %s364_s11 = scalar_lea.vmem (!%p316_p10), [#allocation4], %s1330_s26 }
  0x13   : > { %v409_v5 = vsub.s32 (!%p316_p10), %v406_v4, %v408_v3  ;;  %s1198_s14 = sshll.u32 (!%p316_p10), %s364_s11, 4  ;;  %s1997_s14 = int_to_ptr.vmem [resolvable:$true] %s1198_s14 }
  0x16   : > { %s372_s20 = scalar_select %p371_p11, %s1630_s30, 1 }
  0x17   : > { %s2069_s19 = smov (!%p366_p12, %s1331_s19), 15 }
  0x18   : > { %s1333_s21 = sshll.u32 %s372_s20, 3  ;;  %s1332_s22 = sshll.u32 %s2069_s19, 3 }
  0x19   : > { %s374_s25 = scalar_lea.vmem %s2051_s1, %s1333_s21  ;;  %s1754_s12 = scalar_lea.vmem %s2050_s0, %s1332_s22 }
  0x1a   : > { %v401_v6 = vld [vmem:[%s374_s25] sm:$0xff]  ;;  %v1040_v23 = vld [vmem:[%s1754_s12 + $0x10] sm:$0xff]  ;;  %v1039_v28 = vld [vmem:[%s1754_s12 + $0x8] sm:$0xff]  ;;  %s1560_s21 = scalar_lea.vmem %s1997_s14, 1024  ;;  %s1642_s22 = smov [#allocation4]  }
  0x1b   : > { %v403_v7 = vcombine.high %v401_v6, %v401_v6  ;;  %v410_v8 = vrot.slane %v401_v6, %v409_v5  ;;  %v393_v13 = vld [vmem:[%s1754_s12] sm:$0xff]  ;;  %v1041_v33 = vld [vmem:[%s1754_s12 + $0x18] sm:$0xff]  ;;  %v1043_v34 = vld [vmem:[%s1754_s12 + $0x28] sm:$0xff]  ;;  %p1561_p13 = scmp.ne.s32.totalorder %s1997_s14, %s1560_s21  ;;  %s1564_s24 = sshll.u32 %s1642_s22, 4  ;;  %s1565_s24 = int_to_ptr.vmem [resolvable:$false] %s1564_s24 }
  0x1c   : > { %v1042_v29 = vld [vmem:[%s1754_s12 + $0x20] sm:$0xff]  ;;  %v1044_v39 = vld [vmem:[%s1754_s12 + $0x30] sm:$0xff]  ;;  %v1045_v43 = vld [vmem:[%s1754_s12 + $0x38] sm:$0xff]  ;;  %s1359_s12 = sshll.u32 %s1630_s30, 10  ;;  %s2004_s30 = scalar_lea.sflag [#allocation5], %s362_s23 }
  0x1d   : > { %v426_v10 = vrot.slane %v410_v8, %v409_v5  ;;  %v1062_v11 = vrot.slane %v403_v7, %v409_v5  ;;  %v1063_v12 = vcombine.high %v410_v8, %v410_v8  ;;  %s1995_s20 = scalar_lea.hbm %s2058_s8, %s1359_s12  ;;  %p1562_p0 = pnand %p1561_p13, %p1730_p4 }
  0x1e   : > { %s1566_s25 = scalar_lea.vmem %s1565_s24, 2048  ;;  %p1567_p2 = scmp.lt.s32.totalorder %s1997_s14, %s1565_s24 }
  0x1f   : > { %v455_v14 = vrot.slane %v426_v10, %v454_v9  ;;  %v1064_v15 = vcombine.high %v1062_v11, %v1062_v11  ;;  %v1078_v16 = vrot.slane %v1062_v11, %v409_v5  ;;  %v1085_v17 = vrot.slane %v1063_v12, %v409_v5  ;;  %p1563_p1 = pneg %p1562_p0  ;;  %p1568_p3 = scmp.lt.s32.totalorder %s1566_s25, %s1560_s21 }
  0x20   : > { %v1093_v18 = vcombine.high %v426_v10, %v426_v10 }
  0x21   : > { %v1757_v19 = vadd.f32 %v455_v14, %v393_v13  ;;  %v1092_v20 = vrot.slane %v1064_v15, %v409_v5  ;;  %v1094_v21 = vcombine.high %v1078_v16, %v1078_v16  ;;  %v1095_v22 = vcombine.high %v1085_v17, %v1085_v17  ;;  %p1569_p5 = por %p1568_p3, %p1567_p2 }
  0x22   : > { %v1104_v24 = vrot.slane %v1085_v17, %v454_v9  ;;  %v1108_v25 = vrot.slane %v1093_v18, %v454_v9  ;;  %v1116_v26 = vrot.slane %v1078_v16, %v454_v9 }
  0x23   : > { %v503_v27 = vsel %vm502_vm0, %v1757_v19, 0.0  ;;  %v1096_v30 = vcombine.high %v1092_v20, %v1092_v20  ;;  %v1112_v31 = vrot.slane %v1095_v22, %v454_v9  ;;  %v1120_v32 = vrot.slane %v1092_v20, %v454_v9  ;;  %p1570_p6 = pnand %p1569_p5, %p1563_p1 }
  0x24   : > { %v1124_v35 = vrot.slane %v1094_v21, %v454_v9  ;;  %v1766_v36 = vadd.f32 %v1104_v24, %v1039_v28  ;;  %v1768_v37 = vadd.f32 %v1108_v25, %v1040_v23  ;;  %v1770_v38 = vadd.f32 %v1116_v26, %v1042_v29  ;;  %504 = vadd.xlane.f32.xlu0 %v503_v27 }
  0x25   : > { %v1128_v40 = vrot.slane %v1096_v30, %v454_v9  ;;  %v1773_v41 = vadd.f32 %v1112_v31, %v1041_v33  ;;  %v1775_v42 = vadd.f32 %v1120_v32, %v1043_v34  ;;  %v660_v30 = vld [vmem:[%s2054_s4] sm:$0xff]  ;;  %v661_v31 = vld [vmem:[%s2054_s4 + $0x8] sm:$0xff]  ;;  %v662_v33 = vld [vmem:[%s2054_s4 + $0x10] sm:$0xff] }
  0x26   : > { %v1778_v44 = vadd.f32 %v1124_v35, %v1044_v39  ;;  %v509_v46 = vsel %vm502_vm0, %v1768_v37, 0.0  ;;  %v506_v47 = vsel %vm502_vm0, %v1766_v36, 0.0  ;;  %v515_v49 = vsel %vm502_vm0, %v1770_v38, 0.0  ;;  %v663_v34 = vld [vmem:[%s2054_s4 + $0x18] sm:$0xff] }
  0x27   : > { %v1780_v45 = vadd.f32 %v1128_v40, %v1045_v43  ;;  %510 = vadd.xlane.f32.xlu1 %v509_v46  ;;  %v512_v48 = vsel %vm502_vm0, %v1773_v41, 0.0  ;;  %v518_v50 = vsel %vm502_vm0, %v1775_v42, 0.0  ;;  %v1436_v32 = vpack.c.bf16 %v661_v31, %v660_v30 }
  0x28   : > { %507 = vadd.xlane.f32.xlu0 %v506_v47  ;;  %v521_v51 = vsel %vm502_vm0, %v1778_v44, 0.0  ;;  %v1440_v35 = vpack.c.bf16 %v663_v34, %v662_v33 }
  0x29   : > { %v524_v52 = vsel %vm502_vm0, %v1780_v45, 0.0  ;;  %1437 = vmatprep.subr.bf16.mxu0 %v1436_v32 }
  0x2a   : > { %1439 = vmatpush3.bf16.msra.mxu0 %v1436_v32 }
  0x2b   : > { %513 = vadd.xlane.f32.xlu1 %v512_v48  ;;  %1441 = vmatprep.subr.bf16.mxu0 %v1440_v35 }
  0x2c   : > { %516 = vadd.xlane.f32.xlu0 %v515_v49 }
  0x2e   : > { %1443 = vmatpush3.bf16.msra.mxu0 %v1440_v35 }
  0x2f   : > { %519 = vadd.xlane.f32.xlu1 %v518_v50 }
  0x30   : > { %522 = vadd.xlane.f32.xlu0 %v521_v51 }
  0x33   : > { %525 = vadd.xlane.f32.xlu1 %v524_v52 }
  0xb1   : > { %v505_v53 = vpop.xlane.xlu0 %504 }
  0xb2   : > { %v528_v54 = vmul.f32 0.03125, %v505_v53 }
  0xb4   : > { %v1797_v55 = vsub.f32 %v1757_v19, %v528_v54  ;;  %v511_v56 = vpop.xlane.xlu1 %510 }
  0xb5   : > { %v530_v57 = vmul.f32 0.03125, %v511_v56  ;;  %v508_v60 = vpop.xlane.xlu0 %507 }
  0xb6   : > { %v544_v58 = vmul.f32 %v1797_v55, %v1797_v55  ;;  %v529_v62 = vmul.f32 0.03125, %v508_v60 }
  0xb7   : > { %v1802_v59 = vsub.f32 %v1768_v37, %v530_v57 }
  0xb8   : > { %v552_v61 = vsel %vm502_vm0, %v544_v58, 0.0  ;;  %v514_v63 = vpop.xlane.xlu1 %513  ;;  %v1808_v1 = vsub.f32 %v1766_v36, %v529_v62 }
  0xb9   : > { %553 = vadd.xlane.f32.xlu0 %v552_v61  ;;  %v546_v0 = vmul.f32 %v1802_v59, %v1802_v59  ;;  %v531_v2 = vmul.f32 0.03125, %v514_v63  ;;  %v517_v3 = vpop.xlane.xlu0 %516  ;;  %v1334_v61 = vld [vmem:[%s2052_s2] ss:$0 sm:$0xff] }
  0xba   : > { %v532_v6 = vmul.f32 0.03125, %v517_v3  ;;  %v545_v7 = vmul.f32 %v1808_v1, %v1808_v1 }
  0xbb   : > { %v558_v4 = vsel %vm502_vm0, %v546_v0, 0.0  ;;  %v1812_v5 = vsub.f32 %v1773_v41, %v531_v2 }
  0xbc   : > { %v520_v8 = vpop.xlane.xlu1 %519  ;;  %v1817_v9 = vsub.f32 %v1770_v38, %v532_v6  ;;  %v555_v11 = vsel %vm502_vm0, %v545_v7, 0.0 }
  0xbd   : > { %559 = vadd.xlane.f32.xlu0 %v558_v4  ;;  %v533_v10 = vmul.f32 0.03125, %v520_v8  ;;  %v547_v12 = vmul.f32 %v1812_v5, %v1812_v5  ;;  %556 = vadd.xlane.f32.xlu1 %v555_v11  ;;  %v523_v13 = vpop.xlane.xlu0 %522  ;;  %v1335_v4 = vld [vmem:[%s2053_s3] ss:$0 sm:$0xff] }
  0xbe   : > { %v534_v15 = vmul.f32 0.03125, %v523_v13  ;;  %v548_v17 = vmul.f32 %v1817_v9, %v1817_v9 }
  0xbf   : > { %v1823_v14 = vsub.f32 %v1775_v42, %v533_v10  ;;  %v561_v16 = vsel %vm502_vm0, %v547_v12, 0.0 }
  0xc0   : > { %v526_v18 = vpop.xlane.xlu1 %525  ;;  %v1829_v20 = vsub.f32 %v1778_v44, %v534_v15  ;;  %v564_v22 = vsel %vm502_vm0, %v548_v17, 0.0 }
  0xc1   : > { %v535_v21 = vmul.f32 0.03125, %v526_v18  ;;  %v549_v23 = vmul.f32 %v1823_v14, %v1823_v14  ;;  %562 = vadd.xlane.f32.xlu1 %v561_v16  ;;  %565 = vadd.xlane.f32.xlu0 %v564_v22 }
  0xc2   : > { %v550_v26 = vmul.f32 %v1829_v20, %v1829_v20 }
  0xc3   : > { %v1835_v24 = vsub.f32 %v1780_v45, %v535_v21  ;;  %v567_v25 = vsel %vm502_vm0, %v549_v23, 0.0 }
  0xc4   : > { %v570_v27 = vsel %vm502_vm0, %v550_v26, 0.0 }
  0xc5   : > { %v551_v28 = vmul.f32 %v1835_v24, %v1835_v24  ;;  %568 = vadd.xlane.f32.xlu1 %v567_v25  ;;  %571 = vadd.xlane.f32.xlu0 %v570_v27 }
  0xc7   : > { %v573_v29 = vsel %vm502_vm0, %v551_v28, 0.0 }
  0xc9   : > { %574 = vadd.xlane.f32.xlu1 %v573_v29 }
 0x146   : > { %v554_v39 = vpop.xlane.xlu0 %553 }
 0x147   : > { %v576_v40 = vmul.f32 0.03125, %v554_v39 }
 0x149   : > { %v584_v43 = vadd.f32 1e-06, %v576_v40 }
 0x14a   : > { %v560_v46 = vpop.xlane.xlu0 %559  ;;  %v557_v48 = vpop.xlane.xlu1 %556 }
 0x14b   : > { %1528 = vrsqrt.f32 %v584_v43  ;;  %v578_v47 = vmul.f32 0.03125, %v560_v46  ;;  %v577_v50 = vmul.f32 0.03125, %v557_v48 }
 0x14d   : > { %v586_v49 = vadd.f32 1e-06, %v578_v47  ;;  %v585_v51 = vadd.f32 1e-06, %v577_v50 }
 0x14e   : > { %v563_v52 = vpop.xlane.xlu1 %562  ;;  %v566_v53 = vpop.xlane.xlu0 %565 }
 0x14f   : > { %1530 = vrsqrt.f32 %v586_v49  ;;  %v579_v54 = vmul.f32 0.03125, %v563_v52  ;;  %v580_v56 = vmul.f32 0.03125, %v566_v53  ;;  %v881_v53 = vld [vmem:[%s2056_s6] sm:$0xff] }
 0x150   : > { %1532 = vrsqrt.f32 %v585_v51 }
 0x151   : > { %v587_v57 = vadd.f32 1e-06, %v579_v54  ;;  %v588_v58 = vadd.f32 1e-06, %v580_v56  ;;  %v882_v54 = vld [vmem:[%s2056_s6 + $0x8] sm:$0xff] }
 0x152   : > { %v569_v62 = vpop.xlane.xlu1 %568  ;;  %v572_v63 = vpop.xlane.xlu0 %571  ;;  %v1444_v56 = vpack.c.bf16 %v882_v54, %v881_v53 }
 0x153   : > { %1534 = vrsqrt.f32 %v587_v57  ;;  %v581_v2 = vmul.f32 0.03125, %v569_v62  ;;  %v582_v3 = vmul.f32 0.03125, %v572_v63  ;;  %v883_v57 = vld [vmem:[%s2056_s6 + $0x10] sm:$0xff]  ;;  %v886_v62 = vld [vmem:[%s2056_s6 + $0x28] sm:$0xff] }
 0x154   : > { %1536 = vrsqrt.f32 %v588_v58  ;;  %1445 = vmatprep.subr.bf16.mxu0 %v1444_v56  ;;  %1460 = vmatprep.subr.bf16.mxu1 %v1444_v56  ;;  %v884_v58 = vld [vmem:[%s2056_s6 + $0x18] sm:$0xff] }
 0x155   : > { %v1529_v60 = vpop.eup %1528  ;;  %v589_v7 = vadd.f32 1e-06, %v581_v2  ;;  %v590_v8 = vadd.f32 1e-06, %v582_v3  ;;  %1464 = vmatpush3.bf16.msra.mxu1 %v1444_v56  ;;  %v888_v2 = vld [vmem:[%s2056_s6 + $0x38] sm:$0xff] }
 0x156   : > { %v600_v0 = vmul.f32 %v1529_v60, %v1797_v55  ;;  %v575_v11 = vpop.xlane.xlu1 %574  ;;  %v1448_v60 = vpack.c.bf16 %v884_v58, %v883_v57 }
 0x157   : > { %1538 = vrsqrt.f32 %v589_v7  ;;  %v583_v15 = vmul.f32 0.03125, %v575_v11 }
 0x158   : > { %v614_v6 = vmul.f32 %v1334_v61, %v600_v0  ;;  %1540 = vrsqrt.f32 %v590_v8  ;;  %1461 = vmatprep.subr.bf16.mxu1 %v1448_v60  ;;  %v887_v0 = vld [vmem:[%s2056_s6 + $0x30] sm:$0xff] }
 0x159   : > { %v1531_v10 = vpop.eup %1530  ;;  %v591_v17 = vadd.f32 1e-06, %v583_v15  ;;  %1465 = vmatpush3.bf16.msra.mxu1 %v1448_v60  ;;  %v1456_v3 = vpack.c.bf16 %v888_v2, %v887_v0 }
 0x15a   : > { %v628_v12 = vadd.f32 %v1335_v4, %v614_v6  ;;  %v602_v13 = vmul.f32 %v1531_v10, %v1802_v59  ;;  %v1533_v55 = vpop.eup %1532  ;;  %v1336_v6 = vld [vmem:[%s2055_s5] ss:$0 sm:$0xff] }
 0x15b   : > { %v601_v18 = vmul.f32 %v1533_v55, %v1808_v1  ;;  %1542 = vrsqrt.f32 %v591_v17 }
 0x15c   : > { %636 = vst.msk [vmem:[#allocation2] sm:$0xff] %vm502_vm0, %v628_v12  ;;  %v616_v16 = vmul.f32 %v1334_v61, %v602_v13 }
 0x15d   : > { %v615_v22 = vmul.f32 %v1334_v61, %v601_v18  ;;  %v1535_v23 = vpop.eup %1534 }
 0x15e   : > { %v630_v21 = vadd.f32 %v1335_v4, %v616_v16  ;;  %v1537_v25 = vpop.eup %1536  ;;  %v603_v59 = vmul.f32 %v1535_v23, %v1812_v5 }
 0x15f   : > { %v629_v26 = vadd.f32 %v1335_v4, %v615_v22  ;;  %v604_v27 = vmul.f32 %v1537_v25, %v1817_v9 }
 0x160   : > { %638 = vst.msk [vmem:[#allocation2 + $0x10] sm:$0xff] %vm502_vm0, %v630_v21  ;;  %v617_v28 = vmul.f32 %v1334_v61, %v603_v59 }
 0x161   : > { %637 = vst.msk [vmem:[#allocation2 + $0x8] sm:$0xff] %vm502_vm0, %v629_v26  ;;  %v1539_v30 = vpop.eup %1538  ;;  %v618_v31 = vmul.f32 %v1334_v61, %v604_v27 }
 0x162   : > { %v1541_v1 = vpop.eup %1540  ;;  %v631_v32 = vadd.f32 %v1335_v4, %v617_v28  ;;  %v605_v33 = vmul.f32 %v1539_v30, %v1823_v14 }
 0x163   : > { %v652_v29 = vld [vmem:[#allocation2] sm:$0xff]  ;;  %v632_v34 = vadd.f32 %v1335_v4, %v618_v31  ;;  %v606_v35 = vmul.f32 %v1541_v1, %v1829_v20 }
 0x164   : > { %1396 = vmatprep.mubr.msk.f32.mxu0 %vm502_vm0, %v652_v29  ;;  %639 = vst.msk [vmem:[#allocation2 + $0x18] sm:$0xff] %vm502_vm0, %v631_v32  ;;  %v619_v5 = vmul.f32 %v1334_v61, %v605_v33 }
 0x165   : > { %v1543_v39 = vpop.eup %1542  ;;  %640 = vst.msk [vmem:[#allocation2 + $0x20] sm:$0xff] %vm502_vm0, %v632_v34  ;;  %v620_v9 = vmul.f32 %v1334_v61, %v606_v35 }
 0x166   : > { %v633_v40 = vadd.f32 %v1335_v4, %v619_v5  ;;  %v607_v43 = vmul.f32 %v1543_v39, %v1835_v24 }
 0x167   : > { %v654_v46 = vld [vmem:[#allocation2 + $0x10] sm:$0xff]  ;;  %v634_v47 = vadd.f32 %v1335_v4, %v620_v9 }
 0x168   : > { %v653_v48 = vld [vmem:[#allocation2 + $0x8] sm:$0xff]  ;;  %641 = vst.msk [vmem:[#allocation2 + $0x28] sm:$0xff] %vm502_vm0, %v633_v40  ;;  %v621_v49 = vmul.f32 %v1334_v61, %v607_v43  ;;  %v885_v61 = vld [vmem:[%s2056_s6 + $0x20] sm:$0xff] }
 0x169   : > { %1397 = vmatmul.mubr.msk.f32.vlgmr.msra.gmra.mrb[0].mxu0 %vm502_vm0, %v653_v48  ;;  %642 = vst.msk [vmem:[#allocation2 + $0x30] sm:$0xff] %vm502_vm0, %v634_v47  ;;  %v1452_v63 = vpack.c.bf16 %v886_v62, %v885_v61 }
 0x16a   : > { %1399 = vmatprep.mubr.msk.f32.mxu0 %vm502_vm0, %v654_v46  ;;  %v635_v14 = vadd.f32 %v1335_v4, %v621_v49  ;;  %1447 = vmatpush3.bf16.msra.mxu0 %v1444_v56  ;;  %v1641_v4 = vmov 0.0  }
 0x16b   : > { %v655_v20 = vld [vmem:[#allocation2 + $0x18] sm:$0xff]  ;;  %1449 = vmatprep.subr.bf16.mxu0 %v1448_v60  ;;  %1462 = vmatprep.subr.bf16.mxu1 %v1452_v63  ;;  %645 = vst.msk [vmem:[#allocation3 + $0x8] sm:$0xff] %vm502_vm0, %v1641_v4  ;;  %644 = vst.msk [vmem:[#allocation3] sm:$0xff] %vm502_vm0, %v1641_v4 }
 0x16c   : > { %643 = vst.msk [vmem:[#allocation2 + $0x38] sm:$0xff] %vm502_vm0, %v635_v14  ;;  %v656_v50 = vld [vmem:[#allocation2 + $0x20] sm:$0xff]  ;;  %1466 = vmatpush3.bf16.msra.mxu1 %v1452_v63  ;;  %646 = vst.msk [vmem:[#allocation3 + $0x10] sm:$0xff] %vm502_vm0, %v1641_v4 }
 0x16d   : > { %1400 = vmatmul.mubr.msk.f32.gmra.mrb[2].mxu0 %vm502_vm0, %v655_v20  ;;  %1463 = vmatprep.subr.bf16.mxu1 %v1456_v3  ;;  %647 = vst.msk [vmem:[#allocation3 + $0x18] sm:$0xff] %vm502_vm0, %v1641_v4  ;;  %648 = vst.msk [vmem:[#allocation3 + $0x20] sm:$0xff] %vm502_vm0, %v1641_v4 }
 0x16e   : > { %1402 = vmatprep.mubr.msk.f32.mxu0 %vm502_vm0, %v656_v50  ;;  %1451 = vmatpush3.bf16.msra.mxu0 %v1448_v60  ;;  %649 = vst.msk [vmem:[#allocation3 + $0x28] sm:$0xff] %vm502_vm0, %v1641_v4  ;;  %650 = vst.msk [vmem:[#allocation3 + $0x30] sm:$0xff] %vm502_vm0, %v1641_v4 }
 0x16f   : > { %v657_v24 = vld [vmem:[#allocation2 + $0x28] sm:$0xff]  ;;  %1453 = vmatprep.subr.bf16.mxu0 %v1452_v63  ;;  %651 = vst.msk [vmem:[#allocation3 + $0x38] sm:$0xff] %vm502_vm0, %v1641_v4 }
 0x170   : > { %v658_v51 = vld [vmem:[#allocation2 + $0x30] sm:$0xff]  ;;  %1467 = vmatpush3.bf16.msra.mxu1 %v1456_v3 }
 0x171   : > { %1403 = vmatmul.mubr.msk.f32.gmra.mrb[4].mxu0 %vm502_vm0, %v657_v24 }
 0x172   : > { %1405 = vmatprep.mubr.msk.f32.mxu0 %vm502_vm0, %v658_v51  ;;  %1455 = vmatpush3.bf16.msra.mxu0 %v1452_v63 }
 0x173   : > { %v659_v52 = vld [vmem:[#allocation2 + $0x38] sm:$0xff]  ;;  %1457 = vmatprep.subr.bf16.mxu0 %v1456_v3 }
 0x175   : > { %1406 = vmatmul.mubr.msk.f32.gmra.mrb[6].mxu0 %vm502_vm0, %v659_v52 }
 0x176   : > { %1459 = vmatpush3.bf16.msra.mxu0 %v1456_v3 }
 0x23c   : > { %v1398_v7 = vpop.f32.mrb[0].mxu0 }
 0x23d   : > { %v1921_v8 = vadd.f32 %v1398_v7, %v1336_v6  ;;  %v762_v10 = vpop.f32.mrb[1].mxu0 }
 0x23e   : > { %v763_v11 = vadd.f32 %v1336_v6, %v762_v10 }
 0x23f   : > { %v810_v12 = vmul.f32 %v1921_v8, %v1921_v8 }
 0x240   : > { %v809_v13 = vmul.f32 %v763_v11, %v763_v11  ;;  %v1401_v15 = vpop.f32.mrb[2].mxu0 }
 0x241   : > { %v818_v55 = vmul.f32 %v810_v12, %v1921_v8  ;;  %v1926_v16 = vadd.f32 %v1401_v15, %v1336_v6  ;;  %v772_v17 = vpop.f32.mrb[3].mxu0 }
 0x242   : > { %v817_v18 = vmul.f32 %v809_v13, %v763_v11  ;;  %v1928_v21 = vadd.f32 %v1336_v6, %v772_v17  ;;  %v801_v13 = vmul.f32 0.5, %v763_v11 }
 0x243   : > { %v826_v22 = vmul.f32 0.044715, %v818_v55  ;;  %v812_v23 = vmul.f32 %v1926_v16, %v1926_v16  ;;  %v802_v55 = vmul.f32 0.5, %v1921_v8 }
 0x244   : > { %v825_v25 = vmul.f32 0.044715, %v817_v18  ;;  %v811_v26 = vmul.f32 %v1928_v21, %v1928_v21  ;;  %v1404_v59 = vpop.f32.mrb[4].mxu0 }
 0x245   : > { %v834_v27 = vadd.f32 %v826_v22, %v1921_v8  ;;  %v820_v28 = vmul.f32 %v812_v23, %v1926_v16  ;;  %v1936_v29 = vadd.f32 %v1404_v59, %v1336_v6  ;;  %v782_v30 = vpop.f32.mrb[5].mxu0 }
 0x246   : > { %v833_v31 = vadd.f32 %v825_v25, %v763_v11  ;;  %v819_v1 = vmul.f32 %v811_v26, %v1928_v21  ;;  %v783_v32 = vadd.f32 %v1336_v6, %v782_v30  ;;  %v803_v26 = vmul.f32 0.5, %v1928_v21 }
 0x247   : > { %v842_v33 = vmul.f32 0.7978846, %v834_v27  ;;  %v828_v34 = vmul.f32 0.044715, %v820_v28  ;;  %v814_v35 = vmul.f32 %v1936_v29, %v1936_v29  ;;  %v804_v27 = vmul.f32 0.5, %v1926_v16 }
 0x248   : > { %v841_v5 = vmul.f32 0.7978846, %v833_v31  ;;  %v827_v39 = vmul.f32 0.044715, %v819_v1  ;;  %v813_v9 = vmul.f32 %v783_v32, %v783_v32  ;;  %v1407_v40 = vpop.f32.mrb[6].mxu0  ;;  %v805_v1 = vmul.f32 0.5, %v783_v32 }
 0x249   : > { %1544 = vtanh.f32 %v842_v33  ;;  %v836_v43 = vadd.f32 %v828_v34, %v1926_v16  ;;  %v822_v46 = vmul.f32 %v814_v35, %v1936_v29  ;;  %v1943_v47 = vadd.f32 %v1407_v40, %v1336_v6  ;;  %v792_v48 = vpop.f32.mrb[7].mxu0 }
 0x24a   : > { %1546 = vtanh.f32 %v841_v5  ;;  %v821_v49 = vmul.f32 %v813_v9, %v783_v32  ;;  %v793_v14 = vadd.f32 %v1336_v6, %v792_v48  ;;  %v835_v20 = vadd.f32 %v827_v39, %v1928_v21  ;;  %v873_v48 = vld [vmem:[#allocation3] sm:$0xff] }
 0x24b   : > { %v844_v50 = vmul.f32 0.7978846, %v836_v43  ;;  %v830_v24 = vmul.f32 0.044715, %v822_v46  ;;  %v816_v51 = vmul.f32 %v1943_v47, %v1943_v47  ;;  %v806_v34 = vmul.f32 0.5, %v1936_v29 }
 0x24c   : > { %v829_v52 = vmul.f32 0.044715, %v821_v49  ;;  %v815_v53 = vmul.f32 %v793_v14, %v793_v14  ;;  %v843_v54 = vmul.f32 0.7978846, %v835_v20  ;;  %v807_v9 = vmul.f32 0.5, %v793_v14 }
 0x24d   : > { %1548 = vtanh.f32 %v844_v50  ;;  %v838_v56 = vadd.f32 %v830_v24, %v1936_v29  ;;  %v824_v57 = vmul.f32 %v816_v51, %v1943_v47  ;;  %v808_v43 = vmul.f32 0.5, %v1943_v47  ;;  %v874_v29 = vld [vmem:[#allocation3 + $0x8] sm:$0xff]  ;;  %v876_v24 = vld [vmem:[#allocation3 + $0x18] sm:$0xff] }
 0x24e   : > { %v837_v58 = vadd.f32 %v829_v52, %v783_v32  ;;  %v823_v60 = vmul.f32 %v815_v53, %v793_v14  ;;  %1550 = vtanh.f32 %v843_v54 }
 0x24f   : > { %v846_v61 = vmul.f32 0.7978846, %v838_v56  ;;  %v832_v62 = vmul.f32 0.044715, %v824_v57  ;;  %v878_v56 = vld [vmem:[#allocation3 + $0x28] sm:$0xff]  ;;  %v877_v57 = vld [vmem:[#allocation3 + $0x20] sm:$0xff] }
 0x250   : > { %v845_v63 = vmul.f32 0.7978846, %v837_v58  ;;  %v831_v0 = vmul.f32 0.044715, %v823_v60  ;;  %v1353_v58 = vld [vmem:[%s2057_s7] ss:$0 sm:$0xff] }
 0x251   : > { %1552 = vtanh.f32 %v846_v61  ;;  %v840_v2 = vadd.f32 %v832_v62, %v1943_v47  ;;  %v875_v47 = vld [vmem:[#allocation3 + $0x10] sm:$0xff] }
 0x252   : > { %1554 = vtanh.f32 %v845_v63  ;;  %v839_v3 = vadd.f32 %v831_v0, %v793_v14 }
 0x253   : > { %v1545_v4 = vpop.eup %1544  ;;  %v848_v6 = vmul.f32 0.7978846, %v840_v2  ;;  %v880_v2 = vld [vmem:[#allocation3 + $0x38] sm:$0xff] }
 0x254   : > { %v1547_v7 = vpop.eup %1546  ;;  %v858_v10 = vadd.f32 1.0, %v1545_v4  ;;  %v847_v12 = vmul.f32 0.7978846, %v839_v3 }
 0x255   : > { %1556 = vtanh.f32 %v848_v6  ;;  %v857_v15 = vadd.f32 1.0, %v1547_v7  ;;  %v879_v6 = vld [vmem:[#allocation3 + $0x30] sm:$0xff] }
 0x256   : > { %1558 = vtanh.f32 %v847_v12  ;;  %v866_v23 = vmul.f32 %v858_v10, %v802_v55 }
 0x257   : > { %v1549_v17 = vpop.eup %1548  ;;  %v865_v18 = vmul.f32 %v857_v15, %v801_v13 }
 0x258   : > { %v1551_v22 = vpop.eup %1550  ;;  %v860_v25 = vadd.f32 1.0, %v1549_v17 }
 0x259   : > { %1424 = vmatprep.mubr.msk.f32.mxu0 %vm889_vm1, %v865_v18  ;;  %v859_v59 = vadd.f32 1.0, %v1551_v22 }
 0x25a   : > { %1425 = vmatmul.mubr.msk.f32.vlgmr.msra.gmra.mrb[8].mxu0 %vm889_vm1, %v866_v23  ;;  %v868_v8 = vmul.f32 %v860_v25, %v804_v27 }
 0x25b   : > { %v1553_v11 = vpop.eup %1552  ;;  %v867_v28 = vmul.f32 %v859_v59, %v803_v26 }
 0x25c   : > { %v1555_v30 = vpop.eup %1554  ;;  %v862_v31 = vadd.f32 1.0, %v1553_v11 }
 0x25d   : > { %1427 = vmatprep.mubr.msk.f32.mxu1 %vm889_vm1, %v867_v28  ;;  %v861_v33 = vadd.f32 1.0, %v1555_v30 }
 0x25e   : > { %1428 = vmatmul.mubr.msk.f32.vlgmr.msra.gmra.mrb[0].mxu1 %vm889_vm1, %v868_v8  ;;  %v870_v39 = vmul.f32 %v862_v31, %v806_v34 }
 0x25f   : > { %v1557_v35 = vpop.eup %1556  ;;  %v869_v21 = vmul.f32 %v861_v33, %v805_v1 }
 0x260   : > { %v1559_v5 = vpop.eup %1558  ;;  %v864_v16 = vadd.f32 1.0, %v1557_v35 }
 0x261   : > { %1430 = vmatprep.mubr.msk.f32.mxu1 %vm889_vm1, %v869_v21  ;;  %v863_v40 = vadd.f32 1.0, %v1559_v5 }
 0x262   : > { %1431 = vmatmul.mubr.msk.f32.gmra.mrb[2].mxu1 %vm889_vm1, %v870_v39  ;;  %v872_v46 = vmul.f32 %v864_v16, %v808_v43 }
 0x263   : > { %v871_v32 = vmul.f32 %v863_v40, %v807_v9 }
 0x265   : > { %1433 = vmatprep.mubr.msk.f32.mxu1 %vm889_vm1, %v871_v32 }
 0x266   : > { %1434 = vmatmul.mubr.msk.f32.gmra.mrb[4].mxu1 %vm889_vm1, %v872_v46 }
 0x32d   : > { %v1426_v49 = vpop.f32.mrb[8].mxu0 }
 0x32e   : > { %v1020_v20 = vadd.f32 %v1426_v49, %v874_v29  ;;  %v980_v50 = vpop.f32.mrb[9].mxu0 }
 0x32f   : > { %v1019_v14 = vadd.f32 %v980_v50, %v873_v48 }
 0x330   : > { %1028 = vst.msk [vmem:[#allocation3 + $0x8] sm:$0xff] %vm502_vm0, %v1020_v20 }
 0x331   : > { %1027 = vst.msk [vmem:[#allocation3] sm:$0xff] %vm502_vm0, %v1019_v14  ;;  %v1429_v51 = vpop.f32.mrb[0].mxu1 }
 0x332   : > { %v1022_v52 = vadd.f32 %v1429_v51, %v876_v24  ;;  %v990_v53 = vpop.f32.mrb[1].mxu1 }
 0x333   : > { %v1021_v54 = vadd.f32 %v990_v53, %v875_v47 }
 0x334   : > { %1030 = vst.msk [vmem:[#allocation3 + $0x18] sm:$0xff] %vm502_vm0, %v1022_v52 }
 0x335   : > { %1029 = vst.msk [vmem:[#allocation3 + $0x10] sm:$0xff] %vm502_vm0, %v1021_v54  ;;  %v1432_v60 = vpop.f32.mrb[2].mxu1 }
 0x336   : > { %v1024_v61 = vadd.f32 %v1432_v60, %v878_v56  ;;  %v1000_v62 = vpop.f32.mrb[3].mxu1 }
 0x337   : > { %v1146_v63 = vld [vmem:[#allocation3 + $0x8] sm:$0xff]  ;;  %v1023_v0 = vadd.f32 %v1000_v62, %v877_v57 }
 0x338   : > { %v1161_v3 = vadd.f32 %v1353_v58, %v1146_v63  ;;  %v1145_v4 = vld [vmem:[#allocation3] sm:$0xff]  ;;  %1032 = vst.msk [vmem:[#allocation3 + $0x28] sm:$0xff] %vm502_vm0, %v1024_v61 }
 0x339   : > { %v1160_v7 = vadd.f32 %v1353_v58, %v1145_v4  ;;  %1031 = vst.msk [vmem:[#allocation3 + $0x20] sm:$0xff] %vm502_vm0, %v1023_v0  ;;  %v1435_v10 = vpop.f32.mrb[4].mxu1 }
 0x33a   : > { %v1169_v12 = vadd.f32 %v1161_v3, %v1766_v36  ;;  %v1026_v13 = vadd.f32 %v1435_v10, %v880_v2  ;;  %v1010_v15 = vpop.f32.mrb[5].mxu1 }
 0x33b   : > { %v1168_v55 = vadd.f32 %v1160_v7, %v1757_v19  ;;  %v1148_v17 = vld [vmem:[#allocation3 + $0x18] sm:$0xff]  ;;  %v1025_v18 = vadd.f32 %v1010_v15, %v879_v6 }
 0x33c   : > { %v1163_v22 = vadd.f32 %v1353_v58, %v1148_v17  ;;  %v1147_v23 = vld [vmem:[#allocation3 + $0x10] sm:$0xff]  ;;  %1034 = vst.msk [vmem:[#allocation3 + $0x38] sm:$0xff] %vm502_vm0, %v1026_v13  ;;  %1177 = vst.msk [vmem:[%s364_s11 + $0x8] sm:$0xff] %vm502_vm0, %v1169_v12 }
 0x33d   : > { %v1162_v25 = vadd.f32 %v1353_v58, %v1147_v23  ;;  %1033 = vst.msk [vmem:[#allocation3 + $0x30] sm:$0xff] %vm502_vm0, %v1025_v18  ;;  %1176 = vst.msk [vmem:[%s364_s11] sm:$0xff] %vm502_vm0, %v1168_v55 }
 0x33e   : > { %v1171_v36 = vadd.f32 %v1163_v22, %v1773_v41 }
 0x33f   : > { %v1170_v26 = vadd.f32 %v1162_v25, %v1768_v37  ;;  %v1150_v19 = vld [vmem:[#allocation3 + $0x28] sm:$0xff] }
 0x340   : > { %v1165_v59 = vadd.f32 %v1353_v58, %v1150_v19  ;;  %v1149_v27 = vld [vmem:[#allocation3 + $0x20] sm:$0xff]  ;;  %1179 = vst.msk [vmem:[%s364_s11 + $0x18] sm:$0xff] %vm502_vm0, %v1171_v36 }
 0x341   : > { %v1164_v11 = vadd.f32 %v1353_v58, %v1149_v27  ;;  %1178 = vst.msk [vmem:[%s364_s11 + $0x10] sm:$0xff] %vm502_vm0, %v1170_v26 }
 0x342   : > { %v1173_v28 = vadd.f32 %v1165_v59, %v1775_v42 }
 0x343   : > { %v1172_v30 = vadd.f32 %v1164_v11, %v1770_v38  ;;  %v1152_v8 = vld [vmem:[#allocation3 + $0x38] sm:$0xff] }
 0x344   : > { %v1167_v41 = vadd.f32 %v1353_v58, %v1152_v8  ;;  %v1151_v31 = vld [vmem:[#allocation3 + $0x30] sm:$0xff]  ;;  %1181 = vst.msk [vmem:[%s364_s11 + $0x28] sm:$0xff] %vm502_vm0, %v1173_v28 }
 0x345   : > { %v1166_v37 = vadd.f32 %v1353_v58, %v1151_v31  ;;  %1180 = vst.msk [vmem:[%s364_s11 + $0x20] sm:$0xff] %vm502_vm0, %v1172_v30 }
 0x346   : > { %v1175_v1 = vadd.f32 %v1167_v41, %v1780_v45 }
 0x347   : > { %v1174_v38 = vadd.f32 %v1166_v37, %v1778_v44 }
 0x348   : > { %1183 = vst.msk [vmem:[%s364_s11 + $0x38] sm:$0xff] %vm502_vm0, %v1175_v1 }
 0x349   : > { %1182 = vst.msk [vmem:[%s364_s11 + $0x30] sm:$0xff] %vm502_vm0, %v1174_v38 }
 0x34a   : > { %1573 = shalt.err (!%p1570_p6)
}
 0x34b   : > { %s1574_s23 = scalar_lea.hbm %s1995_s20, 1024  ;;  %s1578_s12 = scalar_lea.hbm %s2058_s8, 2048 }
 0x34c   : > { %p1575_p7 = scmp.ne.s32.totalorder %s1995_s20, %s1574_s23  ;;  %p1579_p11 = scmp.lt.u32.totalorder %s1995_s20, %s2058_s8 }
 0x34d   : > { %p1580_p12 = scmp.lt.u32.totalorder %s1578_s12, %s1574_s23  ;;  %p1582_p0 = scmp.lt.u32.totalorder %s1574_s23, %s1995_s20 }
 0x34e   : > { %p1576_p9 = pnand %p1575_p7, %p1730_p4 }
 0x34f   : > { %p1581_p13 = por %p1580_p12, %p1579_p11 }
 0x350   : > { %p1577_p10 = pneg %p1576_p9 }
 0x351   : > { %p1583_p1 = por %p1582_p0, %p1581_p13 }
 0x353   : > { %p1584_p2 = pnand %p1583_p1, %p1577_p10 }
 0x355   : > { %1587 = shalt.err (!%p1584_p2)
}
 0x356   : > { %s1643_s21 = smov 128   ;;  %s1644_s22 = smov 8  }
 0x357   : > { %1468 = dma.vmem_to_hbm [thread:$0]  (%p1730_p4), %s1997_s14, 1024, %s1995_s20, %s2004_s30, %s1643_s21, %s1643_s21, %s1644_s22  }
 0x358 PF: > { %p1474_p3 = scmp.ge.s32.totalorder %s1638_s10, 2  ;;  %s1213_s24 = sand.u32 1, %s1618_s27  }
 0x359   : > { %s1214_s25 = scalar_lea.sflag [#allocation5], %s1213_s24 }
 0x35a   : > { %p1471_p5 = pnand %p1474_p3, %p1737_p8 }
 0x35c   : > { %1613 = dma.done.wait (!%p1471_p5), %s1214_s25, 1024  }
 0x35d   : > { %1615 = vsyncadd (!%p1471_p5), %s1214_s25, 4294966272  ;;  %s21_s10 = sadd.s32 1, %s1638_s10   ;;  %s2061_s27 = smov %s1622_s28 }
 0x35e   : > { %p18_p6 = scmp.ge.s32.totalorder %s21_s10, 4   ;;  %s2062_s28 = smov %s1626_s29 }
 0x35f   : > { %s2063_s29 = smov %s1743_s18  ;;  %s2064_s30 = smov %s1634_s9 }
 0x360   : > { %s2065_s9 = smov %s2067_s13  ;;  %20 = sbr.rel (!%p18_p6) target bundleno = 4 (0x4), region = 107 }
 0x367   :  { %1219 = vsyncpa [#allocation5], 1 }
 0x368   :  { %1221 = vsyncpa [#allocation5 + $0x1], 1 }

// kernel: transformer_inter_layer.3
= control target key start
LH: loop header
LB: loop body
LE: loop exit
PB: predicated region body
PF: predicated region fallthrough
CT: control target
= control target key end

     0   :  { %s2644_s27 = smov 0   ;;  %s3621_s0 = inlined_call_operand.vmem [shape: f32[16,8,32], index: 0, kind: input, shape index: {}]   ;;  %s3622_s1 = inlined_call_operand.vmem [shape: f32[16,8], index: 1, kind: input, shape index: {}]   ;;  %s3623_s2 = inlined_call_operand.vmem [shape: f32[1,32], index: 2, kind: input, shape index: {}]   ;;  %s3624_s3 = inlined_call_operand.vmem [shape: f32[1,32], index: 3, kind: input, shape index: {}]   ;;  %s3625_s4 = inlined_call_operand.vmem [shape: f32[32,128], index: 4, kind: input, shape index: {}]   ;;  %s3626_s5 = inlined_call_operand.vmem [shape: f32[1,128], index: 5, kind: input, shape index: {}]   ;;  %s3627_s6 = inlined_call_operand.vmem [shape: f32[1,8], index: 6, kind: input, shape index: {}]   ;;  %s3628_s7 = inlined_call_operand.vmem [shape: f32[1,8], index: 7, kind: input, shape index: {}]   ;;  %s3629_s8 = inlined_call_operand.vmem [shape: f32[16,32], index: 8, kind: output, shape index: {}]  }
   0x1 LB: > { %s2650_s28 = sadd.s32 4294967295, %s2588_s27   ;;  %p2437_p0 = scmp.ge.s32.totalorder %s2588_s27, 1  ;;  %s2588_s27 = sphi %s2644_s27, %s18_s27  }
   0x2   : > { %p272_p1 = scmp.lt.s32.totalorder %s2588_s27, 3 }
   0x4   : > { %p273_p2 = pnand %p2437_p0, %p272_p1 }
   0x6   : > { %276 = sbr.rel (%p273_p2) target bundleno = 1302 (0x516), region = 52 }
   0xd   : > { %s2438_s29 = sshll.u32 %s2650_s28, 3  ;;  %vm333_vm0 = vcmask 261120   ;;  %v467_v56 = vld [vmem:[%s3625_s4] sm:$0xff]  ;;  %v468_v57 = vld [vmem:[%s3625_s4 + $0x8] sm:$0xff]  ;;  %v469_v59 = vld [vmem:[%s3625_s4 + $0x10] sm:$0xff]  ;;  %p315_p4 = scmp.lt.s32.totalorder %s2650_s28, 1  ;;  %v692_v62 = vlaneseq }
   0xe   : > { %p310_p3 = scmp.lt.s32.totalorder %s2438_s29, 15  ;;  %v2489_v58 = vpack.c.bf16 %v468_v57, %v467_v56  ;;  %v470_v60 = vld [vmem:[%s3625_s4 + $0x18] sm:$0xff]  ;;  %vm1296_vm1 = vcmask 294144   ;;  %s2590_s10 = smov 120   ;;  %vm2025_vm2 = vcmask 60416   ;;  %vm2361_vm3 = vcmask 64512  }
   0xf   : > { %v2493_v61 = vpack.c.bf16 %v470_v60, %v469_v59  ;;  %s3675_s28 = smov (!%p315_p4, %s2650_s28), 1  ;;  %v2722_v63 = vshrl.u32 %v692_v62, 7  ;;  %s2592_s12 = smov 104   ;;  %vm2363_vm4 = vcmask 130048   ;;  %vm2365_vm5 = vcmask 195584  }
  0x10   : > { %s3673_s29 = smov (!%p310_p3, %s2438_s29), 15  ;;  %2490 = vmatprep.subr.bf16.mxu0 %v2489_v58  ;;  %2497 = vmatprep.subr.bf16.mxu1 %v2489_v58  ;;  %s2440_s20 = sshll.u32 %s3675_s28, 3 }
  0x11   : > { %s2439_s30 = sshll.u32 %s3673_s29, 3  ;;  %2492 = vmatpush3.bf16.msra.mxu0 %v2489_v58  ;;  %2499 = vmatpush3.bf16.msra.mxu1 %v2489_v58  ;;  %s318_s23 = scalar_lea.vmem %s3622_s1, %s2440_s20 }
  0x12   : > { %s313_s11 = scalar_lea.vmem %s3621_s0, %s2439_s30  ;;  %2494 = vmatprep.subr.bf16.mxu0 %v2493_v61  ;;  %2498 = vmatprep.subr.bf16.mxu1 %v2493_v61  ;;  %s2596_s17 = smov 16  }
  0x13   : > { %v323_v0 = vld [vmem:[%s313_s11] sm:$0xff]  ;;  %v324_v1 = vld [vmem:[%s313_s11 + $0x8] sm:$0xff]  ;;  %v325_v8 = vld [vmem:[%s313_s11 + $0x10] sm:$0xff]  ;;  %s2597_s18 = smov 8   ;;  %s2598_s19 = smov 24  }
  0x14   : > { %v327_v2 = vld [vmem:[%s313_s11 + $0x20] sm:$0xff]  ;;  %v334_v3 = vsel %vm333_vm0, %v323_v0, 0.0  ;;  %v337_v4 = vsel %vm333_vm0, %v324_v1, 0.0  ;;  %v328_v5 = vld [vmem:[%s313_s11 + $0x28] sm:$0xff]  ;;  %v329_v9 = vld [vmem:[%s313_s11 + $0x30] sm:$0xff]  ;;  %v340_v10 = vsel %vm333_vm0, %v325_v8, 0.0 }
  0x15   : > { %335 = vadd.xlane.f32.xlu0 %v334_v3  ;;  %338 = vadd.xlane.f32.xlu1 %v337_v4  ;;  %v346_v6 = vsel %vm333_vm0, %v327_v2, 0.0  ;;  %v349_v7 = vsel %vm333_vm0, %v328_v5, 0.0  ;;  %v352_v11 = vsel %vm333_vm0, %v329_v9, 0.0  ;;  %v326_v12 = vld [vmem:[%s313_s11 + $0x18] sm:$0xff]  ;;  %v2740_v3 = vsub.s32 4, %v2722_v63  ;;  %v1231_v4 = vld [vmem:[%s318_s23] sm:$0xff]  ;;  %s322_s23 = scalar_lea.vmem %s3629_s8, %s2440_s20 }
  0x16   : > { %v330_v13 = vld [vmem:[%s313_s11 + $0x38] sm:$0xff]  ;;  %v343_v14 = vsel %vm333_vm0, %v326_v12, 0.0  ;;  %2496 = vmatpush3.bf16.msra.mxu0 %v2493_v61  ;;  %2500 = vmatpush3.bf16.msra.mxu1 %v2493_v61  ;;  %s2591_s11 = smov 112  }
  0x17   : > { %v355_v15 = vsel %vm333_vm0, %v330_v13, 0.0 }
  0x19   : > { %347 = vadd.xlane.f32.xlu0 %v346_v6  ;;  %350 = vadd.xlane.f32.xlu1 %v349_v7 }
  0x1d   : > { %341 = vadd.xlane.f32.xlu0 %v340_v10  ;;  %353 = vadd.xlane.f32.xlu1 %v352_v11  ;;  %v2750_v10 = vsub.s32 6, %v2722_v63 }
  0x21   : > { %344 = vadd.xlane.f32.xlu0 %v343_v14  ;;  %356 = vadd.xlane.f32.xlu1 %v355_v15  ;;  %v2759_v15 = vsub.s32 7, %v2722_v63 }
  0xa2   : > { %v336_v16 = vpop.xlane.xlu0 %335  ;;  %v339_v17 = vpop.xlane.xlu1 %338 }
  0xa3   : > { %v359_v18 = vmul.f32 0.03125, %v336_v16  ;;  %v360_v19 = vmul.f32 0.03125, %v339_v17  ;;  %v1284_v16 = vrot.slane %v1231_v4, %v2759_v15 }
  0xa5   : > { %v2666_v20 = vsub.f32 %v323_v0, %v359_v18  ;;  %v2668_v21 = vsub.f32 %v324_v1, %v360_v19  ;;  %v2726_v0 = vsub.s32 1, %v2722_v63  ;;  %v2729_v1 = vsub.s32 0, %v2722_v63 }
  0xa6   : > { %v348_v22 = vpop.xlane.xlu0 %347  ;;  %v351_v23 = vpop.xlane.xlu1 %350 }
  0xa7   : > { %v363_v24 = vmul.f32 0.03125, %v348_v22  ;;  %v364_v25 = vmul.f32 0.03125, %v351_v23  ;;  %v375_v26 = vmul.f32 %v2666_v20, %v2666_v20  ;;  %v376_v27 = vmul.f32 %v2668_v21, %v2668_v21 }
  0xa8   : > { %v1235_v6 = vrot.slane %v1231_v4, %v2729_v1 }
  0xa9   : > { %v2674_v28 = vsub.f32 %v327_v2, %v363_v24  ;;  %v2676_v29 = vsub.f32 %v328_v5, %v364_v25  ;;  %v383_v30 = vsel %vm333_vm0, %v375_v26, 0.0  ;;  %v386_v33 = vsel %vm333_vm0, %v376_v27, 0.0 }
  0xaa   : > { %384 = vadd.xlane.f32.xlu0 %v383_v30  ;;  %v342_v31 = vpop.xlane.xlu0 %341  ;;  %v354_v32 = vpop.xlane.xlu1 %353  ;;  %v2737_v2 = vsub.s32 2, %v2722_v63  ;;  %v1242_v5 = vrot.slane %v1231_v4, %v2726_v0 }
  0xab   : > { %v361_v34 = vmul.f32 0.03125, %v342_v31  ;;  %v365_v35 = vmul.f32 0.03125, %v354_v32  ;;  %v379_v36 = vmul.f32 %v2674_v28, %v2674_v28  ;;  %v380_v37 = vmul.f32 %v2676_v29, %v2676_v29 }
  0xac   : > { %v1249_v7 = vrot.slane %v1231_v4, %v2737_v2 }
  0xad   : > { %v2684_v38 = vsub.f32 %v325_v8, %v361_v34  ;;  %v2686_v39 = vsub.f32 %v329_v9, %v365_v35  ;;  %v395_v40 = vsel %vm333_vm0, %v379_v36, 0.0  ;;  %v398_v43 = vsel %vm333_vm0, %v380_v37, 0.0 }
  0xae   : > { %387 = vadd.xlane.f32.xlu0 %v386_v33  ;;  %396 = vadd.xlane.f32.xlu1 %v395_v40  ;;  %v345_v41 = vpop.xlane.xlu0 %344  ;;  %v357_v42 = vpop.xlane.xlu1 %356  ;;  %v2746_v8 = vsub.s32 3, %v2722_v63  ;;  %v1263_v9 = vrot.slane %v1231_v4, %v2740_v3 }
  0xaf   : > { %v362_v44 = vmul.f32 0.03125, %v345_v41  ;;  %v366_v45 = vmul.f32 0.03125, %v357_v42  ;;  %v377_v46 = vmul.f32 %v2684_v38, %v2684_v38  ;;  %v381_v47 = vmul.f32 %v2686_v39, %v2686_v39 }
  0xb0   : > { %v1256_v11 = vrot.slane %v1231_v4, %v2746_v8 }
  0xb1   : > { %v2694_v48 = vsub.f32 %v326_v12, %v362_v44  ;;  %v2696_v49 = vsub.f32 %v330_v13, %v366_v45  ;;  %v389_v50 = vsel %vm333_vm0, %v377_v46, 0.0  ;;  %v401_v51 = vsel %vm333_vm0, %v381_v47, 0.0  ;;  %v2442_v45 = vld [vmem:[%s3623_s2] ss:$0 sm:$0xff] }
  0xb2   : > { %399 = vadd.xlane.f32.xlu1 %v398_v43  ;;  %390 = vadd.xlane.f32.xlu0 %v389_v50  ;;  %v2754_v12 = vsub.s32 5, %v2722_v63  ;;  %v1277_v13 = vrot.slane %v1231_v4, %v2750_v10 }
  0xb3   : > { %v378_v52 = vmul.f32 %v2694_v48, %v2694_v48  ;;  %v382_v53 = vmul.f32 %v2696_v49, %v2696_v49 }
  0xb4   : > { %v1270_v14 = vrot.slane %v1231_v4, %v2754_v12 }
  0xb5   : > { %v392_v54 = vsel %vm333_vm0, %v378_v52, 0.0  ;;  %v404_v55 = vsel %vm333_vm0, %v382_v53, 0.0 }
  0xb6   : > { %402 = vadd.xlane.f32.xlu1 %v401_v51  ;;  %393 = vadd.xlane.f32.xlu0 %v392_v54  ;;  %v2443_v51 = vld [vmem:[%s3624_s3] ss:$0 sm:$0xff] }
  0xba   : > { %405 = vadd.xlane.f32.xlu1 %v404_v55 }
  0xcb   : > { %1244 = vbcast.lane.b32.xlu1 %v1242_v5, 256 }
  0xcc   : > { %1237 = vbcast.lane.b32.xlu0 %v1235_v6, 256 }
  0xcf   : > { %1251 = vbcast.lane.b32.xlu1 %v1249_v7, 256 }
  0xd0   : > { %1265 = vbcast.lane.b32.xlu0 %v1263_v9, 256 }
  0xd3   : > { %1258 = vbcast.lane.b32.xlu1 %v1256_v11, 256 }
  0xd4   : > { %1279 = vbcast.lane.b32.xlu0 %v1277_v13, 256 }
  0xd7   : > { %1272 = vbcast.lane.b32.xlu1 %v1270_v14, 256 }
  0xdb   : > { %1286 = vbcast.lane.b32.xlu1 %v1284_v16, 256 }
 0x137   : > { %v385_v17 = vpop.xlane.xlu0 %384 }
 0x138   : > { %v407_v18 = vmul.f32 0.03125, %v385_v17 }
 0x13a   : > { %v415_v19 = vadd.f32 1e-06, %v407_v18 }
 0x13b   : > { %v397_v22 = vpop.xlane.xlu1 %396  ;;  %v388_v23 = vpop.xlane.xlu0 %387 }
 0x13c   : > { %2518 = vrsqrt.f32 %v415_v19  ;;  %v411_v24 = vmul.f32 0.03125, %v397_v22  ;;  %v408_v25 = vmul.f32 0.03125, %v388_v23 }
 0x13e   : > { %v419_v26 = vadd.f32 1e-06, %v411_v24  ;;  %v416_v27 = vadd.f32 1e-06, %v408_v25 }
 0x13f   : > { %v400_v30 = vpop.xlane.xlu1 %399  ;;  %v391_v31 = vpop.xlane.xlu0 %390 }
 0x140   : > { %2520 = vrsqrt.f32 %v419_v26  ;;  %v412_v32 = vmul.f32 0.03125, %v400_v30  ;;  %v409_v33 = vmul.f32 0.03125, %v391_v31  ;;  %v2791_v26 = vld [vmem:[%s3626_s5] ss:$0 sm:$0xff] }
 0x141   : > { %2522 = vrsqrt.f32 %v416_v27 }
 0x142   : > { %v420_v34 = vadd.f32 1e-06, %v412_v32  ;;  %v417_v35 = vadd.f32 1e-06, %v409_v33 }
 0x143   : > { %v403_v36 = vpop.xlane.xlu1 %402  ;;  %v394_v37 = vpop.xlane.xlu0 %393 }
 0x144   : > { %2524 = vrsqrt.f32 %v420_v34  ;;  %v413_v40 = vmul.f32 0.03125, %v403_v36  ;;  %v410_v41 = vmul.f32 0.03125, %v394_v37 }
 0x145   : > { %2526 = vrsqrt.f32 %v417_v35 }
 0x146   : > { %v2519_v42 = vpop.eup %2518  ;;  %v421_v43 = vadd.f32 1e-06, %v413_v40  ;;  %v418_v44 = vadd.f32 1e-06, %v410_v41 }
 0x147   : > { %v406_v46 = vpop.xlane.xlu1 %405  ;;  %v431_v47 = vmul.f32 %v2519_v42, %v2666_v20 }
 0x148   : > { %2528 = vrsqrt.f32 %v421_v43  ;;  %v414_v50 = vmul.f32 0.03125, %v406_v46 }
 0x149   : > { %2530 = vrsqrt.f32 %v418_v44  ;;  %v445_v52 = vmul.f32 %v2442_v45, %v431_v47 }
 0x14a   : > { %v2521_v53 = vpop.eup %2520  ;;  %v422_v54 = vadd.f32 1e-06, %v414_v50 }
 0x14b   : > { %v2523_v55 = vpop.eup %2522  ;;  %v459_v56 = vadd.f32 %v2443_v51, %v445_v52  ;;  %v435_v57 = vmul.f32 %v2521_v53, %v2674_v28 }
 0x14c   : > { %2532 = vrsqrt.f32 %v422_v54  ;;  %v432_v58 = vmul.f32 %v2523_v55, %v2668_v21 }
 0x14d   : > { %2477 = vmatprep.mubr.msk.f32.mxu0 %vm333_vm0, %v459_v56  ;;  %v449_v20 = vmul.f32 %v2442_v45, %v435_v57 }
 0x14e   : > { %v2525_v59 = vpop.eup %2524  ;;  %v446_v60 = vmul.f32 %v2442_v45, %v432_v58 }
 0x14f   : > { %v2527_v61 = vpop.eup %2526  ;;  %v463_v62 = vadd.f32 %v2443_v51, %v449_v20  ;;  %v436_v4 = vmul.f32 %v2525_v59, %v2676_v29 }
 0x150   : > { %v460_v5 = vadd.f32 %v2443_v51, %v446_v60  ;;  %v433_v6 = vmul.f32 %v2527_v61, %v2684_v38 }
 0x151   : > { %2483 = vmatprep.mubr.msk.f32.mxu1 %vm333_vm0, %v463_v62  ;;  %v450_v7 = vmul.f32 %v2442_v45, %v436_v4 }
 0x152   : > { %v2529_v9 = vpop.eup %2528  ;;  %2478 = vmatmul.mubr.msk.f32.vlgmr.msra.gmra.mrb[0].mxu0 %vm333_vm0, %v460_v5  ;;  %v447_v28 = vmul.f32 %v2442_v45, %v433_v6 }
 0x153   : > { %v2531_v21 = vpop.eup %2530  ;;  %v464_v11 = vadd.f32 %v2443_v51, %v450_v7  ;;  %v437_v13 = vmul.f32 %v2529_v9, %v2686_v39 }
 0x154   : > { %v461_v14 = vadd.f32 %v2443_v51, %v447_v28  ;;  %v434_v16 = vmul.f32 %v2531_v21, %v2694_v48  ;;  %v1245_v48 = vpop.permute.xlu1 %1244 }
 0x155   : > { %2484 = vmatmul.mubr.msk.f32.vlgmr.msra.gmra.mrb[0].mxu1 %vm333_vm0, %v464_v11  ;;  %v451_v29 = vmul.f32 %v2442_v45, %v437_v13 }
 0x156   : > { %v2533_v17 = vpop.eup %2532  ;;  %2480 = vmatprep.mubr.msk.f32.mxu0 %vm333_vm0, %v461_v14  ;;  %v448_v38 = vmul.f32 %v2442_v45, %v434_v16 }
 0x157   : > { %v465_v18 = vadd.f32 %v2443_v51, %v451_v29  ;;  %v438_v19 = vmul.f32 %v2533_v17, %v2696_v49  ;;  %v1238_v49 = vpop.permute.xlu0 %1237 }
 0x158   : > { %v462_v22 = vadd.f32 %v2443_v51, %v448_v38  ;;  %v2784_v24 = vpop.permute.xlu1 %1251 }
 0x159   : > { %2486 = vmatprep.mubr.msk.f32.mxu1 %vm333_vm0, %v465_v18  ;;  %v452_v23 = vmul.f32 %v2442_v45, %v438_v19 }
 0x15a   : > { %2481 = vmatmul.mubr.msk.f32.gmra.mrb[2].mxu0 %vm333_vm0, %v462_v22 }
 0x15b   : > { %v466_v39 = vadd.f32 %v2443_v51, %v452_v23  ;;  %v1266_v41 = vpop.permute.xlu0 %1265 }
 0x15c   : > { %v2786_v25 = vpop.permute.xlu1 %1258 }
 0x15d   : > { %2487 = vmatmul.mubr.msk.f32.gmra.mrb[2].mxu1 %vm333_vm0, %v466_v39 }
 0x160   : > { %v1273_v35 = vpop.permute.xlu1 %1272 }
 0x225   : > { %v2479_v27 = vpop.f32.mrb[0].mxu0 }
 0x226   : > { %v2794_v30 = vadd.f32 %v2479_v27, %v2791_v26  ;;  %v568_v31 = vpop.f32.mrb[1].mxu0 }
 0x227   : > { %v2797_v32 = vadd.f32 %v2791_v26, %v568_v31 }
 0x228   : > { %v1289_v33 = vadd.f32 %v1245_v48, %v2794_v30  ;;  %617 = vrot.lane.b32.xlu1 %v2794_v30, %s2590_s10  ;;  %v2485_v34 = vpop.f32.mrb[0].mxu1 }
 0x229   : > { %v1288_v36 = vadd.f32 %v1238_v49, %v2797_v32  ;;  %v2804_v37 = vadd.f32 %v2485_v34, %v2791_v26  ;;  %615 = vrot.lane.b32.xlu0 %v2797_v32, %s2590_s10  ;;  %v588_v40 = vpop.f32.mrb[1].mxu1 }
 0x22a   : > { %v1304_v42 = vsel %vm1296_vm1, %v1289_v33, -inf  ;;  %v2810_v43 = vadd.f32 %v2791_v26, %v588_v40 }
 0x22b   : > { %v1305_v44 = vrot.slane %v1304_v42, 4  ;;  %v1297_v45 = vsel %vm1296_vm1, %v1288_v36, -inf  ;;  %v1293_v46 = vadd.f32 %v1273_v35, %v2804_v37 }
 0x22c   : > { %v1298_v47 = vrot.slane %v1297_v45, 4  ;;  %625 = vrot.lane.b32.xlu1 %v2804_v37, %s2590_s10  ;;  %v1292_v50 = vadd.f32 %v1266_v41, %v2810_v43 }
 0x22d   : > { %v1306_v51 = vmax.f32 %v1304_v42, %v1305_v44  ;;  %v1332_v52 = vsel %vm1296_vm1, %v1293_v46, -inf  ;;  %623 = vrot.lane.b32.xlu0 %v2810_v43, %s2590_s10  ;;  %v2482_v53 = vpop.f32.mrb[2].mxu0 }
 0x22e   : > { %v1299_v54 = vmax.f32 %v1297_v45, %v1298_v47  ;;  %v1333_v55 = vrot.slane %v1332_v52, 4  ;;  %v1325_v56 = vsel %vm1296_vm1, %v1292_v50, -inf  ;;  %v578_v57 = vpop.f32.mrb[3].mxu0  ;;  %v2830_v18 = vadd.f32 %v2482_v53, %v2791_v26  ;;  %v1280_v47 = vpop.permute.xlu0 %1279 }
 0x22f   : > { %v1307_v58 = vrot.slane %v1306_v51, 2  ;;  %v1326_v20 = vrot.slane %v1325_v56, 4  ;;  %v2848_v40 = vadd.f32 %v2791_v26, %v578_v57 }
 0x230   : > { %v1300_v59 = vrot.slane %v1299_v54, 2  ;;  %v1334_v60 = vmax.f32 %v1332_v52, %v1333_v55  ;;  %641 = vrot.lane.b32.xlu1 %v2794_v30, %s2591_s11  ;;  %v2488_v61 = vpop.f32.mrb[2].mxu1  ;;  %v2838_v31 = vadd.f32 %v2786_v25, %v2830_v18 }
 0x231   : > { %v1308_v62 = vmax.f32 %v1306_v51, %v1307_v58  ;;  %v1327_v4 = vmax.f32 %v1325_v56, %v1326_v20  ;;  %639 = vrot.lane.b32.xlu0 %v2797_v32, %s2591_s11  ;;  %v598_v5 = vpop.f32.mrb[3].mxu1  ;;  %v2841_v34 = vadd.f32 %v2488_v61, %v2791_v26  ;;  %v2861_v44 = vadd.f32 %v2784_v24, %v2848_v40 }
 0x232   : > { %v1301_v6 = vmax.f32 %v1299_v54, %v1300_v59  ;;  %v1335_v7 = vrot.slane %v1334_v60, 2  ;;  %v1318_v25 = vsel %vm1296_vm1, %v2838_v31, -inf  ;;  %v2864_v45 = vadd.f32 %v2791_v26, %v598_v5 }
 0x233   : > { %v1309_v9 = vrot.slane %v1308_v62, 1  ;;  %v1328_v28 = vrot.slane %v1327_v4, 2  ;;  %v1319_v42 = vrot.slane %v1318_v25, 4  ;;  %v1311_v26 = vsel %vm1296_vm1, %v2861_v44, -inf }
 0x234   : > { %v1302_v21 = vrot.slane %v1301_v6, 1  ;;  %v1336_v11 = vmax.f32 %v1334_v60, %v1335_v7  ;;  %649 = vrot.lane.b32.xlu1 %v2804_v37, %s2591_s11  ;;  %v2883_v56 = vadd.f32 %v1280_v47, %v2864_v45  ;;  %v1312_v61 = vrot.slane %v1311_v26, 4 }
 0x235   : > { %v1310_v13 = vmax.f32 %v1308_v62, %v1309_v9  ;;  %v1329_v14 = vmax.f32 %v1327_v4, %v1328_v28  ;;  %647 = vrot.lane.b32.xlu0 %v2810_v43, %s2591_s11  ;;  %v1320_v52 = vmax.f32 %v1318_v25, %v1319_v42 }
 0x236   : > { %v1303_v16 = vmax.f32 %v1301_v6, %v1302_v21  ;;  %v1337_v29 = vrot.slane %v1336_v11, 1  ;;  %v1339_v21 = vsel %vm1296_vm1, %v2883_v56, -inf }
 0x237   : > { %v1354_v17 = vsub.f32 %v1289_v33, %v1310_v13  ;;  %v1330_v38 = vrot.slane %v1329_v14, 1  ;;  %v1321_v6 = vrot.slane %v1320_v52, 2 }
 0x238   : > { %v1353_v19 = vsub.f32 %v1288_v36, %v1303_v16  ;;  %v1338_v22 = vmax.f32 %v1336_v11, %v1337_v29  ;;  %665 = vrot.lane.b32.xlu1 %v2794_v30, %s2592_s12  ;;  %v1287_v36 = vpop.permute.xlu1 %1286  ;;  %v1313_v29 = vmax.f32 %v1311_v26, %v1312_v61 }
 0x239   : > { %v1363_v23 = vmul.f32 1.442695, %v1354_v17  ;;  %v1331_v39 = vmax.f32 %v1329_v14, %v1330_v38  ;;  %663 = vrot.lane.b32.xlu0 %v2797_v32, %s2592_s12  ;;  %v2853_v41 = vadd.f32 %v1287_v36, %v2841_v34 }
 0x23a   : > { %v1361_v48 = vmul.f32 1.442695, %v1353_v19  ;;  %v1358_v49 = vsub.f32 %v1293_v46, %v1338_v22  ;;  %v1322_v19 = vmax.f32 %v1320_v52, %v1321_v6  ;;  %v1340_v22 = vrot.slane %v1339_v21, 4 }
 0x23b   : > { %2534 = vpow2.f32 %v1363_v23  ;;  %v1357_v27 = vsub.f32 %v1292_v50, %v1331_v39  ;;  %v1346_v46 = vsel %vm1296_vm1, %v2853_v41, -inf  ;;  %v1314_v42 = vrot.slane %v1313_v29, 2 }
 0x23c   : > { %2536 = vpow2.f32 %v1361_v48  ;;  %v1371_v33 = vmul.f32 1.442695, %v1358_v49  ;;  %673 = vrot.lane.b32.xlu1 %v2804_v37, %s2592_s12  ;;  %v1347_v55 = vrot.slane %v1346_v46, 4  ;;  %v1323_v25 = vrot.slane %v1322_v19, 1 }
 0x23d   : > { %v1369_v35 = vmul.f32 1.442695, %v1357_v27  ;;  %671 = vrot.lane.b32.xlu0 %v2810_v43, %s2592_s12 }
 0x23e   : > { %2538 = vpow2.f32 %v1371_v33  ;;  %v1348_v28 = vmax.f32 %v1346_v46, %v1347_v55  ;;  %v1341_v46 = vmax.f32 %v1339_v21, %v1340_v22 }
 0x23f   : > { %2540 = vpow2.f32 %v1369_v35 }
 0x240   : > { %621 = vrot.lane.b32.xlu1 %v2830_v18, %s2590_s10  ;;  %v1349_v48 = vrot.slane %v1348_v28, 2 }
 0x241   : > { %619 = vrot.lane.b32.xlu0 %v2848_v40, %s2590_s10 }
 0x242   : > { %v1350_v52 = vmax.f32 %v1348_v28, %v1349_v48 }
 0x244   : > { %629 = vrot.lane.b32.xlu1 %v2841_v34, %s2590_s10 }
 0x245   : > { %v2870_v50 = vpop.eup %2534  ;;  %627 = vrot.lane.b32.xlu0 %v2864_v45, %s2590_s10 }
 0x246   : > { %v2874_v51 = vpop.eup %2536  ;;  %v1384_v24 = vsel %vm1296_vm1, %v2870_v50, 0.0 }
 0x247   : > { %v1385_v53 = vrot.slane %v1384_v24, 4  ;;  %v1377_v54 = vsel %vm1296_vm1, %v2874_v51, 0.0 }
 0x248   : > { %v2885_v57 = vpop.eup %2538  ;;  %v1378_v58 = vrot.slane %v1377_v54, 4  ;;  %645 = vrot.lane.b32.xlu1 %v2830_v18, %s2591_s11 }
 0x249   : > { %v2889_v20 = vpop.eup %2540  ;;  %v1386_v59 = vadd.f32 %v1385_v53, %v1384_v24  ;;  %v1412_v60 = vsel %vm1296_vm1, %v2885_v57, 0.0  ;;  %643 = vrot.lane.b32.xlu0 %v2848_v40, %s2591_s11  ;;  %v1324_v53 = vmax.f32 %v1322_v19, %v1323_v25 }
 0x24a   : > { %v1379_v62 = vadd.f32 %v1378_v58, %v1377_v54  ;;  %v1413_v4 = vrot.slane %v1412_v60, 4  ;;  %v1405_v5 = vsel %vm1296_vm1, %v2889_v20, 0.0  ;;  %v1315_v54 = vmax.f32 %v1313_v29, %v1314_v42 }
 0x24b   : > { %v1387_v7 = vrot.slane %v1386_v59, 2  ;;  %v1406_v9 = vrot.slane %v1405_v5, 4  ;;  %v1351_v58 = vrot.slane %v1350_v52, 1 }
 0x24c   : > { %v1380_v11 = vrot.slane %v1379_v62, 2  ;;  %v1414_v13 = vadd.f32 %v1413_v4, %v1412_v60  ;;  %653 = vrot.lane.b32.xlu1 %v2841_v34, %s2591_s11  ;;  %v1356_v60 = vsub.f32 %v2838_v31, %v1324_v53  ;;  %v1316_v61 = vrot.slane %v1315_v54, 1 }
 0x24d   : > { %v1388_v14 = vadd.f32 %v1387_v7, %v1386_v59  ;;  %v1407_v16 = vadd.f32 %v1406_v9, %v1405_v5  ;;  %651 = vrot.lane.b32.xlu0 %v2864_v45, %s2591_s11  ;;  %v1342_v59 = vrot.slane %v1341_v46, 2 }
 0x24e   : > { %v1381_v17 = vadd.f32 %v1380_v11, %v1379_v62  ;;  %v1415_v38 = vrot.slane %v1414_v13, 2  ;;  %v1352_v62 = vmax.f32 %v1350_v52, %v1351_v58  ;;  %v1367_v7 = vmul.f32 1.442695, %v1356_v60 }
 0x24f   : > { %v1389_v23 = vrot.slane %v1388_v14, 1  ;;  %v1408_v39 = vrot.slane %v1407_v16, 2  ;;  %v1343_v4 = vmax.f32 %v1341_v46, %v1342_v59  ;;  %v1317_v9 = vmax.f32 %v1315_v54, %v1316_v61 }
 0x250   : > { %v1382_v49 = vrot.slane %v1381_v17, 1  ;;  %v1416_v27 = vadd.f32 %v1415_v38, %v1414_v13  ;;  %669 = vrot.lane.b32.xlu1 %v2830_v18, %s2592_s12  ;;  %v1360_v28 = vsub.f32 %v2853_v41, %v1352_v62 }
 0x251   : > { %v1390_v33 = vadd.f32 %v1389_v23, %v1388_v14  ;;  %v1409_v35 = vadd.f32 %v1408_v39, %v1407_v16  ;;  %667 = vrot.lane.b32.xlu0 %v2848_v40, %s2592_s12  ;;  %v1344_v21 = vrot.slane %v1343_v4, 1 }
 0x252   : > { %v1417_v36 = vrot.slane %v1416_v27, 1  ;;  %v1383_v47 = vadd.f32 %v1382_v49, %v1381_v17  ;;  %v1375_v29 = vmul.f32 1.442695, %v1360_v28 }
 0x253   : > { %2542 = vrcp.f32 %v1390_v33  ;;  %v1410_v24 = vrot.slane %v1409_v35, 1  ;;  %v1345_v17 = vmax.f32 %v1343_v4, %v1344_v21 }
 0x254   : > { %v1418_v26 = vadd.f32 %v1417_v36, %v1416_v27  ;;  %677 = vrot.lane.b32.xlu1 %v2841_v34, %s2592_s12 }
 0x255   : > { %675 = vrot.lane.b32.xlu0 %v2864_v45, %s2592_s12  ;;  %v1411_v55 = vadd.f32 %v1410_v24, %v1409_v35 }
 0x256   : > { %2544 = vrcp.f32 %v1418_v26 }
 0x257   : > { %2546 = vrcp.f32 %v1383_v47 }
 0x258   : > { %2548 = vrcp.f32 %v1411_v55 }
 0x259   : > { %2550 = vpow2.f32 %v1367_v7 }
 0x25a   : > { %2552 = vpow2.f32 %v1375_v29 }
 0x25d   : > { %v2543_v5 = vpop.eup %2542 }
 0x25e   : > { %v2913_v6 = vmul.f32 %v2543_v5, %v2870_v50  ;;  %v1355_v50 = vsub.f32 %v2861_v44, %v1317_v9  ;;  %v1359_v44 = vsub.f32 %v2883_v56, %v1345_v17 }
 0x260   : > { %v2545_v11 = vpop.eup %2544  ;;  %v1524_v13 = vrot.slane %v2913_v6, %v2726_v0  ;;  %v1516_v31 = vrot.slane %v2913_v6, %v2729_v1  ;;  %v1532_v39 = vrot.slane %v2913_v6, %v2737_v2  ;;  %v1540_v33 = vrot.slane %v2913_v6, %v2746_v8 }
 0x261   : > { %v2547_v14 = vpop.eup %2546  ;;  %v2921_v16 = vmul.f32 %v2545_v11, %v2885_v57  ;;  %v1365_v57 = vmul.f32 1.442695, %v1355_v50  ;;  %v1548_v54 = vrot.slane %v2913_v6, %v2740_v3  ;;  %v1556_v11 = vrot.slane %v2913_v6, %v2754_v12 }
 0x262   : > { %1527 = vbcast.lane.b32.xlu1 %v1524_v13, 288  ;;  %1519 = vbcast.lane.b32.xlu0 %v1516_v31, 288  ;;  %v2929_v19 = vmul.f32 %v2547_v14, %v2874_v51  ;;  %v2549_v22 = vpop.eup %2548  ;;  %v1373_v51 = vmul.f32 1.442695, %v1359_v44 }
 0x263   : > { %v1780_v41 = vrot.slane %v2921_v16, %v2726_v0  ;;  %v1772_v38 = vrot.slane %v2921_v16, %v2729_v1  ;;  %v2933_v23 = vmul.f32 %v2549_v22, %v2889_v20  ;;  %2554 = vpow2.f32 %v1365_v57  ;;  %v2939_v49 = vpop.eup %2550 }
 0x264   : > { %v1452_v48 = vrot.slane %v2929_v19, %v2729_v1  ;;  %v1788_v27 = vrot.slane %v2921_v16, %v2737_v2  ;;  %2556 = vpow2.f32 %v1373_v51  ;;  %v1398_v20 = vsel %vm1296_vm1, %v2939_v49, 0.0  ;;  %v2951_v36 = vpop.eup %2552 }
 0x265   : > { %v1708_v56 = vrot.slane %v2933_v23, %v2729_v1  ;;  %v1468_v35 = vrot.slane %v2929_v19, %v2737_v2  ;;  %v1399_v25 = vrot.slane %v1398_v20, 4  ;;  %v1426_v42 = vsel %vm1296_vm1, %v2951_v36, 0.0 }
 0x266   : > { %1783 = vbcast.lane.b32.xlu1 %v1780_v41, 288  ;;  %1775 = vbcast.lane.b32.xlu0 %v1772_v38, 288  ;;  %v1796_v46 = vrot.slane %v2921_v16, %v2746_v8  ;;  %v1724_v47 = vrot.slane %v2933_v23, %v2737_v2  ;;  %v1427_v26 = vrot.slane %v1426_v42, 4  ;;  %v1476_v55 = vrot.slane %v2929_v19, %v2746_v8 }
 0x267   : > { %v1400_v52 = vadd.f32 %v1399_v25, %v1398_v20  ;;  %v1804_v4 = vrot.slane %v2921_v16, %v2740_v3  ;;  %v1732_v5 = vrot.slane %v2933_v23, %v2746_v8  ;;  %v1484_v13 = vrot.slane %v2929_v19, %v2740_v3 }
 0x268   : > { %v1428_v61 = vadd.f32 %v1427_v26, %v1426_v42  ;;  %v1812_v17 = vrot.slane %v2921_v16, %v2754_v12  ;;  %v1740_v41 = vrot.slane %v2933_v23, %v2740_v3  ;;  %v1820_v20 = vrot.slane %v2921_v16, %v2750_v10 }
 0x269   : > { %v1401_v59 = vrot.slane %v1400_v52, 2  ;;  %v1572_v42 = vrot.slane %v2913_v6, %v2759_v15  ;;  %v1756_v26 = vrot.slane %v2933_v23, %v2750_v10 }
 0x26a   : > { %1535 = vbcast.lane.b32.xlu1 %v1532_v39, 288  ;;  %1455 = vbcast.lane.b32.xlu0 %v1452_v48, 288  ;;  %v1429_v28 = vrot.slane %v1428_v61, 2  ;;  %v1564_v39 = vrot.slane %v2913_v6, %v2750_v10  ;;  %v1492_v48 = vrot.slane %v2929_v19, %v2754_v12  ;;  %v1716_v6 = vrot.slane %v2933_v23, %v2726_v0 }
 0x26b   : > { %v1402_v7 = vadd.f32 %v1401_v59, %v1400_v52  ;;  %v1460_v52 = vrot.slane %v2929_v19, %v2726_v0 }
 0x26c   : > { %v1430_v50 = vadd.f32 %v1429_v28, %v1428_v61 }
 0x26d   : > { %v2959_v24 = vpop.eup %2554  ;;  %v1403_v31 = vrot.slane %v1402_v7, 1 }
 0x26e   : > { %1791 = vbcast.lane.b32.xlu1 %v1788_v27, 288  ;;  %1711 = vbcast.lane.b32.xlu0 %v1708_v56, 288  ;;  %v1391_v53 = vsel %vm1296_vm1, %v2959_v24, 0.0  ;;  %v2967_v58 = vpop.eup %2556  ;;  %v1431_v57 = vrot.slane %v1430_v50, 1 }
 0x26f   : > { %v1392_v60 = vrot.slane %v1391_v53, 4  ;;  %v1419_v62 = vsel %vm1296_vm1, %v2967_v58, 0.0  ;;  %v1404_v38 = vadd.f32 %v1403_v31, %v1402_v7 }
 0x270   : > { %v1420_v21 = vrot.slane %v1419_v62, 4  ;;  %v1432_v27 = vadd.f32 %v1431_v57, %v1430_v50 }
 0x271   : > { %v1393_v9 = vadd.f32 %v1392_v60, %v1391_v53  ;;  %2558 = vrcp.f32 %v1404_v38 }
 0x272   : > { %1543 = vbcast.lane.b32.xlu1 %v1540_v33, 288  ;;  %1471 = vbcast.lane.b32.xlu0 %v1468_v35, 288  ;;  %v1421_v29 = vadd.f32 %v1420_v21, %v1419_v62  ;;  %v1748_v33 = vrot.slane %v2933_v23, %v2754_v12  ;;  %2560 = vrcp.f32 %v1432_v27  ;;  %v1764_v27 = vrot.slane %v2933_v23, %v2759_v15 }
 0x273   : > { %v1394_v14 = vrot.slane %v1393_v9, 2 }
 0x274   : > { %v1422_v44 = vrot.slane %v1421_v29, 2 }
 0x275   : > { %v1395_v22 = vadd.f32 %v1394_v14, %v1393_v9 }
 0x276   : > { %1799 = vbcast.lane.b32.xlu1 %v1796_v46, 288  ;;  %1727 = vbcast.lane.b32.xlu0 %v1724_v47, 288  ;;  %v1423_v56 = vadd.f32 %v1422_v44, %v1421_v29  ;;  %v1500_v46 = vrot.slane %v2929_v19, %v2750_v10  ;;  %v2593_v29 = vmov 1983009808  }
 0x277   : > { %v1396_v51 = vrot.slane %v1395_v22, 1 }
 0x278   : > { %v1424_v25 = vrot.slane %v1423_v56, 1 }
 0x279   : > { %v1397_v35 = vadd.f32 %v1396_v51, %v1395_v22  ;;  %v2594_v22 = vmov 1934713408  }
 0x27a   : > { %1551 = vbcast.lane.b32.xlu1 %v1548_v54, 288  ;;  %1479 = vbcast.lane.b32.xlu0 %v1476_v55, 288  ;;  %v1425_v47 = vadd.f32 %v1424_v25, %v1423_v56  ;;  %v1508_v55 = vrot.slane %v2929_v19, %v2759_v15  ;;  %v722_v57 = vunpack.c.l.s4 %v2594_v22 }
 0x27b   : > { %2562 = vrcp.f32 %v1397_v35  ;;  %v2559_v53 = vpop.eup %2558 }
 0x27c   : > { %2564 = vrcp.f32 %v1425_v47  ;;  %v3000_v54 = vmul.f32 %v2559_v53, %v2939_v49  ;;  %v2561_v59 = vpop.eup %2560 }
 0x27d   : > { %v3011_v62 = vmul.f32 %v2561_v59, %v2951_v36 }
 0x27e   : > { %1807 = vbcast.lane.b32.xlu1 %v1804_v4, 288  ;;  %1735 = vbcast.lane.b32.xlu0 %v1732_v5, 288  ;;  %v1652_v49 = vrot.slane %v3000_v54, %v2726_v0  ;;  %v1644_v4 = vrot.slane %v3000_v54, %v2729_v1  ;;  %v1668_v51 = vrot.slane %v3000_v54, %v2746_v8 }
 0x27f   : > { %v1908_v28 = vrot.slane %v3011_v62, %v2726_v0  ;;  %v1900_v36 = vrot.slane %v3011_v62, %v2729_v1  ;;  %v1916_v38 = vrot.slane %v3011_v62, %v2737_v2  ;;  %v1924_v47 = vrot.slane %v3011_v62, %v2746_v8 }
 0x282   : > { %1559 = vbcast.lane.b32.xlu1 %v1556_v11, 288  ;;  %1487 = vbcast.lane.b32.xlu0 %v1484_v13, 288 }
 0x285   : > { %v2563_v5 = vpop.eup %2562 }
 0x286   : > { %1815 = vbcast.lane.b32.xlu1 %v1812_v17, 288  ;;  %1743 = vbcast.lane.b32.xlu0 %v1740_v41, 288  ;;  %v3020_v9 = vmul.f32 %v2563_v5, %v2959_v24  ;;  %v2565_v21 = vpop.eup %2564  ;;  %v1660_v24 = vrot.slane %v3000_v54, %v2737_v2  ;;  %v690_v17 = vunpack.c.l.s4 %v2593_v29  ;;  %v1676_v5 = vrot.slane %v3000_v54, %v2740_v3 }
 0x287   : > { %v3031_v31 = vmul.f32 %v2565_v21, %v2967_v58 }
 0x288   : > { %v1580_v14 = vrot.slane %v3020_v9, %v2729_v1  ;;  %v1596_v23 = vrot.slane %v3020_v9, %v2737_v2 }
 0x289   : > { %v1836_v58 = vrot.slane %v3031_v31, %v2729_v1 }
 0x28a   : > { %1567 = vbcast.lane.b32.xlu1 %v1564_v39, 288  ;;  %1495 = vbcast.lane.b32.xlu0 %v1492_v48, 288  ;;  %v691_v39 = vunpack.c.0.s8 %v690_v17  ;;  %v1932_v17 = vrot.slane %v3011_v62, %v2740_v3 }
 0x28c   : > { %v3053_v1 = vsub.s32 %v691_v39, %v2722_v63 }
 0x28e   : > { %1823 = vbcast.lane.b32.xlu1 %v1820_v20, 288  ;;  %1751 = vbcast.lane.b32.xlu0 %v1748_v33, 288  ;;  %v723_v20 = vunpack.c.0.s8 %v722_v57 }
 0x292   : > { %1575 = vbcast.lane.b32.xlu1 %v1572_v42, 288  ;;  %1503 = vbcast.lane.b32.xlu0 %v1500_v46, 288 }
 0x296   : > { %1463 = vbcast.lane.b32.xlu1 %v1460_v52, 288  ;;  %1759 = vbcast.lane.b32.xlu0 %v1756_v26, 288 }
 0x29a   : > { %v3006_v60 = vpop.permute.xlu1 %617  ;;  %1719 = vbcast.lane.b32.xlu1 %v1716_v6, 288  ;;  %1511 = vbcast.lane.b32.xlu0 %v1508_v55, 288 }
 0x29b   : > { %v3008_v61 = vpop.permute.xlu0 %615 }
 0x29e   : > { %v626_v7 = vpop.permute.xlu1 %625  ;;  %1655 = vbcast.lane.b32.xlu1 %v1652_v49, 288  ;;  %1647 = vbcast.lane.b32.xlu0 %v1644_v4, 288 }
 0x29f   : > { %v3017_v19 = vpop.permute.xlu0 %623 }
 0x2a2   : > { %v3026_v11 = vpop.permute.xlu1 %641  ;;  %1911 = vbcast.lane.b32.xlu1 %v1908_v28, 288  ;;  %1903 = vbcast.lane.b32.xlu0 %v1900_v36, 288 }
 0x2a3   : > { %v3028_v13 = vpop.permute.xlu0 %639 }
 0x2a6   : > { %v650_v50 = vpop.permute.xlu1 %649  ;;  %1663 = vbcast.lane.b32.xlu1 %v1660_v24, 288  ;;  %1583 = vbcast.lane.b32.xlu0 %v1580_v14, 288  ;;  %v3630_v14 = vmov 0.0  }
 0x2a7   : > { %v3037_v41 = vpop.permute.xlu0 %647  ;;  %v1027_v56 = vcombine.low %v2804_v37, %v650_v50  ;;  %v1028_v35 = vcombine.high %v2804_v37, %v650_v50  ;;  %v3068_v37 = vsub.s32 %v723_v20, %v2722_v63  ;;  %v1940_v20 = vrot.slane %v3011_v62, %v2754_v12 }
 0x2a9   : > { %v1035_v52 = vrot.slane %v1027_v56, %v3053_v1  ;;  %v1042_v55 = vrot.slane %v1028_v35, %v3053_v1 }
 0x2aa   : > { %v3043_v44 = vpop.permute.xlu1 %665  ;;  %1919 = vbcast.lane.b32.xlu1 %v1916_v38, 288  ;;  %1839 = vbcast.lane.b32.xlu0 %v1836_v58, 288  ;;  %v1604_v38 = vrot.slane %v3020_v9, %v2746_v8 }
 0x2ab   : > { %v3045_v48 = vpop.permute.xlu0 %663 }
 0x2ae   : > { %v674_v33 = vpop.permute.xlu1 %673  ;;  %1671 = vbcast.lane.b32.xlu1 %v1668_v51, 288  ;;  %1767 = vbcast.lane.b32.xlu0 %v1764_v27, 288  ;;  %v1684_v51 = vrot.slane %v3000_v54, %v2754_v12  ;;  %v1860_v27 = vrot.slane %v3031_v31, %v2746_v8  ;;  %v1948_v8 = vrot.slane %v3011_v62, %v2750_v10 }
 0x2af   : > { %v1043_v25 = vcombine.low %v626_v7, %v674_v33  ;;  %v1044_v42 = vcombine.high %v626_v7, %v674_v33  ;;  %v3056_v46 = vpop.permute.xlu0 %671  ;;  %v1852_v7 = vrot.slane %v3031_v31, %v2737_v2  ;;  %v1612_v33 = vrot.slane %v3020_v9, %v2740_v3 }
 0x2b1   : > { %v1051_v26 = vrot.slane %v1043_v25, %v3053_v1  ;;  %v1058_v53 = vrot.slane %v1044_v42, %v3053_v1  ;;  %v1692_v42 = vrot.slane %v3000_v54, %v2750_v10 }
 0x2b2   : > { %v3065_v6 = vpop.permute.xlu1 %621  ;;  %1927 = vbcast.lane.b32.xlu1 %v1924_v47, 288  ;;  %1599 = vbcast.lane.b32.xlu0 %v1596_v23, 288 }
 0x2b3   : > { %v1059_v59 = vcombine.low %v1035_v52, %v1051_v26  ;;  %v3071_v49 = vpop.permute.xlu0 %619  ;;  %v1060_v4 = vcombine.high %v1035_v52, %v1051_v26  ;;  %v1075_v63 = vcombine.low %v1042_v55, %v1058_v53  ;;  %v1076_v22 = vcombine.high %v1042_v55, %v1058_v53 }
 0x2b4   : > { %v1868_v26 = vrot.slane %v3031_v31, %v2740_v3  ;;  %v1620_v53 = vrot.slane %v3020_v9, %v2754_v12 }
 0x2b5   : > { %v3078_v28 = vrot.slane %v1059_v59, %v3068_v37  ;;  %v3081_v36 = vrot.slane %v1060_v4, %v3068_v37  ;;  %v3096_v29 = vrot.slane %v1075_v63, %v3068_v37  ;;  %v3111_v56 = vrot.slane %v1076_v22, %v3068_v37 }
 0x2b6   : > { %v3083_v21 = vpop.permute.xlu1 %629  ;;  %1679 = vbcast.lane.b32.xlu1 %v1676_v5, 288  ;;  %1855 = vbcast.lane.b32.xlu0 %v1852_v7, 288  ;;  %v1588_v4 = vrot.slane %v3020_v9, %v2726_v0  ;;  %v1876_v63 = vrot.slane %v3031_v31, %v2754_v12 }
 0x2b7   : > { %v3085_v24 = vpop.permute.xlu0 %627  ;;  %v3089_v50 = vcombine.high %v3078_v28, %v3630_v14  ;;  %v3093_v2 = vcombine.high %v3081_v36, %v3630_v14  ;;  %v3104_v58 = vcombine.high %v3096_v29, %v3630_v14  ;;  %v3134_v5 = vcombine.high %v3111_v56, %v3630_v14 }
 0x2b9   : > { %3638 = vst [vmem:[#allocation2_spill] sm:$0xff] %v3134_v5 }
 0x2ba   : > { %v646_v57 = vpop.permute.xlu1 %645  ;;  %1935 = vbcast.lane.b32.xlu1 %v1932_v17, 288  ;;  %1607 = vbcast.lane.b32.xlu0 %v1604_v38, 288  ;;  %v1844_v38 = vrot.slane %v3031_v31, %v2726_v0 }
 0x2bb   : > { %v644_v39 = vpop.permute.xlu0 %643  ;;  %v891_v35 = vcombine.low %v2830_v18, %v646_v57  ;;  %v892_v47 = vcombine.high %v2830_v18, %v646_v57 }
 0x2bc   : > { %v823_v23 = vcombine.low %v2848_v40, %v644_v39  ;;  %v824_v55 = vcombine.high %v2848_v40, %v644_v39 }
 0x2bd   : > { %v899_v40 = vrot.slane %v891_v35, %v3053_v1 }
 0x2be   : > { %v654_v25 = vpop.permute.xlu1 %653  ;;  %1687 = vbcast.lane.b32.xlu1 %v1684_v51, 288  ;;  %1863 = vbcast.lane.b32.xlu0 %v1860_v27, 288  ;;  %v831_v57 = vrot.slane %v823_v23, %v3053_v1  ;;  %v3153_v51 = vrot.slane %v824_v55, %v3053_v1 }
 0x2bf   : > { %v652_v52 = vpop.permute.xlu0 %651  ;;  %v1163_v59 = vcombine.low %v2841_v34, %v654_v25  ;;  %v1164_v18 = vcombine.high %v2841_v34, %v654_v25  ;;  %v3147_v34 = vrot.slane %v892_v47, %v3053_v1 }
 0x2c0   : > { %v1095_v7 = vcombine.low %v2864_v45, %v652_v52  ;;  %v1096_v3 = vcombine.high %v2864_v45, %v652_v52 }
 0x2c1   : > { %v1171_v27 = vrot.slane %v1163_v59, %v3053_v1  ;;  %v3159_v35 = vrot.slane %v1164_v18, %v3053_v1 }
 0x2c2   : > { %v670_v17 = vpop.permute.xlu1 %669  ;;  %1943 = vbcast.lane.b32.xlu1 %v1940_v20, 288  ;;  %1615 = vbcast.lane.b32.xlu0 %v1612_v33, 288  ;;  %v1103_v25 = vrot.slane %v1095_v7, %v3053_v1  ;;  %v3163_v47 = vrot.slane %v1096_v3, %v3053_v1 }
 0x2c3   : > { %v907_v45 = vcombine.low %v3065_v6, %v670_v17  ;;  %v908_v12 = vcombine.high %v3065_v6, %v670_v17  ;;  %v668_v39 = vpop.permute.xlu0 %667 }
 0x2c4   : > { %v839_v20 = vcombine.low %v3071_v49, %v668_v39  ;;  %v840_v33 = vcombine.high %v3071_v49, %v668_v39 }
 0x2c5   : > { %v915_v6 = vrot.slane %v907_v45, %v3053_v1  ;;  %v922_v23 = vrot.slane %v908_v12, %v3053_v1 }
 0x2c6   : > { %v847_v52 = vrot.slane %v839_v20, %v3053_v1  ;;  %v3169_v55 = vrot.slane %v840_v33, %v3053_v1  ;;  %v678_v59 = vpop.permute.xlu1 %677  ;;  %1695 = vbcast.lane.b32.xlu1 %v1692_v42, 288  ;;  %1871 = vbcast.lane.b32.xlu0 %v1868_v26, 288 }
 0x2c7   : > { %v923_v49 = vcombine.low %v899_v40, %v915_v6  ;;  %v1179_v18 = vcombine.low %v3083_v21, %v678_v59  ;;  %v1180_v7 = vcombine.high %v3083_v21, %v678_v59  ;;  %v676_v17 = vpop.permute.xlu0 %675  ;;  %v924_v3 = vcombine.high %v899_v40, %v915_v6 }
 0x2c8   : > { %v1111_v39 = vcombine.low %v3085_v24, %v676_v17  ;;  %v1112_v45 = vcombine.high %v3085_v24, %v676_v17  ;;  %v855_v12 = vcombine.low %v831_v57, %v847_v52  ;;  %v856_v22 = vcombine.high %v831_v57, %v847_v52 }
 0x2c9   : > { %v1187_v20 = vrot.slane %v1179_v18, %v3053_v1  ;;  %v1194_v33 = vrot.slane %v1180_v7, %v3053_v1  ;;  %v3178_v42 = vrot.slane %v923_v49, %v3068_v37  ;;  %v3181_v26 = vrot.slane %v924_v3, %v3068_v37 }
 0x2ca   : > { %v1119_v21 = vrot.slane %v1111_v39, %v3053_v1  ;;  %v1126_v40 = vrot.slane %v1112_v45, %v3053_v1  ;;  %1951 = vbcast.lane.b32.xlu1 %v1948_v8, 288  ;;  %1623 = vbcast.lane.b32.xlu0 %v1620_v53, 288  ;;  %v3186_v24 = vrot.slane %v855_v12, %v3068_v37 }
 0x2cb   : > { %v1195_v57 = vcombine.low %v1171_v27, %v1187_v20  ;;  %v3190_v6 = vcombine.high %v3178_v42, %v3630_v14  ;;  %v1196_v52 = vcombine.high %v1171_v27, %v1187_v20  ;;  %v3194_v59 = vcombine.high %v3181_v26, %v3630_v14 }
 0x2cc   : > { %v1127_v49 = vcombine.low %v1103_v25, %v1119_v21  ;;  %v3197_v18 = vrot.slane %v856_v22, %v3068_v37  ;;  %v939_v8 = vcombine.low %v3147_v34, %v922_v23  ;;  %v1128_v53 = vcombine.high %v1103_v25, %v1119_v21 }
 0x2cd   : > { %v3201_v7 = vrot.slane %v1195_v57, %v3068_v37  ;;  %v3204_v17 = vrot.slane %v1196_v52, %v3068_v37  ;;  %v1211_v3 = vcombine.low %v3159_v35, %v1194_v33  ;;  %v871_v27 = vcombine.low %v3153_v51, %v3169_v55 }
 0x2ce   : > { %1591 = vbcast.lane.b32.xlu1 %v1588_v4, 288  ;;  %1879 = vbcast.lane.b32.xlu0 %v1876_v63, 288  ;;  %v3210_v39 = vrot.slane %v1127_v49, %v3068_v37  ;;  %v3213_v22 = vrot.slane %v939_v8, %v3068_v37  ;;  %v3216_v25 = vrot.slane %v1128_v53, %v3068_v37 }
 0x2cf   : > { %v3220_v45 = vcombine.high %v3201_v7, %v3630_v14  ;;  %v3224_v12 = vcombine.high %v3204_v17, %v3630_v14  ;;  %v3227_v4 = vrot.slane %v1211_v3, %v3068_v37  ;;  %v3231_v63 = vcombine.high %v3197_v18, %v3630_v14 }
 0x2d0   : > { %3639 = vst [vmem:[#allocation3_spill] sm:$0xff] %v3210_v39  ;;  %3640 = vst [vmem:[#allocation4_spill] sm:$0xff] %v3216_v25  ;;  %v3235_v20 = vcombine.high %v3213_v22, %v3630_v14  ;;  %v3239_v21 = vcombine.high %v3216_v25, %v3630_v14  ;;  %v3242_v57 = vrot.slane %v871_v27, %v3068_v37 }
 0x2d1   : > { %3641 = vst [vmem:[#allocation5_spill] sm:$0xff] %v3231_v63  ;;  %v940_v52 = vcombine.high %v3147_v34, %v922_v23  ;;  %v3247_v49 = vcombine.high %v3227_v4, %v3630_v14  ;;  %v1143_v8 = vcombine.low %v3163_v47, %v1126_v40  ;;  %v1212_v53 = vcombine.high %v3159_v35, %v1194_v33 }
 0x2d2   : > { %3642 = vst [vmem:[#allocation6_spill] sm:$0xff] %v3239_v21  ;;  %3643 = vst [vmem:[#allocation7_spill] sm:$0xff] %v3242_v57  ;;  %v3253_v3 = vcombine.high %v3186_v24, %v3630_v14  ;;  %1847 = vbcast.lane.b32.xlu1 %v1844_v38, 288  ;;  %v3644_v27 = vrot.slane %v3020_v9, %v2750_v10  ;;  %v3266_v23 = vcombine.high %v3242_v57, %v3630_v14 }
 0x2d3   : > { %v3262_v34 = vrot.slane %v940_v52, %v3068_v37  ;;  %v3270_v35 = vcombine.high %v3210_v39, %v3630_v14  ;;  %v3273_v33 = vrot.slane %v1143_v8, %v3068_v37  ;;  %v3276_v0 = vrot.slane %v1212_v53, %v3068_v37 }
 0x2d4   : > { %1631 = vbcast.lane.b32.xlu0 %v3644_v27, 288  ;;  %3645 = vst [vmem:[#allocation8_spill] sm:$0xff] %v3266_v23  ;;  %v872_v38 = vcombine.high %v3153_v51, %v3169_v55  ;;  %v1144_v52 = vcombine.high %v3163_v47, %v1126_v40  ;;  %v3281_v27 = vpop.permute.xlu1 %1527  ;;  %v3283_v5 = vpop.permute.xlu0 %1519  ;;  %v1700_v23 = vrot.slane %v3000_v54, %v2759_v15  ;;  %v3648_v8 = vmov 0.0  }
 0x2d5   : > { %3646 = vst [vmem:[#allocation9_spill] sm:$0xff] %v3270_v35  ;;  %3647 = vst [vmem:[#allocation10_spill] sm:$0xff] %v3273_v33  ;;  %v1884_v14 = vrot.slane %v3031_v31, %v2750_v10  ;;  %v3291_v21 = vcombine.high %v3262_v34, %v3648_v8  ;;  %v3295_v53 = vcombine.high %v3273_v33, %v3648_v8 }
 0x2d6   : > { %v3298_v51 = vrot.slane %v872_v38, %v3068_v37  ;;  %1703 = vbcast.lane.b32.xlu1 %v1700_v23, 288  ;;  %v3301_v47 = vrot.slane %v1144_v52, %v3068_v37  ;;  %v3305_v54 = vcombine.high %v3276_v0, %v3648_v8  ;;  %v1636_v23 = vrot.slane %v3020_v9, %v2759_v15 }
 0x2d7   : > { %3649 = vst [vmem:[#allocation11_spill] sm:$0xff] %v3291_v21  ;;  %3650 = vst [vmem:[#allocation12_spill] sm:$0xff] %v3295_v53  ;;  %v1828_v53 = vrot.slane %v2921_v16, %v2759_v15  ;;  %v1956_v9 = vrot.slane %v3011_v62, %v2759_v15  ;;  %v755_v62 = vcombine.low %v2794_v30, %v3026_v11 }
 0x2d8   : > { %3651 = vst [vmem:[#allocation13_spill] sm:$0xff] %v3298_v51  ;;  %1887 = vbcast.lane.b32.xlu0 %v1884_v14, 288  ;;  %3652 = vst [vmem:[#allocation14_spill] sm:$0xff] %v3301_v47  ;;  %v3309_v10 = vcombine.high %v3298_v51, %v3648_v8  ;;  %v1784_v55 = vpop.permute.xlu1 %1783  ;;  %v1776_v40 = vpop.permute.xlu0 %1775  ;;  %v3317_v14 = vcombine.high %v3301_v47, %v3648_v8 }
 0x2d9   : > { %3653 = vst [vmem:[#allocation15_spill] sm:$0xff] %v3305_v54  ;;  %v2002_v38 = vmul.f32 %v1784_v55, %v3089_v50  ;;  %v2001_v52 = vmul.f32 %v1776_v40, %v3078_v28  ;;  %v771_v55 = vcombine.low %v3006_v60, %v3043_v44 }
 0x2da   : > { %3654 = vst [vmem:[#allocation16_spill] sm:$0xff] %v3309_v10  ;;  %3655 = vst [vmem:[#allocation17_spill] sm:$0xff] %v3317_v14  ;;  %1831 = vbcast.lane.b32.xlu1 %v1828_v53, 288  ;;  %v1892_v14 = vrot.slane %v3031_v31, %v2759_v15 }
 0x2db   : > { %v2102_v54 = vsel %vm2025_vm2, %v2002_v38, 0.0  ;;  %v2101_v10 = vsel %vm2025_vm2, %v2001_v52, 0.0  ;;  %v779_v15 = vrot.slane %v771_v55, %v3053_v1  ;;  %v763_v38 = vrot.slane %v755_v62, %v3053_v1 }
 0x2dc   : > { %1639 = vbcast.lane.b32.xlu0 %v1636_v23, 288  ;;  %v2103_v21 = vadd.f32 %v2102_v54, %v2101_v10  ;;  %v1536_v16 = vpop.permute.xlu1 %1535  ;;  %v3323_v51 = vpop.permute.xlu0 %1455  ;;  %v772_v52 = vcombine.high %v3006_v60, %v3043_v44  ;;  %v756_v55 = vcombine.high %v2794_v30, %v3026_v11 }
 0x2dd   : > { %v788_v62 = vcombine.high %v763_v38, %v779_v15 }
 0x2de   : > { %1959 = vbcast.lane.b32.xlu1 %v1956_v9, 288  ;;  %v787_v9 = vcombine.low %v763_v38, %v779_v15  ;;  %v786_v47 = vrot.slane %v772_v52, %v3053_v1  ;;  %v770_v60 = vrot.slane %v756_v55, %v3053_v1 }
 0x2e0   : > { %1895 = vbcast.lane.b32.xlu0 %v1892_v14, 288  ;;  %v1792_v28 = vpop.permute.xlu1 %1791  ;;  %v3329_v50 = vpop.permute.xlu0 %1711  ;;  %v795_v33 = vrot.slane %v787_v9, %v3068_v37  ;;  %v703_v9 = vcombine.low %v3008_v61, %v3045_v48 }
 0x2e1   : > { %v2003_v53 = vmul.f32 %v1792_v28, %v3081_v36 }
 0x2e2   : > { %v1969_v38 = vmul.f32 %v3283_v5, %v795_v33 }
 0x2e3   : > { %v2104_v54 = vsel %vm2025_vm2, %v2003_v53, 0.0 }
 0x2e4   : > { %v2105_v10 = vadd.f32 %v2104_v54, %v2103_v21  ;;  %v1544_v40 = vpop.permute.xlu1 %1543  ;;  %v3335_v23 = vpop.permute.xlu0 %1471 }
 0x2e8   : > { %v1800_v31 = vpop.permute.xlu1 %1799  ;;  %v3340_v14 = vpop.permute.xlu0 %1727 }
 0x2e9   : > { %v2004_v36 = vmul.f32 %v1800_v31, %v3093_v2  ;;  %v802_v31 = vrot.slane %v788_v62, %v3068_v37  ;;  %v687_v62 = vcombine.low %v2797_v32, %v3028_v13 }
 0x2eb   : > { %v2106_v21 = vsel %vm2025_vm2, %v2004_v36, 0.0  ;;  %v803_v36 = vcombine.low %v770_v60, %v786_v47  ;;  %v1971_v55 = vmul.f32 %v1536_v16, %v802_v31  ;;  %v711_v16 = vrot.slane %v703_v9, %v3053_v1 }
 0x2ec   : > { %v2107_v28 = vadd.f32 %v2106_v21, %v2105_v10  ;;  %v1552_v53 = vpop.permute.xlu1 %1551  ;;  %v3347_v54 = vpop.permute.xlu0 %1479  ;;  %v819_v10 = vcombine.high %v795_v33, %v3648_v8  ;;  %v704_v9 = vcombine.high %v3008_v61, %v3045_v48 }
 0x2ee   : > { %v1970_v15 = vmul.f32 %v3281_v27, %v819_v10  ;;  %v2041_v27 = vsel %vm2025_vm2, %v1969_v38, 0.0  ;;  %v975_v10 = vcombine.low %v3017_v19, %v3056_v46  ;;  %v718_v48 = vrot.slane %v704_v9, %v3053_v1 }
 0x2f0   : > { %v1808_v35 = vpop.permute.xlu1 %1807  ;;  %v3353_v2 = vpop.permute.xlu0 %1735  ;;  %v2042_v57 = vsel %vm2025_vm2, %v1970_v15, 0.0 }
 0x2f1   : > { %v2005_v44 = vmul.f32 %v1808_v35, %v3096_v29  ;;  %v820_v29 = vcombine.high %v802_v31, %v3648_v8  ;;  %v811_v35 = vrot.slane %v803_v36, %v3068_v37  ;;  %v2044_v31 = vsel %vm2025_vm2, %v1971_v55, 0.0 }
 0x2f3   : > { %v2108_v21 = vsel %vm2025_vm2, %v2005_v44, 0.0  ;;  %v1972_v5 = vmul.f32 %v1544_v40, %v820_v29  ;;  %v1973_v36 = vmul.f32 %v1552_v53, %v811_v35  ;;  %v821_v25 = vcombine.high %v811_v35, %v3648_v8 }
 0x2f4   : > { %v2109_v30 = vadd.f32 %v2108_v21, %v2107_v28  ;;  %v1560_v11 = vpop.permute.xlu1 %1559  ;;  %v3360_v52 = vpop.permute.xlu0 %1487  ;;  %v804_v21 = vcombine.high %v770_v60, %v786_v47  ;;  %v695_v47 = vrot.slane %v687_v62, %v3053_v1  ;;  %v959_v60 = vcombine.low %v2810_v43, %v3037_v41 }
 0x2f5   : > { %v2043_v40 = vadd.f32 %v2042_v57, %v2041_v27  ;;  %v2046_v55 = vsel %vm2025_vm2, %v1972_v5, 0.0  ;;  %v1974_v53 = vmul.f32 %v1560_v11, %v821_v25  ;;  %v688_v35 = vcombine.high %v2797_v32, %v3028_v13 }
 0x2f6   : > { %v818_v29 = vrot.slane %v804_v21, %v3068_v37  ;;  %v983_v62 = vrot.slane %v975_v10, %v3053_v1  ;;  %v720_v25 = vcombine.high %v695_v47, %v711_v16 }
 0x2f7   : > { %v2050_v11 = vsel %vm2025_vm2, %v1974_v53, 0.0  ;;  %v702_v13 = vrot.slane %v688_v35, %v3053_v1 }
 0x2f8   : > { %v1816_v44 = vpop.permute.xlu1 %1815  ;;  %v3370_v28 = vpop.permute.xlu0 %1743 }
 0x2f9   : > { %v2006_v33 = vmul.f32 %v1816_v44, %v3104_v58  ;;  %v2045_v44 = vadd.f32 %v2044_v31, %v2043_v40  ;;  %v976_v40 = vcombine.high %v3017_v19, %v3056_v46  ;;  %v735_v9 = vcombine.low %v702_v13, %v718_v48 }
 0x2fa   : > { %v960_v46 = vcombine.high %v2810_v43, %v3037_v41 }
 0x2fb   : > { %v2110_v63 = vsel %vm2025_vm2, %v2006_v33, 0.0  ;;  %v719_v33 = vcombine.low %v695_v47, %v711_v16  ;;  %v2047_v27 = vadd.f32 %v2046_v55, %v2045_v44 }
 0x2fc   : > { %v2111_v15 = vadd.f32 %v2110_v63, %v2109_v30  ;;  %v1568_v58 = vpop.permute.xlu1 %1567  ;;  %v3384_v38 = vpop.permute.xlu0 %1495  ;;  %v2048_v63 = vsel %vm2025_vm2, %v1973_v36, 0.0  ;;  %v967_v30 = vrot.slane %v959_v60, %v3053_v1  ;;  %v822_v60 = vcombine.high %v818_v29, %v3648_v8 }
 0x2fd   : > { %v1975_v57 = vmul.f32 %v1568_v58, %v818_v29  ;;  %v2049_v5 = vadd.f32 %v2048_v63, %v2047_v27  ;;  %v727_v10 = vrot.slane %v719_v33, %v3068_v37  ;;  %v736_v33 = vcombine.high %v702_v13, %v718_v48 }
 0x2fe   : > { %v991_v21 = vcombine.low %v967_v30, %v983_v62  ;;  %v992_v35 = vcombine.high %v967_v30, %v983_v62 }
 0x2ff   : > { %v2052_v31 = vsel %vm2025_vm2, %v1975_v57, 0.0  ;;  %v2051_v16 = vadd.f32 %v2050_v11, %v2049_v5  ;;  %v1961_v63 = vmul.f32 %v3323_v51, %v727_v10  ;;  %v751_v19 = vcombine.high %v727_v10, %v3648_v8 }
 0x300   : > { %v1824_v39 = vpop.permute.xlu1 %1823  ;;  %v3395_v61 = vpop.permute.xlu0 %1751  ;;  %v999_v53 = vrot.slane %v991_v21, %v3068_v37  ;;  %v743_v51 = vrot.slane %v735_v9, %v3068_v37  ;;  %v1006_v11 = vrot.slane %v992_v35, %v3068_v37  ;;  %v974_v10 = vrot.slane %v960_v46, %v3053_v1 }
 0x301   : > { %v2007_v32 = vmul.f32 %v1824_v39, %v3111_v56  ;;  %v734_v39 = vrot.slane %v720_v25, %v3068_v37  ;;  %v2053_v44 = vadd.f32 %v2052_v31, %v2051_v16  ;;  %v2026_v13 = vsel %vm2025_vm2, %v1961_v63, 0.0 }
 0x302   : > { %v1023_v41 = vcombine.high %v999_v53, %v3648_v8  ;;  %v1993_v21 = vmul.f32 %v3329_v50, %v999_v53  ;;  %v1995_v31 = vmul.f32 %v3340_v14, %v1006_v11  ;;  %v1024_v50 = vcombine.high %v1006_v11, %v3648_v8 }
 0x303   : > { %v2112_v36 = vsel %vm2025_vm2, %v2007_v32, 0.0  ;;  %v1963_v62 = vmul.f32 %v3335_v23, %v734_v39  ;;  %v752_v30 = vcombine.high %v734_v39, %v3648_v8  ;;  %v750_v32 = vrot.slane %v736_v33, %v3068_v37 }
 0x304   : > { %v3407_v47 = vadd.f32 %v2112_v36, %v2111_v15  ;;  %v1576_v58 = vpop.permute.xlu1 %1575  ;;  %v1504_v56 = vpop.permute.xlu0 %1503  ;;  %v3417_v15 = vrot.slane %v976_v40, %v3053_v1  ;;  %v753_v39 = vcombine.high %v743_v51, %v3648_v8  ;;  %v2086_v35 = vsel %vm2025_vm2, %v1993_v21, 0.0 }
 0x305   : > { %v1976_v55 = vmul.f32 %v1576_v58, %v822_v60  ;;  %v1964_v23 = vmul.f32 %v3347_v54, %v752_v30  ;;  %v2029_v16 = vsel %vm2025_vm2, %v1963_v62, 0.0  ;;  %v1965_v58 = vmul.f32 %v3360_v52, %v743_v51 }
 0x306   : > { %v1007_v54 = vcombine.low %v974_v10, %v3417_v15  ;;  %v754_v53 = vcombine.high %v750_v32, %v3648_v8  ;;  %v2089_v52 = vsel %vm2025_vm2, %v1995_v31, 0.0  ;;  %v1996_v63 = vmul.f32 %v3353_v2, %v1024_v50 }
 0x307   : > { %v2054_v29 = vsel %vm2025_vm2, %v1976_v55, 0.0  ;;  %v2031_v14 = vsel %vm2025_vm2, %v1964_v23, 0.0  ;;  %v2033_v62 = vsel %vm2025_vm2, %v1965_v58, 0.0  ;;  %v1967_v30 = vmul.f32 %v1504_v56, %v750_v32 }
 0x308   : > { %v3419_v57 = vadd.f32 %v2054_v29, %v2053_v44  ;;  %v1464_v27 = vpop.permute.xlu1 %1463  ;;  %v3421_v25 = vpop.permute.xlu0 %1759  ;;  %v1966_v44 = vmul.f32 %v3384_v38, %v753_v39  ;;  %v1015_v11 = vrot.slane %v1007_v54, %v3068_v37  ;;  %v2091_v23 = vsel %vm2025_vm2, %v1996_v63, 0.0 }
 0x309   : > { %v1962_v48 = vmul.f32 %v1464_v27, %v751_v19  ;;  %v1008_v39 = vcombine.high %v974_v10, %v3417_v15 }
 0x30a   : > { %v2151_v43 = vsel %vm2025_vm2, %v3419_v57, 0.0 }
 0x30b   : > { %v2027_v5 = vsel %vm2025_vm2, %v1962_v48, 0.0  ;;  %2152 = vadd.xlane.f32.xlu1 %v2151_v43 }
 0x30c   : > { %v2028_v36 = vadd.f32 %v2027_v5, %v2026_v13  ;;  %v1720_v60 = vpop.permute.xlu1 %1719  ;;  %v1512_v40 = vpop.permute.xlu0 %1511 }
 0x30d   : > { %v1994_v9 = vmul.f32 %v1720_v60, %v1023_v41  ;;  %v2035_v41 = vsel %vm2025_vm2, %v1966_v44, 0.0  ;;  %v1968_v13 = vmul.f32 %v1512_v40, %v754_v53  ;;  %v1025_v40 = vcombine.high %v1015_v11, %v3648_v8 }
 0x30e   : > { %v2030_v55 = vadd.f32 %v2029_v16, %v2028_v36  ;;  %v1022_v44 = vrot.slane %v1008_v39, %v3068_v37 }
 0x30f   : > { %v2087_v33 = vsel %vm2025_vm2, %v1994_v9, 0.0  ;;  %v2039_v9 = vsel %vm2025_vm2, %v1968_v13, 0.0 }
 0x310   : > { %v2032_v29 = vadd.f32 %v2031_v14, %v2030_v55  ;;  %v2088_v19 = vadd.f32 %v2087_v33, %v2086_v35  ;;  %v1656_v46 = vpop.permute.xlu1 %1655  ;;  %v1648_v27 = vpop.permute.xlu0 %1647 }
 0x311   : > { %v1986_v51 = vmul.f32 %v1656_v46, %v3190_v6  ;;  %v1985_v48 = vmul.f32 %v1648_v27, %v3178_v42  ;;  %v1997_v6 = vmul.f32 %v3370_v28, %v1015_v11  ;;  %v2037_v42 = vsel %vm2025_vm2, %v1967_v30, 0.0 }
 0x312   : > { %v2090_v38 = vadd.f32 %v2089_v52, %v2088_v19  ;;  %v2034_v43 = vadd.f32 %v2033_v62, %v2032_v29  ;;  %v1999_v46 = vmul.f32 %v3421_v25, %v1022_v44  ;;  %v1026_v62 = vcombine.high %v1022_v44, %v3648_v8 }
 0x313   : > { %v2072_v2 = vsel %vm2025_vm2, %v1986_v51, 0.0  ;;  %v2071_v21 = vsel %vm2025_vm2, %v1985_v48, 0.0 }
 0x314   : > { %v2036_v5 = vadd.f32 %v2035_v41, %v2034_v43  ;;  %v2073_v31 = vadd.f32 %v2072_v2, %v2071_v21  ;;  %v1912_v56 = vpop.permute.xlu1 %1911  ;;  %v1904_v32 = vpop.permute.xlu0 %1903  ;;  %v2092_v16 = vadd.f32 %v2091_v23, %v2090_v38  ;;  %v2097_v11 = vsel %vm2025_vm2, %v1999_v46, 0.0 }
 0x315   : > { %v2018_v36 = vmul.f32 %v1912_v56, %v3220_v45  ;;  %v2017_v60 = vmul.f32 %v1904_v32, %v3201_v7  ;;  %v2093_v7 = vsel %vm2025_vm2, %v1997_v6, 0.0  ;;  %v1998_v45 = vmul.f32 %v3395_v61, %v1025_v40 }
 0x316   : > { %v2038_v58 = vadd.f32 %v2037_v42, %v2036_v5  ;;  %v2094_v10 = vadd.f32 %v2093_v7, %v2092_v16 }
 0x317   : > { %v2132_v50 = vsel %vm2025_vm2, %v2018_v36, 0.0  ;;  %v2131_v54 = vsel %vm2025_vm2, %v2017_v60, 0.0  ;;  %v2095_v19 = vsel %vm2025_vm2, %v1998_v45, 0.0 }
 0x318   : > { %v3466_v55 = vadd.f32 %v2039_v9, %v2038_v58  ;;  %v2133_v28 = vadd.f32 %v2132_v50, %v2131_v54  ;;  %v1664_v53 = vpop.permute.xlu1 %1663  ;;  %v3468_v35 = vpop.permute.xlu0 %1583  ;;  %v2096_v27 = vadd.f32 %v2095_v19, %v2094_v10 }
 0x319   : > { %v1987_v14 = vmul.f32 %v1664_v53, %v3181_v26  ;;  %v1977_v19 = vmul.f32 %v3468_v35, %v3186_v24 }
 0x31a   : > { %v2148_v15 = vsel %vm2025_vm2, %v3466_v55, 0.0  ;;  %v2098_v41 = vadd.f32 %v2097_v11, %v2096_v27 }
 0x31b   : > { %v2074_v33 = vsel %vm2025_vm2, %v1987_v14, 0.0  ;;  %2149 = vadd.xlane.f32.xlu0 %v2148_v15 }
 0x31c   : > { %v2075_v52 = vadd.f32 %v2074_v33, %v2073_v31  ;;  %v1920_v63 = vpop.permute.xlu1 %1919  ;;  %v1840_v29 = vpop.permute.xlu0 %1839 }
 0x31d   : > { %v2019_v61 = vmul.f32 %v1920_v63, %v3204_v17 }
 0x31f   : > { %v2134_v26 = vsel %vm2025_vm2, %v2019_v61, 0.0 }
 0x320   : > { %v2135_v30 = vadd.f32 %v2134_v26, %v2133_v28  ;;  %v1672_v51 = vpop.permute.xlu1 %1671  ;;  %v1768_v48 = vpop.permute.xlu0 %1767 }
 0x321   : > { %v1988_v38 = vmul.f32 %v1672_v51, %v3194_v59  ;;  %v2000_v43 = vmul.f32 %v1768_v48, %v1026_v62  ;;  %v3656_v62 = vld [vmem:[#allocation3_spill] sm:$0xff]  ;;  %v2056_v51 = vsel %vm2025_vm2, %v1977_v19, 0.0  ;;  %v3657_v48 = vld [vmem:[#allocation5_spill] sm:$0xff]  ;;  %v3667_v19 = vld [vmem:[#allocation14_spill] sm:$0xff] }
 0x323   : > { %v2076_v13 = vsel %vm2025_vm2, %v1988_v38, 0.0  ;;  %v2099_v25 = vsel %vm2025_vm2, %v2000_v43, 0.0 }
 0x324   : > { %v2077_v2 = vadd.f32 %v2076_v13, %v2075_v52  ;;  %v3486_v17 = vadd.f32 %v2099_v25, %v2098_v41  ;;  %v1928_v21 = vpop.permute.xlu1 %1927  ;;  %v1600_v23 = vpop.permute.xlu0 %1599  ;;  %v3658_v41 = vld [vmem:[#allocation4_spill] sm:$0xff]  ;;  %v3659_v25 = vld [vmem:[#allocation7_spill] sm:$0xff] }
 0x325   : > { %v2020_v8 = vmul.f32 %v1928_v21, %v3224_v12  ;;  %v1979_v26 = vmul.f32 %v1600_v23, %v3197_v18  ;;  %v3660_v18 = vld [vmem:[#allocation9_spill] sm:$0xff] }
 0x326   : > { %v2160_v5 = vsel %vm2025_vm2, %v3486_v17, 0.0 }
 0x327   : > { %v2136_v31 = vsel %vm2025_vm2, %v2020_v8, 0.0  ;;  %2161 = vadd.xlane.f32.xlu0 %v2160_v5  ;;  %v2059_v43 = vsel %vm2025_vm2, %v1979_v26, 0.0  ;;  %v3661_v8 = vld [vmem:[#allocation6_spill] sm:$0xff] }
 0x328   : > { %v2137_v59 = vadd.f32 %v2136_v31, %v2135_v30  ;;  %v1680_v56 = vpop.permute.xlu1 %1679  ;;  %v1856_v32 = vpop.permute.xlu0 %1855  ;;  %v2009_v30 = vmul.f32 %v1840_v29, %v3656_v62  ;;  %v3662_v31 = vld [vmem:[#allocation8_spill] sm:$0xff] }
 0x329   : > { %v1989_v6 = vmul.f32 %v1680_v56, %v3213_v22  ;;  %v2011_v13 = vmul.f32 %v1856_v32, %v3658_v41 }
 0x32b   : > { %v2078_v42 = vsel %vm2025_vm2, %v1989_v6, 0.0  ;;  %v3663_v6 = vld [vmem:[#allocation10_spill] sm:$0xff] }
 0x32c   : > { %v2079_v36 = vadd.f32 %v2078_v42, %v2077_v2  ;;  %v1936_v60 = vpop.permute.xlu1 %1935  ;;  %v1608_v40 = vpop.permute.xlu0 %1607 }
 0x32d   : > { %v2021_v16 = vmul.f32 %v1936_v60, %v3227_v4  ;;  %v1980_v11 = vmul.f32 %v1608_v40, %v3657_v48 }
 0x32f   : > { %v2138_v12 = vsel %vm2025_vm2, %v2021_v16, 0.0  ;;  %v2061_v23 = vsel %vm2025_vm2, %v1980_v11, 0.0  ;;  %v2119_v16 = vsel %vm2025_vm2, %v2011_v13, 0.0  ;;  %v3670_v13 = vld [vmem:[#allocation15_spill] sm:$0xff] }
 0x330   : > { %v2139_v58 = vadd.f32 %v2138_v12, %v2137_v59  ;;  %v1688_v39 = vpop.permute.xlu1 %1687  ;;  %v1864_v9 = vpop.permute.xlu0 %1863 }
 0x331   : > { %v1990_v50 = vmul.f32 %v1688_v39, %v3235_v20  ;;  %v2012_v5 = vmul.f32 %v1864_v9, %v3661_v8 }
 0x333   : > { %v2080_v54 = vsel %vm2025_vm2, %v1990_v50, 0.0  ;;  %v3665_v50 = vld [vmem:[#allocation11_spill] sm:$0xff] }
 0x334   : > { %v2081_v28 = vadd.f32 %v2080_v54, %v2079_v36  ;;  %v1944_v53 = vpop.permute.xlu1 %1943  ;;  %v1616_v7 = vpop.permute.xlu0 %1615 }
 0x335   : > { %v2022_v22 = vmul.f32 %v1944_v53, %v3247_v49  ;;  %v1981_v2 = vmul.f32 %v1616_v7, %v3659_v25  ;;  %v2121_v53 = vsel %vm2025_vm2, %v2012_v5, 0.0 }
 0x337   : > { %v2140_v45 = vsel %vm2025_vm2, %v2022_v22, 0.0  ;;  %v2063_v12 = vsel %vm2025_vm2, %v1981_v2, 0.0  ;;  %v3666_v22 = vld [vmem:[#allocation12_spill] sm:$0xff]  ;;  %v3671_v2 = vld [vmem:[#allocation17_spill] sm:$0xff] }
 0x338   : > { %v2141_v14 = vadd.f32 %v2140_v45, %v2139_v58  ;;  %v1696_v15 = vpop.permute.xlu1 %1695  ;;  %v1872_v10 = vpop.permute.xlu0 %1871  ;;  %v3664_v58 = vld [vmem:[#allocation13_spill] sm:$0xff] }
 0x339   : > { %v1991_v4 = vmul.f32 %v1696_v15, %v3262_v34  ;;  %v2013_v42 = vmul.f32 %v1872_v10, %v3663_v6 }
 0x33b   : > { %v2082_v44 = vsel %vm2025_vm2, %v1991_v4, 0.0  ;;  %v2123_v15 = vsel %vm2025_vm2, %v2013_v42, 0.0 }
 0x33c   : > { %v2083_v33 = vadd.f32 %v2082_v44, %v2081_v28  ;;  %v1952_v52 = vpop.permute.xlu1 %1951  ;;  %v1624_v63 = vpop.permute.xlu0 %1623 }
 0x33d   : > { %v2023_v20 = vmul.f32 %v1952_v52, %v3276_v0  ;;  %v1982_v59 = vmul.f32 %v1624_v63, %v3662_v31 }
 0x33f   : > { %v2142_v46 = vsel %vm2025_vm2, %v2023_v20, 0.0  ;;  %v2065_v7 = vsel %vm2025_vm2, %v1982_v59, 0.0 }
 0x340   : > { %v3506_v49 = vadd.f32 %v2142_v46, %v2141_v14  ;;  %v1592_v61 = vpop.permute.xlu1 %1591  ;;  %v1880_v27 = vpop.permute.xlu0 %1879 }
 0x341   : > { %v1978_v34 = vmul.f32 %v1592_v61, %v3253_v3  ;;  %v2116_v3 = vsel %vm2025_vm2, %v2009_v30, 0.0  ;;  %v2014_v45 = vmul.f32 %v1880_v27, %v3666_v22  ;;  %v3668_v61 = vld [vmem:[#allocation2_spill] sm:$0xff] }
 0x343   : > { %v2057_v0 = vsel %vm2025_vm2, %v1978_v34, 0.0  ;;  %v3669_v34 = vld [vmem:[#allocation16_spill] sm:$0xff]  ;;  %v2125_v48 = vsel %vm2025_vm2, %v2014_v45, 0.0 }
 0x344   : > { %v2058_v38 = vadd.f32 %v2057_v0, %v2056_v51  ;;  %v1848_v24 = vpop.permute.xlu1 %1847 }
 0x345   : > { %v2010_v21 = vmul.f32 %v1848_v24, %v3660_v18 }
 0x346   : > { %v1632_v35 = vpop.permute.xlu0 %1631  ;;  %v2060_v29 = vadd.f32 %v2059_v43, %v2058_v38 }
 0x347   : > { %v2117_v56 = vsel %vm2025_vm2, %v2010_v21, 0.0  ;;  %v1983_v39 = vmul.f32 %v1632_v35, %v3664_v58 }
 0x348   : > { %v2062_v36 = vadd.f32 %v2061_v23, %v2060_v29  ;;  %v2118_v60 = vadd.f32 %v2117_v56, %v2116_v3  ;;  %v1704_v32 = vpop.permute.xlu1 %1703 }
 0x349   : > { %v1992_v54 = vmul.f32 %v1704_v32, %v3665_v50  ;;  %v2067_v20 = vsel %vm2025_vm2, %v1983_v39, 0.0 }
 0x34a   : > { %v1888_v40 = vpop.permute.xlu0 %1887  ;;  %v2120_v28 = vadd.f32 %v2119_v16, %v2118_v60  ;;  %v2064_v9 = vadd.f32 %v2063_v12, %v2062_v36 }
 0x34b   : > { %v2084_v14 = vsel %vm2025_vm2, %v1992_v54, 0.0  ;;  %v2015_v46 = vmul.f32 %v1888_v40, %v3667_v19 }
 0x34c   : > { %v2122_v10 = vadd.f32 %v2121_v53, %v2120_v28  ;;  %v2066_v4 = vadd.f32 %v2065_v7, %v2064_v9  ;;  %v2085_v44 = vadd.f32 %v2084_v14, %v2083_v33  ;;  %v1832_v52 = vpop.permute.xlu1 %1831 }
 0x34d   : > { %v2008_v26 = vmul.f32 %v1832_v52, %v3668_v61  ;;  %v2127_v41 = vsel %vm2025_vm2, %v2015_v46, 0.0 }
 0x34e   : > { %v1640_v63 = vpop.permute.xlu0 %1639  ;;  %v2068_v30 = vadd.f32 %v2067_v20, %v2066_v4  ;;  %v2124_v51 = vadd.f32 %v2123_v15, %v2122_v10  ;;  %v2157_v27 = vsel %vm2025_vm2, %v2085_v44, 0.0 }
 0x34f   : > { %v1984_v62 = vmul.f32 %v1640_v63, %v3669_v34  ;;  %v2114_v11 = vsel %vm2025_vm2, %v2008_v26, 0.0  ;;  %2158 = vadd.xlane.f32.xlu0 %v2157_v27 }
 0x350   : > { %v2126_v0 = vadd.f32 %v2125_v48, %v2124_v51  ;;  %v2115_v38 = vadd.f32 %v2114_v11, %v3407_v47  ;;  %v1960_v35 = vpop.permute.xlu1 %1959 }
 0x351   : > { %v2069_v33 = vsel %vm2025_vm2, %v1984_v62, 0.0  ;;  %v2024_v25 = vmul.f32 %v1960_v35, %v3670_v13 }
 0x352   : > { %v2070_v24 = vadd.f32 %v2069_v33, %v2068_v30  ;;  %v1896_v43 = vpop.permute.xlu0 %1895  ;;  %v2128_v21 = vadd.f32 %v2127_v41, %v2126_v0  ;;  %v2163_v3 = vsel %vm2025_vm2, %v2115_v38, 0.0 }
 0x353   : > { %v2016_v18 = vmul.f32 %v1896_v43, %v3671_v2  ;;  %v2144_v23 = vsel %vm2025_vm2, %v2024_v25, 0.0  ;;  %2164 = vadd.xlane.f32.xlu1 %v2163_v3 }
 0x354   : > { %v2154_v29 = vsel %vm2025_vm2, %v2070_v24, 0.0  ;;  %v2145_v47 = vadd.f32 %v2144_v23, %v3506_v49 }
 0x355   : > { %v2129_v8 = vsel %vm2025_vm2, %v2016_v18, 0.0  ;;  %2155 = vadd.xlane.f32.xlu0 %v2154_v29 }
 0x356   : > { %v2130_v5 = vadd.f32 %v2129_v8, %v2128_v21  ;;  %v2169_v31 = vsel %vm2025_vm2, %v2145_v47, 0.0 }
 0x357   : > { %2170 = vadd.xlane.f32.xlu1 %v2169_v31 }
 0x358   : > { %v2166_v59 = vsel %vm2025_vm2, %v2130_v5, 0.0 }
 0x359   : > { %2167 = vadd.xlane.f32.xlu0 %v2166_v59 }
 0x398   : > { %v2153_v56 = vpop.xlane.xlu1 %2152 }
 0x399   : > { %v2174_v6 = vmul.f32 0.125, %v2153_v56 }
 0x39b   : > { %v3553_v42 = vsub.f32 %v3419_v57, %v2174_v6 }
 0x39d   : > { %v2190_v36 = vmul.f32 %v3553_v42, %v3553_v42 }
 0x39f   : > { %v2200_v60 = vsel %vm2025_vm2, %v2190_v36, 0.0 }
 0x3a0   : > { %2201 = vadd.xlane.f32.xlu1 %v2200_v60 }
 0x3a8   : > { %v2150_v32 = vpop.xlane.xlu0 %2149 }
 0x3a9   : > { %v2173_v49 = vmul.f32 0.125, %v2150_v32 }
 0x3ab   : > { %v3559_v40 = vsub.f32 %v3466_v55, %v2173_v49 }
 0x3ad   : > { %v2189_v16 = vmul.f32 %v3559_v40, %v3559_v40 }
 0x3af   : > { %v2197_v12 = vsel %vm2025_vm2, %v2189_v16, 0.0 }
 0x3b0   : > { %2198 = vadd.xlane.f32.xlu0 %v2197_v12  ;;  %v2453_v12 = vld [vmem:[%s3627_s6] ss:$0 sm:$0xff] }
 0x3b4   : > { %v2162_v58 = vpop.xlane.xlu0 %2161 }
 0x3b5   : > { %v2177_v57 = vmul.f32 0.125, %v2162_v58 }
 0x3b7   : > { %v3565_v39 = vsub.f32 %v3486_v17, %v2177_v57 }
 0x3b9   : > { %v2193_v50 = vmul.f32 %v3565_v39, %v3565_v39 }
 0x3bb   : > { %v2209_v54 = vsel %vm2025_vm2, %v2193_v50, 0.0 }
 0x3bc   : > { %2210 = vadd.xlane.f32.xlu0 %v2209_v54 }
 0x3dc   : > { %v2159_v28 = vpop.xlane.xlu0 %2158 }
 0x3dd   : > { %v2176_v55 = vmul.f32 0.125, %v2159_v28 }
 0x3df   : > { %v3570_v45 = vsub.f32 %v2085_v44, %v2176_v55 }
 0x3e0   : > { %v2165_v9 = vpop.xlane.xlu1 %2164 }
 0x3e1   : > { %v2178_v7 = vmul.f32 0.125, %v2165_v9  ;;  %v2192_v19 = vmul.f32 %v3570_v45, %v3570_v45 }
 0x3e2   : > { %v2156_v53 = vpop.xlane.xlu0 %2155 }
 0x3e3   : > { %v2175_v22 = vmul.f32 0.125, %v2156_v53  ;;  %v3572_v14 = vsub.f32 %v2115_v38, %v2178_v7  ;;  %v2206_v62 = vsel %vm2025_vm2, %v2192_v19, 0.0  ;;  %v2454_v7 = vld [vmem:[%s3628_s7] ss:$0 sm:$0xff] }
 0x3e4   : > { %v2171_v10 = vpop.xlane.xlu1 %2170 }
 0x3e5   : > { %v2183_v15 = vsub.f32 %v2070_v24, %v2175_v22  ;;  %v2180_v4 = vmul.f32 0.125, %v2171_v10  ;;  %v2194_v63 = vmul.f32 %v3572_v14, %v3572_v14 }
 0x3e6   : > { %v2168_v17 = vpop.xlane.xlu0 %2167 }
 0x3e7   : > { %v2179_v52 = vmul.f32 0.125, %v2168_v17  ;;  %v2191_v20 = vmul.f32 %v2183_v15, %v2183_v15  ;;  %v3578_v46 = vsub.f32 %v2145_v47, %v2180_v4  ;;  %v2212_v44 = vsel %vm2025_vm2, %v2194_v63, 0.0 }
 0x3e8   : > { %2213 = vadd.xlane.f32.xlu1 %v2212_v44 }
 0x3e9   : > { %v3580_v61 = vsub.f32 %v2130_v5, %v2179_v52  ;;  %v2203_v26 = vsel %vm2025_vm2, %v2191_v20, 0.0  ;;  %v2196_v51 = vmul.f32 %v3578_v46, %v3578_v46 }
 0x3ea   : > { %2204 = vadd.xlane.f32.xlu0 %v2203_v26 }
 0x3eb   : > { %v2195_v34 = vmul.f32 %v3580_v61, %v3580_v61  ;;  %v2218_v27 = vsel %vm2025_vm2, %v2196_v51, 0.0 }
 0x3ec   : > { %2207 = vadd.xlane.f32.xlu1 %v2206_v62 }
 0x3ed   : > { %v2215_v30 = vsel %vm2025_vm2, %v2195_v34, 0.0 }
 0x3ee   : > { %2216 = vadd.xlane.f32.xlu0 %v2215_v30 }
 0x3f0   : > { %2219 = vadd.xlane.f32.xlu1 %v2218_v27 }
 0x42d   : > { %v2202_v11 = vpop.xlane.xlu1 %2201 }
 0x42e   : > { %v2222_v33 = vmul.f32 0.125, %v2202_v11 }
 0x430   : > { %v2230_v35 = vadd.f32 1e-06, %v2222_v33 }
 0x432   : > { %2566 = vrsqrt.f32 %v2230_v35 }
 0x43c   : > { %v2567_v36 = vpop.eup %2566 }
 0x43d   : > { %v2199_v48 = vpop.xlane.xlu0 %2198  ;;  %v2246_v49 = vmul.f32 %v2567_v36, %v3553_v42 }
 0x43e   : > { %v2221_v38 = vmul.f32 0.125, %v2199_v48 }
 0x43f   : > { %v2260_v55 = vmul.f32 %v2453_v12, %v2246_v49 }
 0x440   : > { %v2229_v43 = vadd.f32 1e-06, %v2221_v38 }
 0x442   : > { %2568 = vrsqrt.f32 %v2229_v43 }
 0x449   : > { %v2211_v0 = vpop.xlane.xlu0 %2210 }
 0x44a   : > { %v2225_v24 = vmul.f32 0.125, %v2211_v0 }
 0x44c   : > { %v2233_v25 = vadd.f32 1e-06, %v2225_v24  ;;  %v2569_v60 = vpop.eup %2568 }
 0x44d   : > { %v2245_v58 = vmul.f32 %v2569_v60, %v3559_v40 }
 0x44e   : > { %2570 = vrsqrt.f32 %v2233_v25 }
 0x44f   : > { %v2259_v42 = vmul.f32 %v2453_v12, %v2245_v58 }
 0x451   : > { %v2273_v20 = vadd.f32 %v2454_v7, %v2259_v42 }
 0x458   : > { %v2571_v32 = vpop.eup %2570 }
 0x459   : > { %v2249_v54 = vmul.f32 %v2571_v32, %v3565_v39  ;;  %v2274_v39 = vadd.f32 %v2454_v7, %v2260_v55 }
 0x45b   : > { %v2263_v40 = vmul.f32 %v2453_v12, %v2249_v54 }
 0x45d   : > { %v2277_v62 = vadd.f32 %v2454_v7, %v2263_v40 }
 0x475   : > { %v2214_v41 = vpop.xlane.xlu1 %2213 }
 0x476   : > { %v2226_v2 = vmul.f32 0.125, %v2214_v41 }
 0x477   : > { %v2205_v13 = vpop.xlane.xlu0 %2204 }
 0x478   : > { %v2223_v18 = vmul.f32 0.125, %v2205_v13  ;;  %v2234_v21 = vadd.f32 1e-06, %v2226_v2 }
 0x479   : > { %v2208_v29 = vpop.xlane.xlu1 %2207 }
 0x47a   : > { %v2231_v3 = vadd.f32 1e-06, %v2223_v18  ;;  %v2224_v8 = vmul.f32 0.125, %v2208_v29 }
 0x47b   : > { %v2217_v23 = vpop.xlane.xlu0 %2216 }
 0x47c   : > { %v2227_v47 = vmul.f32 0.125, %v2217_v23  ;;  %2572 = vrsqrt.f32 %v2231_v3  ;;  %v2232_v5 = vadd.f32 1e-06, %v2224_v8 }
 0x47d   : > { %2574 = vrsqrt.f32 %v2234_v21  ;;  %v2220_v59 = vpop.xlane.xlu1 %2219 }
 0x47e   : > { %v2235_v31 = vadd.f32 1e-06, %v2227_v47  ;;  %2576 = vrsqrt.f32 %v2232_v5  ;;  %v2228_v56 = vmul.f32 0.125, %v2220_v59 }
 0x480   : > { %2578 = vrsqrt.f32 %v2235_v31  ;;  %v2236_v6 = vadd.f32 1e-06, %v2228_v56 }
 0x482   : > { %2580 = vrsqrt.f32 %v2236_v6 }
 0x486   : > { %v2573_v16 = vpop.eup %2572 }
 0x487   : > { %v2575_v57 = vpop.eup %2574  ;;  %v2247_v50 = vmul.f32 %v2573_v16, %v2183_v15 }
 0x488   : > { %v2577_v28 = vpop.eup %2576  ;;  %v2250_v22 = vmul.f32 %v2575_v57, %v3572_v14 }
 0x489   : > { %v2261_v9 = vmul.f32 %v2453_v12, %v2247_v50  ;;  %v2248_v10 = vmul.f32 %v2577_v28, %v3570_v45 }
 0x48a   : > { %v2579_v53 = vpop.eup %2578  ;;  %v2264_v19 = vmul.f32 %v2453_v12, %v2250_v22 }
 0x48b   : > { %v2251_v17 = vmul.f32 %v2579_v53, %v3580_v61  ;;  %v2275_v4 = vadd.f32 %v2454_v7, %v2261_v9  ;;  %v2262_v15 = vmul.f32 %v2453_v12, %v2248_v10 }
 0x48c   : > { %v2581_v52 = vpop.eup %2580  ;;  %v2278_v27 = vadd.f32 %v2454_v7, %v2264_v19 }
 0x48d   : > { %v2265_v63 = vmul.f32 %v2453_v12, %v2251_v17  ;;  %v2276_v44 = vadd.f32 %v2454_v7, %v2262_v15  ;;  %v2252_v26 = vmul.f32 %v2581_v52, %v3578_v46  ;;  %v2281_v51 = vcombine.low %v2273_v20, %v2275_v4 }
 0x48f   : > { %v2279_v34 = vadd.f32 %v2454_v7, %v2265_v63  ;;  %v2266_v30 = vmul.f32 %v2453_v12, %v2252_v26  ;;  %v2289_v14 = vcombine.low %v2274_v39, %v2276_v44  ;;  %v2288_v11 = vrot.slane %v2281_v51, %v3053_v1 }
 0x491   : > { %v2280_v45 = vadd.f32 %v2454_v7, %v2266_v30  ;;  %v2296_v61 = vrot.slane %v2289_v14, %v3053_v1  ;;  %v2297_v48 = vcombine.low %v2277_v62, %v2279_v34 }
 0x493   : > { %v2305_v33 = vcombine.low %v2278_v27, %v2280_v45  ;;  %v2304_v0 = vrot.slane %v2297_v48, %v3053_v1  ;;  %v2314_v24 = vcombine.high %v2288_v11, %v2296_v61  ;;  %v2313_v35 = vcombine.low %v2288_v11, %v2296_v61 }
 0x495   : > { %v2312_v38 = vrot.slane %v2305_v33, %v3053_v1  ;;  %v2328_v41 = vrot.slane %v2314_v24, %v3068_v37  ;;  %v2321_v25 = vrot.slane %v2313_v35, %v3068_v37 }
 0x497   : > { %v2330_v46 = vcombine.high %v2304_v0, %v2312_v38  ;;  %v2329_v43 = vcombine.low %v2304_v0, %v2312_v38 }
 0x499   : > { %v2344_v13 = vrot.slane %v2330_v46, %v3068_v37  ;;  %v2337_v2 = vrot.slane %v2329_v43, %v3068_v37 }
 0x49b   : > { %v2347_v18 = vcombine.low %v2328_v41, %v2344_v13  ;;  %v2346_v21 = vcombine.high %v2321_v25, %v2337_v2  ;;  %v2345_v3 = vcombine.low %v2321_v25, %v2337_v2  ;;  %v2348_v1 = vcombine.high %v2328_v41, %v2344_v13 }
 0x49d   : > { %2354 = vrot.lane.b32.xlu1 %v2347_v18, %s2596_s17  ;;  %2350 = vrot.lane.b32.xlu0 %v2346_v21, %s2597_s18 }
 0x4a1   : > { %2358 = vrot.lane.b32.xlu1 %v2348_v1, %s2598_s19 }
 0x50f   : > { %v2355_v29 = vpop.permute.xlu1 %2354  ;;  %v2351_v23 = vpop.permute.xlu0 %2350 }
 0x510   : > { %v2362_v8 = vsel %vm2361_vm3, %v2345_v3, %v2351_v23 }
 0x511   : > { %v2364_v47 = vsel %vm2363_vm4, %v2362_v8, %v2355_v29 }
 0x513   : > { %v2359_v37 = vpop.permute.xlu1 %2358 }
 0x514   : > { %v2366_v5 = vsel %vm2365_vm5, %v2364_v47, %v2359_v37 }
 0x515   : > { %2367 = vst.msk [vmem:[%s322_s23] sm:$0xff] %vm333_vm0, %v2366_v5 }
 0x516 PF: > { %s18_s27 = sadd.s32 1, %s2588_s27  }
 0x517   : > { %p15_p5 = scmp.ge.s32.totalorder %s18_s27, 4  }
 0x519   :  { %17 = sbr.rel (!%p15_p5) target bundleno = 1 (0x1), region = 85 }

// kernel: transformer_inter_layer.4
= control target key start
LH: loop header
LB: loop body
LE: loop exit
PB: predicated region body
PF: predicated region fallthrough
CT: control target
= control target key end

     0   :  { %s1705_s21 = smov 0   ;;  %s1861_s0 = inlined_call_operand.vmem [shape: f32[2,8,32], index: 0, kind: input, shape index: {}]   ;;  %s1862_s1 = inlined_call_operand.vmem [shape: f32[2,1,8], index: 1, kind: input, shape index: {}]   ;;  %s1863_s2 = inlined_call_operand.vmem [shape: f32[8,24], index: 2, kind: input, shape index: {}]   ;;  %s1864_s3 = inlined_call_operand.vmem [shape: f32[1,24], index: 3, kind: input, shape index: {}]   ;;  %s1865_s4 = inlined_call_operand.vmem [shape: f32[32,32], index: 4, kind: input, shape index: {}]   ;;  %s1866_s5 = inlined_call_operand.vmem [shape: f32[1,32], index: 5, kind: input, shape index: {}]   ;;  %s1867_s6 = inlined_call_operand.vmem [shape: f32[2,8,32], index: 6, kind: output, shape index: {}]  }
   0x1 LB: > { %s1490_s22 = sadd.s32 4294967295, %s1657_s21   ;;  %p1494_p0 = scmp.ge.s32.totalorder %s1657_s21, 1  ;;  %s1657_s21 = sphi %s1705_s21, %s16_s21  }
   0x2   : > { %p219_p1 = scmp.lt.s32.totalorder %s1657_s21, 3 }
   0x4   : > { %p220_p2 = pnand %p1494_p0, %p219_p1 }
   0x5   : > { %p250_p3 = scmp.lt.s32.totalorder (!%p220_p2), %s1490_s22, 1  ;;  %v408_v0 = vld [vmem:[%s1863_s2] sm:$0xff] (!%p220_p2)  ;;  %s1659_s29 = smov (!%p220_p2), 104   ;;  %v1662_v2 = vmov (!%p220_p2), 1983009808   ;;  %v277_v4 = vlaneseq (!%p220_p2)  ;;  %vm416_vm0 = vcmask (!%p220_p2), 64512  }
   0x6   : > { %223 = sbr.rel (%p220_p2) target bundleno = 1590 (0x636), region = 44  ;;  %1549 = vmatprep.subr.mxu0 (!%p220_p2), %v408_v0  ;;  %1614 = vmatprep.subr.mxu1 (!%p220_p2), %v408_v0  ;;  %s1660_s30 = smov (!%p220_p2), 120   ;;  %v275_v3 = vunpack.c.l.s4 (!%p220_p2), %v1662_v2  ;;  %v1663_v5 = vmov (!%p220_p2), 1934713408   ;;  %v1664_v51 = vmov (!%p220_p2), 0.0   ;;  %vm1665_vm1 = vmmov (!%p220_p2), 0  }
   0x7   : > { %1550 = vmatpush3.msra.mxu0 (!%p220_p2), %v408_v0  ;;  %1615 = vmatpush3.msra.mxu1 (!%p220_p2), %v408_v0  ;;  %s1661_s7 = smov (!%p220_p2), 112   ;;  %v307_v6 = vunpack.c.l.s4 (!%p220_p2), %v1663_v5  ;;  %v278_v8 = vshrl.u32 (!%p220_p2), %v277_v4, 7  ;;  %v1499_v52 = vld [vmem:[%s1864_s3] ss:$0 sm:$0xff] (!%p220_p2)  ;;  %s1667_s24 = smov (!%p220_p2), 16   ;;  %vm1338_vm2 = vcmask (!%p220_p2), 130048  }
   0x8   : > { %v276_v7 = vunpack.c.0.s8 (!%p220_p2), %v275_v3  ;;  %1557 = vmatprep.subr.mxu1 (!%p220_p2), %v1664_v51  ;;  %1567 = vmatprep.subr.mxu0 (!%p220_p2), %v1664_v51  ;;  %s1668_s25 = smov (!%p220_p2), 8   ;;  %s1669_s26 = smov (!%p220_p2), 24   ;;  %vm1340_vm3 = vcmask (!%p220_p2), 195584   ;;  %vm1353_vm4 = vcmask (!%p220_p2), 261120  }
   0x9   : > { %v308_v11 = vunpack.c.0.s8 (!%p220_p2), %v307_v6 }
   0xa   : > { %v1726_v12 = vsub.s32 (!%p220_p2), %v276_v7, %v278_v8 }
   0xb   : > { %v1728_v18 = vsub.s32 (!%p220_p2), %v308_v11, %v278_v8 }
   0xd   : > { %s1869_s22 = smov (!%p250_p3, %s1490_s22), 1 }
   0xe   : > { %s1495_s23 = sshll.u32 %s1869_s22, 3  ;;  %s256_s12 = scalar_lea.vmem %s1862_s1, %s1869_s22 }
   0xf   : > { %s253_s28 = scalar_lea.vmem %s1861_s0, %s1495_s23  ;;  %v1512_v5 = vld [vmem:[%s256_s12] ss:$0 sm:$0xff] }
  0x10   : > { %v261_v1 = vld [vmem:[%s253_s28] sm:$0xff] }
  0x11   : > { %269 = vrot.lane.b32.xlu1 %v261_v1, %s1659_s29  ;;  %263 = vrot.lane.b32.xlu0 %v261_v1, %s1660_s30 }
  0x15   : > { %266 = vrot.lane.b32.xlu0 %v261_v1, %s1661_s7 }
  0x83   : > { %v270_v9 = vpop.permute.xlu1 %269  ;;  %v264_v10 = vpop.permute.xlu0 %263 }
  0x84   : > { %v288_v13 = vcombine.low %v264_v10, %v270_v9  ;;  %v289_v14 = vcombine.high %v264_v10, %v270_v9 }
  0x86   : > { %v296_v19 = vrot.slane %v288_v13, %v1726_v12  ;;  %v303_v20 = vrot.slane %v289_v14, %v1726_v12 }
  0x87   : > { %v267_v15 = vpop.permute.xlu0 %266 }
  0x88   : > { %v272_v16 = vcombine.low %v261_v1, %v267_v15  ;;  %v273_v17 = vcombine.high %v261_v1, %v267_v15 }
  0x8a   : > { %v280_v21 = vrot.slane %v272_v16, %v1726_v12  ;;  %v287_v22 = vrot.slane %v273_v17, %v1726_v12 }
  0x8c   : > { %v304_v23 = vcombine.low %v280_v21, %v296_v19  ;;  %v305_v24 = vcombine.high %v280_v21, %v296_v19  ;;  %v320_v25 = vcombine.low %v287_v22, %v303_v20  ;;  %v321_v26 = vcombine.high %v287_v22, %v303_v20 }
  0x8e   : > { %v312_v27 = vrot.slane %v304_v23, %v1728_v18  ;;  %v319_v28 = vrot.slane %v305_v24, %v1728_v18  ;;  %v328_v29 = vrot.slane %v320_v25, %v1728_v18  ;;  %v335_v30 = vrot.slane %v321_v26, %v1728_v18 }
  0x90   : > { %v340_v31 = vcombine.low %v312_v27, %v319_v28  ;;  %v1497_v32 = vcombine.high %v312_v27, %v319_v28  ;;  %v356_v33 = vcombine.low %v328_v29, %v335_v30  ;;  %v1498_v34 = vcombine.high %v328_v29, %v335_v30 }
  0x92   : > { %v347_v35 = vrot.slane %v340_v31, %v1726_v12  ;;  %v355_v36 = vrot.slane %v1497_v32, %v1726_v12  ;;  %v363_v37 = vrot.slane %v356_v33, %v1726_v12  ;;  %v371_v38 = vrot.slane %v1498_v34, %v1726_v12 }
  0x94   : > { %v372_v39 = vcombine.low %v347_v35, %v355_v36  ;;  %v388_v40 = vcombine.low %v363_v37, %v371_v38  ;;  %v373_v41 = vcombine.high %v347_v35, %v355_v36  ;;  %v389_v42 = vcombine.high %v363_v37, %v371_v38 }
  0x96   : > { %v380_v43 = vrot.slane %v372_v39, %v1728_v18  ;;  %v396_v44 = vrot.slane %v388_v40, %v1728_v18  ;;  %v387_v45 = vrot.slane %v373_v41, %v1728_v18  ;;  %v403_v46 = vrot.slane %v389_v42, %v1728_v18 }
  0x98   : > { %v404_v47 = vcombine.low %v380_v43, %v396_v44  ;;  %v405_v48 = vcombine.high %v380_v43, %v396_v44  ;;  %v406_v49 = vcombine.low %v387_v45, %v403_v46  ;;  %v407_v50 = vcombine.high %v387_v45, %v403_v46 }
  0x9a   : > { %1551 = vmatprep.mubr.msk.f32.mxu0 %vm416_vm0, %v404_v47  ;;  %1554 = vmatprep.mubr.msk.f32.mxu1 %vm416_vm0, %v406_v49 }
  0x9b   : > { %1552 = vmatmul.mubr.msk.f32.vlgmr.msra.gmra.mrb[0].mxu0 %vm416_vm0, %v405_v48  ;;  %1555 = vmatmul.mubr.msk.f32.vlgmr.msra.gmra.mrb[0].mxu1 %vm416_vm0, %v407_v50 }
  0x9c   : > { %1559 = vmatprep.mubr.msk.f32.mxu1 %vm1665_vm1, %v1664_v51  ;;  %1569 = vmatprep.mubr.msk.f32.mxu0 %vm1665_vm1, %v1664_v51 }
 0x16e   : > { %v1553_v53 = vpop.f32.mrb[0].mxu0  ;;  %v1556_v54 = vpop.f32.mrb[0].mxu1 }
 0x16f   : > { %v501_v55 = vadd.f32 %v1553_v53, %v1499_v52  ;;  %v495_v56 = vpop.f32.mrb[1].mxu0  ;;  %v505_v57 = vpop.f32.mrb[1].mxu1  ;;  %v1761_v59 = vadd.f32 %v1556_v54, %v1499_v52 }
 0x170   : > { %v496_v58 = vadd.f32 %v1499_v52, %v495_v56  ;;  %v1763_v60 = vadd.f32 %v1499_v52, %v505_v57 }
 0x171   : > { %597 = vrot.lane.b32.xlu0 %v501_v55, %s1660_s30  ;;  %v515_v1 = vmul.f32 0.35355338, %v501_v55  ;;  %v517_v4 = vmul.f32 0.35355338, %v1761_v59 }
 0x172   : > { %519 = vrot.lane.b32.xlu1 %v496_v58, %s1660_s30  ;;  %v514_v62 = vmul.f32 0.35355338, %v496_v58  ;;  %v516_v2 = vmul.f32 0.35355338, %v1763_v60 }
 0x175   : > { %753 = vrot.lane.b32.xlu0 %v1761_v59, %s1660_s30 }
 0x176   : > { %675 = vrot.lane.b32.xlu1 %v1763_v60, %s1660_s30 }
 0x1e3   : > { %v598_v63 = vpop.permute.xlu0 %597 }
 0x1e4   : > { %v520_v61 = vpop.permute.xlu1 %519 }
 0x1e5   : > { %1558 = vmatpush3.xpose.msk.msra.mxu1 %vm416_vm0, %v520_v61  ;;  %v1342_v61 = vld [vmem:[%s1865_s4] sm:$0xff] }
 0x1e6   : > { %1562 = vmatprep.subr.mxu1 %v1664_v51 }
 0x1e7   : > { %v754_v3 = vpop.permute.xlu0 %753 }
 0x1e8   : > { %v676_v0 = vpop.permute.xlu1 %675  ;;  %1560 = vmatmul.mubr.msk.f32.vlgmr.msra.gmra.mrb[2].mxu1 %vm416_vm0, %v514_v62  ;;  %v1343_v62 = vld [vmem:[%s1865_s4 + $0x8] sm:$0xff] }
 0x1e9   : > { %1563 = vmatpush3.xpose.msk.msra.mxu1 %vm416_vm0, %v598_v63  ;;  %1568 = vmatpush3.xpose.msk.msra.mxu0 %vm416_vm0, %v676_v0  ;;  %v1666_v63 = vmov 0.0|0.0   ;;  %v1609_v0 = vpack.c.bf16 %v1343_v62, %v1342_v61 }
 0x1ea   : > { %1564 = vmatprep.mubr.msk.f32.mxu1 %vm1665_vm1, %v1664_v51  ;;  %1572 = vmatprep.subr.mxu1 %v1664_v51 }
 0x1eb   : > { %1577 = vmatprep.subr.mxu0 %v1664_v51 }
 0x1ec   : > { %1565 = vmatmul.mubr.msk.f32.vlgmr.msra.gmra.mrb[4].mxu1 %vm416_vm0, %v515_v1  ;;  %1570 = vmatmul.mubr.msk.f32.vlgmr.msra.gmra.mrb[2].mxu0 %vm416_vm0, %v516_v2 }
 0x1ed   : > { %1573 = vmatpush3.xpose.msk.msra.mxu1 %vm416_vm0, %v754_v3  ;;  %1574 = vmatprep.mubr.msk.f32.mxu1 %vm1665_vm1, %v1664_v51 }
 0x1ee   : > { %1582 = vmatprep.subr.mxu1 %v1664_v51  ;;  %1579 = vmatprep.mubr.msk.f32.mxu0 %vm1665_vm1, %v1664_v51 }
 0x1f0   : > { %1575 = vmatmul.mubr.msk.f32.vlgmr.msra.gmra.mrb[6].mxu1 %vm416_vm0, %v517_v4 }
 0x1f1   : > { %1584 = vmatprep.mubr.msk.f32.mxu1 %vm1665_vm1, %v1664_v51 }
 0x2bb   : > { %v592_v6 = vpop.f32.mrb[2].mxu1 }
 0x2bc   : > { %v837_v7 = vadd.f32 %v1512_v5, %v592_v6  ;;  %v1561_v8 = vpop.f32.mrb[3].mxu1 }
 0x2be   : > { %v841_v9 = vsel %vm416_vm0, %v837_v7, -inf }
 0x2bf   : > { %v748_v10 = vpop.f32.mrb[2].mxu0  ;;  %842 = vmax.xlane.f32.xlu1 %v841_v9  ;;  %v670_v11 = vpop.f32.mrb[4].mxu1 }
 0x2c0   : > { %v838_v13 = vadd.f32 %v1512_v5, %v670_v11  ;;  %v1566_v14 = vpop.f32.mrb[5].mxu1  ;;  %v1571_v15 = vpop.f32.mrb[3].mxu0  ;;  %v839_v16 = vadd.f32 %v1512_v5, %v748_v10 }
 0x2c2   : > { %v844_v17 = vsel %vm416_vm0, %v838_v13, -inf  ;;  %v847_v22 = vsel %vm416_vm0, %v839_v16, -inf }
 0x2c3   : > { %845 = vmax.xlane.f32.xlu0 %v844_v17  ;;  %v826_v19 = vpop.f32.mrb[6].mxu1 }
 0x2c4   : > { %v840_v20 = vadd.f32 %v1512_v5, %v826_v19  ;;  %v1576_v21 = vpop.f32.mrb[7].mxu1 }
 0x2c6   : > { %v850_v23 = vsel %vm416_vm0, %v840_v20, -inf }
 0x2c7   : > { %848 = vmax.xlane.f32.xlu0 %v847_v22  ;;  %851 = vmax.xlane.f32.xlu1 %v850_v23  ;;  %v1344_v22 = vld [vmem:[%s1865_s4 + $0x10] sm:$0xff]  ;;  %v1345_v23 = vld [vmem:[%s1865_s4 + $0x18] sm:$0xff] }
 0x2d8   : > { %961 = vrot.lane.b32.xlu1 %v501_v55, %s1661_s7 }
 0x2dd   : > { %885 = vrot.lane.b32.xlu0 %v496_v58, %s1661_s7 }
 0x34c   : > { %v843_v24 = vpop.xlane.xlu1 %842 }
 0x34d   : > { %v853_v25 = vsub.f32 %v837_v7, %v843_v24  ;;  %v1612_v24 = vpack.c.bf16 %v1345_v23, %v1344_v22 }
 0x34f   : > { %v857_v26 = vmul.f32 1.442695, %v853_v25 }
 0x350   : > { %v846_v27 = vpop.xlane.xlu0 %845 }
 0x351   : > { %1635 = vpow2.f32 %v857_v26  ;;  %v854_v28 = vsub.f32 %v838_v13, %v846_v27 }
 0x353   : > { %v859_v29 = vmul.f32 1.442695, %v854_v28 }
 0x354   : > { %v849_v30 = vpop.xlane.xlu0 %848  ;;  %v852_v31 = vpop.xlane.xlu1 %851 }
 0x355   : > { %1637 = vpow2.f32 %v859_v29  ;;  %v855_v32 = vsub.f32 %v839_v16, %v849_v30  ;;  %v856_v33 = vsub.f32 %v840_v20, %v852_v31 }
 0x357   : > { %v861_v34 = vmul.f32 1.442695, %v855_v32  ;;  %v863_v35 = vmul.f32 1.442695, %v856_v33 }
 0x358   : > { %v886_v36 = vpop.permute.xlu0 %885  ;;  %v962_v37 = vpop.permute.xlu1 %961 }
 0x359   : > { %1639 = vpow2.f32 %v861_v34  ;;  %1578 = vmatpush3.msra.mxu0 %v886_v36  ;;  %1583 = vmatpush3.msra.mxu1 %v962_v37 }
 0x35a   : > { %1641 = vpow2.f32 %v863_v35  ;;  %1587 = vmatprep.subr.mxu0 %v1664_v51  ;;  %1592 = vmatprep.subr.mxu1 %v1664_v51 }
 0x35b   : > { %v1636_v38 = vpop.eup %1635 }
 0x35c   : > { %v865_v39 = vsel %vm416_vm0, %v1636_v38, 0.0 }
 0x35d   : > { %866 = vadd.xlane.f32.xlu0 %v865_v39 }
 0x35f   : > { %v1638_v40 = vpop.eup %1637 }
 0x360   : > { %v868_v41 = vsel %vm416_vm0, %v1638_v40, 0.0 }
 0x361   : > { %869 = vadd.xlane.f32.xlu1 %v868_v41 }
 0x363   : > { %v1640_v42 = vpop.eup %1639 }
 0x364   : > { %v1642_v43 = vpop.eup %1641  ;;  %v871_v44 = vsel %vm416_vm0, %v1640_v42, 0.0 }
 0x365   : > { %872 = vadd.xlane.f32.xlu0 %v871_v44  ;;  %v874_v45 = vsel %vm416_vm0, %v1642_v43, 0.0 }
 0x366   : > { %875 = vadd.xlane.f32.xlu1 %v874_v45 }
 0x377   : > { %1037 = vrot.lane.b32.xlu1 %v1763_v60, %s1661_s7 }
 0x37b   : > { %1113 = vrot.lane.b32.xlu0 %v1761_v59, %s1661_s7  ;;  %s260_s7 = scalar_lea.vmem %s1867_s6, %s1495_s23 }
 0x3ea   : > { %v867_v46 = vpop.xlane.xlu0 %866 }
 0x3eb   : > { %1643 = vrcp.f32 %v867_v46 }
 0x3ee   : > { %v870_v47 = vpop.xlane.xlu1 %869 }
 0x3ef   : > { %1645 = vrcp.f32 %v870_v47 }
 0x3f2   : > { %v873_v48 = vpop.xlane.xlu0 %872 }
 0x3f3   : > { %1647 = vrcp.f32 %v873_v48  ;;  %v876_v49 = vpop.xlane.xlu1 %875 }
 0x3f4   : > { %1649 = vrcp.f32 %v876_v49 }
 0x3f5   : > { %v1644_v50 = vpop.eup %1643 }
 0x3f6   : > { %v881_v52 = vmul.f32 %v1644_v50, %v1636_v38  ;;  %v1114_v56 = vpop.permute.xlu0 %1113 }
 0x3f7   : > { %v1038_v53 = vpop.permute.xlu1 %1037 }
 0x3f8   : > { %1580 = vmatmul.mubr.msk.f32.vlgmr.msra.gmra.mrb[4].mxu0 %vm416_vm0, %v881_v52 }
 0x3f9   : > { %v1646_v54 = vpop.eup %1645  ;;  %1588 = vmatpush3.msra.mxu0 %v1038_v53  ;;  %1589 = vmatprep.mubr.msk.f32.mxu0 %vm1665_vm1, %v1664_v51 }
 0x3fa   : > { %v882_v55 = vmul.f32 %v1646_v54, %v1638_v40  ;;  %1608 = vmatprep.subr.bf16.mxu0 %v1666_v63  ;;  %v1519_v54 = vld [vmem:[%s1866_s5] ss:$0 sm:$0xff] }
 0x3fc   : > { %1585 = vmatmul.mubr.msk.f32.vlgmr.msra.gmra.mrb[8].mxu1 %vm416_vm0, %v882_v55 }
 0x3fd   : > { %v1648_v57 = vpop.eup %1647  ;;  %1593 = vmatpush3.msra.mxu1 %v1114_v56  ;;  %1594 = vmatprep.mubr.msk.f32.mxu1 %vm1665_vm1, %v1664_v51 }
 0x3fe   : > { %v1650_v58 = vpop.eup %1649  ;;  %v883_v59 = vmul.f32 %v1648_v57, %v1640_v42 }
 0x3ff   : > { %v884_v60 = vmul.f32 %v1650_v58, %v1642_v43 }
 0x400   : > { %1590 = vmatmul.mubr.msk.f32.vlgmr.msra.gmra.mrb[6].mxu0 %vm416_vm0, %v883_v59 }
 0x401   : > { %1595 = vmatmul.mubr.msk.f32.vlgmr.msra.gmra.mrb[10].mxu1 %vm416_vm0, %v884_v60  ;;  %1605 = vmatprep.mubr.msk.f32.mxu0 %vm1665_vm1, %v1664_v51 }
 0x402   : > { %1610 = vmatpush3.bf16.msra.mxu0 %v1609_v0 }
 0x403   : > { %1611 = vmatprep.subr.bf16.mxu0 %v1666_v63 }
 0x406   : > { %1613 = vmatpush3.bf16.msra.mxu0 %v1612_v24 }
 0x4cb   : > { %v957_v1 = vpop.f32.mrb[4].mxu0 }
 0x4cc   : > { %v1581_v2 = vpop.f32.mrb[5].mxu0 }
 0x4cf   : > { %v1033_v3 = vpop.f32.mrb[8].mxu1 }
 0x4d0   : > { %v1586_v4 = vpop.f32.mrb[9].mxu1 }
 0x4d3   : > { %v1109_v5 = vpop.f32.mrb[6].mxu0 }
 0x4d4   : > { %v1189_v6 = vcombine.low %v957_v1, %v1109_v5  ;;  %v1190_v51 = vcombine.high %v957_v1, %v1109_v5  ;;  %v1185_v7 = vpop.f32.mrb[10].mxu1  ;;  %v1591_v8 = vpop.f32.mrb[7].mxu0 }
 0x4d5   : > { %v1205_v9 = vcombine.low %v1033_v3, %v1185_v7  ;;  %v1206_v10 = vcombine.high %v1033_v3, %v1185_v7  ;;  %v1596_v11 = vpop.f32.mrb[11].mxu1 }
 0x4d6   : > { %v1197_v13 = vrot.slane %v1189_v6, %v1726_v12  ;;  %v1204_v14 = vrot.slane %v1190_v51, %v1726_v12 }
 0x4d7   : > { %v1213_v15 = vrot.slane %v1205_v9, %v1726_v12  ;;  %v1220_v16 = vrot.slane %v1206_v10, %v1726_v12 }
 0x4d9   : > { %v1221_v17 = vcombine.low %v1197_v13, %v1213_v15  ;;  %v1222_v19 = vcombine.high %v1197_v13, %v1213_v15  ;;  %v1237_v20 = vcombine.low %v1204_v14, %v1220_v16  ;;  %v1238_v21 = vcombine.high %v1204_v14, %v1220_v16 }
 0x4db   : > { %v1229_v25 = vrot.slane %v1221_v17, %v1728_v18  ;;  %v1236_v26 = vrot.slane %v1222_v19, %v1728_v18  ;;  %v1245_v27 = vrot.slane %v1237_v20, %v1728_v18  ;;  %v1252_v28 = vrot.slane %v1238_v21, %v1728_v18 }
 0x4dd   : > { %v1257_v29 = vcombine.low %v1229_v25, %v1236_v26  ;;  %v1517_v30 = vcombine.high %v1229_v25, %v1236_v26  ;;  %v1273_v31 = vcombine.low %v1245_v27, %v1252_v28  ;;  %v1518_v32 = vcombine.high %v1245_v27, %v1252_v28 }
 0x4df   : > { %v1264_v33 = vrot.slane %v1257_v29, %v1726_v12  ;;  %v1272_v34 = vrot.slane %v1517_v30, %v1726_v12  ;;  %v1280_v35 = vrot.slane %v1273_v31, %v1726_v12  ;;  %v1288_v36 = vrot.slane %v1518_v32, %v1726_v12 }
 0x4e1   : > { %v1290_v37 = vcombine.high %v1264_v33, %v1272_v34  ;;  %v1306_v38 = vcombine.high %v1280_v35, %v1288_v36  ;;  %v1289_v39 = vcombine.low %v1264_v33, %v1272_v34  ;;  %v1305_v40 = vcombine.low %v1280_v35, %v1288_v36 }
 0x4e3   : > { %v1304_v41 = vrot.slane %v1290_v37, %v1728_v18  ;;  %v1320_v42 = vrot.slane %v1306_v38, %v1728_v18  ;;  %v1297_v43 = vrot.slane %v1289_v39, %v1728_v18  ;;  %v1313_v44 = vrot.slane %v1305_v40, %v1728_v18 }
 0x4e5   : > { %v1323_v45 = vcombine.low %v1304_v41, %v1320_v42  ;;  %v1322_v46 = vcombine.high %v1297_v43, %v1313_v44  ;;  %v1324_v47 = vcombine.high %v1304_v41, %v1320_v42  ;;  %v1321_v48 = vcombine.low %v1297_v43, %v1313_v44 }
 0x4e7   : > { %1330 = vrot.lane.b32.xlu0 %v1323_v45, %s1667_s24  ;;  %1326 = vrot.lane.b32.xlu1 %v1322_v46, %s1668_s25 }
 0x4eb   : > { %1334 = vrot.lane.b32.xlu1 %v1324_v47, %s1669_s26 }
 0x559   : > { %v1327_v12 = vpop.permute.xlu1 %1326  ;;  %v1331_v49 = vpop.permute.xlu0 %1330 }
 0x55a   : > { %v1337_v50 = vsel %vm416_vm0, %v1321_v48, %v1327_v12 }
 0x55b   : > { %v1339_v18 = vsel %vm1338_vm2, %v1337_v50, %v1331_v49 }
 0x55d   : > { %v1335_v52 = vpop.permute.xlu1 %1334 }
 0x55e   : > { %v1341_v53 = vsel %vm1340_vm3, %v1339_v18, %v1335_v52 }
 0x55f   : > { %1606 = vmatmul.mubr.msk.f32.vlgmr.msra.gmra.mrb[8].mxu0 %vm1353_vm4, %v1341_v53 }
 0x632   : > { %v1423_v55 = vpop.f32.mrb[8].mxu0 }
 0x633   : > { %v1424_v56 = vadd.f32 %v1519_v54, %v1423_v55  ;;  %v1607_v57 = vpop.f32.mrb[9].mxu0 }
 0x635   : > { %1427 = vst.msk [vmem:[%s260_s7] sm:$0xff] %vm1353_vm4, %v1424_v56 }
 0x636 PF: > { %s16_s21 = sadd.s32 1, %s1657_s21  }
 0x637   : > { %p13_p4 = scmp.ge.s32.totalorder %s16_s21, 4  }
 0x639   :  { %15 = sbr.rel (!%p13_p4) target bundleno = 1 (0x1), region = 77 }

</bundles_post_ra>
